<compile_context>
chip_gen: v6e
topology: v6e:2x2x1
jax: 0.10.0
libtpu: 0.0.40
codegen_flags: <defaults>
</compile_context>

<pallas_src>
import functools

import jax
import jax.numpy as jnp
from jax.experimental import pallas as pl
from jax.experimental.pallas import tpu as pltpu

KS = 7    # kernel size (module asserts 3 or 7; this implements 7)
PAD = 3   # padding for kernel_size == 7

_FUSE_LIMIT_BYTES = 8 << 20     # fuse when C*H*W (f32-equivalent) <= 8 MiB per batch
_BLOCK_TARGET_BYTES = 4 << 20   # ~4 MiB channel-tile blocks for the two-pass path
_VMEM_CAP = 48 << 20            # v7x-safe vmem_limit_bytes ceiling (64 MiB per core)


# --------------------------------------------------------------------------- helpers
def _roll_lanes(x, shift):
    """Static circular roll along the last (lane) axis; jnp.roll semantics."""
    size = x.shape[-1]
    shift = shift % size
    if shift == 0:
        return x
    return pltpu.roll(x, shift, axis=x.ndim - 1)


def _conv7x7_flat(mean_map, max_map, w_ref, row, col, H, W):
    """7x7, 2->1 channel conv (stride 1, pad 3, no bias, cross-correlation like
    PyTorch) evaluated directly on lane-dense (1, H*W) maps.

    For output position p = h*W + w and tap (di, dj), the needed input element sits
    at flat index p + di*W + dj; a circular lane roll by -(di*W + dj) places it at
    position p.  Taps that fall outside the image (h+di or w+dj out of range) are
    masked to zero, which also removes anything the circular wrap dragged in, so
    the result matches the zero-padded conv exactly.  At most ~6 HW-sized buffers
    are live, so the once-per-batch conv tail does not spill vregs.
    """
    acc = jnp.zeros((1, H * W), jnp.float32)
    for c, m in enumerate((mean_map, max_map)):
        for ki in range(KS):
            di = ki - PAD
            row_ok = jnp.logical_and(row + di >= 0, row + di < H)
            shifted_r = _roll_lanes(m, -di * W)
            for kj in range(KS):
                dj = kj - PAD
                col_ok = jnp.logical_and(col + dj >= 0, col + dj < W)
                valid = jnp.logical_and(row_ok, col_ok)
                shifted = _roll_lanes(shifted_r, -dj)
                acc = acc + jnp.where(valid, shifted, 0.0) * w_ref[c * KS * KS + ki * KS + kj]
    return acc   # (1, H*W) float32


# --------------------------------------------------------------------------- kernels
def _fused_kernel(x_ref, w_ref, row_ref, col_ref, o_ref, *, C, H, W):
    # x_ref/o_ref: (1, C, H*W) lane-dense blocks (one full batch slice).
    # w_ref: (2*KS*KS,) flattened conv weight in SMEM, order [in_c, kh, kw].
    # row_ref/col_ref: (1, H*W) int32 spatial coordinates of each flattened position.
    x = x_ref[0]                                          # (C, HW), input dtype
    xf = x.astype(jnp.float32)
    sum_map = jnp.sum(xf, axis=0, keepdims=True)          # (1, HW)
    max_map = jnp.max(xf, axis=0, keepdims=True)          # (1, HW)
    mean_map = sum_map * (1.0 / C)
    conv = _conv7x7_flat(mean_map, max_map, w_ref, row_ref[...], col_ref[...], H, W)
    att = jax.nn.sigmoid(conv)                            # (1, HW) f32
    # Multiply in the input dtype (bf16 stays bf16 on v6e/v7x; f32 stays f32).
    o_ref[0] = (x * att.astype(x.dtype)).astype(o_ref.dtype)


def _att_kernel(x_ref, w_ref, row_ref, col_ref, att_ref, sum_sc, max_sc, *, C, H, W):
    # x_ref: (1, c_tile, H*W) lane-dense block; att_ref: (1, 1, H*W) output block
    # (same block across the channel-tile axis); sum_sc/max_sc: (1, H*W) f32.
    ct = pl.program_id(1)
    c_tile = x_ref.shape[1]
    x = x_ref[0].astype(jnp.float32)                      # (c_tile, HW)

    if C % c_tile != 0:
        # cdiv grid: mask the padded channels of the last (partial) tile.
        ch = ct * c_tile + jax.lax.broadcasted_iota(jnp.int32, x.shape, 0)
        valid = ch < C
        x_sum = jnp.where(valid, x, 0.0)
        x_max = jnp.where(valid, x, -jnp.inf)
    else:
        x_sum = x
        x_max = x

    @pl.when(ct == 0)
    def _():
        sum_sc[...] = jnp.zeros_like(sum_sc)
        max_sc[...] = jnp.full_like(max_sc, -jnp.inf)

    sum_sc[...] = sum_sc[...] + jnp.sum(x_sum, axis=0, keepdims=True)
    max_sc[...] = jnp.maximum(max_sc[...], jnp.max(x_max, axis=0, keepdims=True))

    @pl.when(ct == pl.num_programs(1) - 1)
    def _():
        mean_map = sum_sc[...] * (1.0 / C)
        conv = _conv7x7_flat(mean_map, max_sc[...], w_ref,
                             row_ref[...], col_ref[...], H, W)
        att_ref[0] = jax.nn.sigmoid(conv).astype(att_ref.dtype)


def _mul_kernel(x_ref, att_ref, o_ref):
    # x_ref/o_ref: (1, c_tile, H*W); att_ref: (1, 1, H*W) in x.dtype.
    o_ref[...] = (x_ref[...] * att_ref[...]).astype(o_ref.dtype)


# --------------------------------------------------------------------------- wrapper
def _pick_c_tile(C, hw, itemsize, sub, target_bytes=_BLOCK_TARGET_BYTES):
    """Channel tile for the two-pass path: full C if it fits the target, otherwise
    the largest multiple of the sublane packing <= C near the target block size
    (the grid uses cdiv, so C need not be divisible by the tile)."""
    if C <= sub or C * hw * itemsize <= target_bytes:
        return C
    per_group = hw * itemsize * sub
    ct = max(1, target_bytes // per_group) * sub
    return int(min(ct, (C // sub) * sub))


def spatial_attention(x, w, *, force_two_pass=False):
    """x: (B, C, H, W); w: (1, 2, 7, 7) Conv2d(2, 1, 7, bias=False) weight."""
    B, C, H, W = x.shape
    HW = H * W
    itemsize = jnp.dtype(x.dtype).itemsize
    sub = {4: 8, 2: 16, 1: 32}.get(itemsize, 8)

    w_flat = w.reshape(-1).astype(jnp.float32)            # (2*KS*KS,)
    x_flat = x.reshape(B, C, HW)                          # H*W on lanes (free reshape)
    pos = jnp.arange(HW, dtype=jnp.int32)
    row_idx = (pos // W).reshape(1, HW)
    col_idx = (pos % W).reshape(1, HW)

    fused = (not force_two_pass) and (C * HW * 4 <= _FUSE_LIMIT_BYTES)

    if fused:
        # -------------------- single pass: 1 read + 1 write of x ------------------
        block_bytes = C * HW * itemsize
        f32_tmp = C * HW * 4 if itemsize < 4 else 0
        budget = 4 * block_bytes + f32_tmp + 16 * HW * 4 + (8 << 20)
        budget = int(min(max(budget, 16 << 20), _VMEM_CAP))
        out_flat = pl.pallas_call(
            functools.partial(_fused_kernel, C=C, H=H, W=W),
            out_shape=jax.ShapeDtypeStruct((B, C, HW), x.dtype),
            grid=(B,),
            in_specs=[
                pl.BlockSpec((1, C, HW), lambda b: (b, 0, 0)),
                pl.BlockSpec(memory_space=pltpu.MemorySpace.SMEM),
                pl.BlockSpec((1, HW), lambda b: (0, 0)),
                pl.BlockSpec((1, HW), lambda b: (0, 0)),
            ],
            out_specs=pl.BlockSpec((1, C, HW), lambda b: (b, 0, 0)),
            compiler_params=pltpu.CompilerParams(
                dimension_semantics=("parallel",),
                vmem_limit_bytes=budget),
        )(x_flat, w_flat, row_idx, col_idx)
        return out_flat.reshape(B, C, H, W)

    # -------------------- fallback: two passes for very large slices --------------
    # TODO(synk): on v7x with B == 1 the channel reduction serializes on one
    # TensorCore; a 2-way channel split with a tiny combine step would recover ~2x.
    c_tile = _pick_c_tile(C, HW, itemsize, sub)
    n_ct = pl.cdiv(C, c_tile)
    block_bytes = c_tile * HW * itemsize
    f32_tmp = c_tile * HW * 4 if itemsize < 4 else 0

    budget1 = 2 * block_bytes + f32_tmp + 2 * HW * itemsize + 20 * HW * 4 + (8 << 20)
    budget1 = int(min(max(budget1, 16 << 20), _VMEM_CAP))
    att = pl.pallas_call(
        functools.partial(_att_kernel, C=C, H=H, W=W),
        out_shape=jax.ShapeDtypeStruct((B, 1, HW), x.dtype),
        grid=(B, n_ct),
        in_specs=[
            pl.BlockSpec((1, c_tile, HW), lambda b, ct: (b, ct, 0)),
            pl.BlockSpec(memory_space=pltpu.MemorySpace.SMEM),
            pl.BlockSpec((1, HW), lambda b, ct: (0, 0)),
            pl.BlockSpec((1, HW), lambda b, ct: (0, 0)),
        ],
        out_specs=pl.BlockSpec((1, 1, HW), lambda b, ct: (b, 0, 0)),
        scratch_shapes=[
            pltpu.VMEM((1, HW), jnp.float32),     # running channel sum
            pltpu.VMEM((1, HW), jnp.float32),     # running channel max
        ],
        compiler_params=pltpu.CompilerParams(
            dimension_semantics=("parallel", "arbitrary"),
            vmem_limit_bytes=budget1),
    )(x_flat, w_flat, row_idx, col_idx)

    budget2 = 4 * block_bytes + 4 * HW * itemsize + (8 << 20)
    budget2 = int(min(max(budget2, 16 << 20), _VMEM_CAP))
    out_flat = pl.pallas_call(
        _mul_kernel,
        out_shape=jax.ShapeDtypeStruct((B, C, HW), x.dtype),
        grid=(B, n_ct),
        in_specs=[
            pl.BlockSpec((1, c_tile, HW), lambda b, ct: (b, ct, 0)),
            pl.BlockSpec((1, 1, HW), lambda b, ct: (b, 0, 0)),
        ],
        out_specs=pl.BlockSpec((1, c_tile, HW), lambda b, ct: (b, ct, 0)),
        compiler_params=pltpu.CompilerParams(
            dimension_semantics=("parallel", "parallel"),
            vmem_limit_bytes=budget2),
    )(x_flat, att)
    return out_flat.reshape(B, C, H, W)


# --------------------------------------------------------------------------- reference
def spatial_attention_ref(x, w):
    """Pure-JAX reference matching the PyTorch forward."""
    mean_map = jnp.mean(x, axis=1, keepdims=True)
    max_map = jnp.max(x, axis=1, keepdims=True)
    cat = jnp.concatenate([mean_map, max_map], axis=1)          # (B, 2, H, W)
    conv = jax.lax.conv_general_dilated(
        cat, w, window_strides=(1, 1), padding=[(PAD, PAD), (PAD, PAD)],
        dimension_numbers=("NCHW", "OIHW", "NCHW"))
    return x * jax.nn.sigmoid(conv)


if __name__ == "__main__":
    key = jax.random.PRNGKey(0)
    kx, kw = jax.random.split(key)

    B, C, H, W = 2, 4, 16, 16
    x = jax.random.normal(kx, (B, C, H, W), dtype=jnp.float32)
    # deterministic conv weight init (Conv2d(2, 1, 7, bias=False) -> (1, 2, 7, 7))
    fan_in = 2 * KS * KS
    w = jax.random.normal(kw, (1, 2, KS, KS), dtype=jnp.float32) * (fan_in ** -0.5)

    ref = jax.block_until_ready(spatial_attention_ref(x, w))

    # primary (fused) path
    out = jax.block_until_ready(spatial_attention(x, w))
    assert out.shape == (B, C, H, W)
    assert jnp.allclose(out, ref, atol=2e-5, rtol=2e-5), "fused path mismatch vs reference"

    # large-shape fallback path (exercised at the small shape for correctness)
    out2 = jax.block_until_ready(spatial_attention(x, w, force_two_pass=True))
    assert jnp.allclose(out2, ref, atol=2e-5, rtol=2e-5), "two-pass path mismatch vs reference"

    print("KERNEL_OK")
</pallas_src>

<mosaic_0001>
module attributes {stable_mosaic.version = 11 : i64} {
  func.func @_fused_kernel(%arg0: i32, %arg1: memref<1x4x256xf32, #tpu.memory_space<vmem>>, %arg2: memref<98xf32, #tpu.memory_space<smem>>, %arg3: memref<1x256xi32, #tpu.memory_space<vmem>>, %arg4: memref<1x256xi32, #tpu.memory_space<vmem>>, %arg5: memref<1x4x256xf32, #tpu.memory_space<vmem>>) attributes {dimension_semantics = [#tpu.dimension_semantics<parallel>], iteration_bounds = array<i64: 2>, scalar_prefetch = 0 : i64, scratch_operands = 0 : i64, tpu.core_type = #tpu.core_type<tc>, window_params = [{transform_indices = @transform_0, window_bounds = array<i64: 1, 4, 256>}, {transform_indices = @transform_1, window_bounds = array<i64: 98>}, {pipeline_mode = #tpu.pipeline_mode<synchronous>, transform_indices = @transform_2, window_bounds = array<i64: 1, 256>}, {pipeline_mode = #tpu.pipeline_mode<synchronous>, transform_indices = @transform_3, window_bounds = array<i64: 1, 256>}, {transform_indices = @transform_4, window_bounds = array<i64: 1, 4, 256>}]} {
    %c0 = arith.constant 0 : index
    %c0_0 = arith.constant 0 : index
    %c0_1 = arith.constant 0 : index
    %0 = vector.load %arg1[%c0, %c0_0, %c0_1] : memref<1x4x256xf32, #tpu.memory_space<vmem>>, vector<1x4x256xf32>
    %1 = vector.shape_cast %0 : vector<1x4x256xf32> to vector<4x256xf32>
    %cst = arith.constant dense<0.000000e+00> : vector<256xf32>
    %2 = vector.multi_reduction <add>, %1, %cst [0] : vector<4x256xf32> to vector<256xf32>
    %3 = vector.shape_cast %2 : vector<256xf32> to vector<1x256xf32>
    %cst_2 = arith.constant dense<0xFF800000> : vector<256xf32>
    %4 = vector.multi_reduction <maximumf>, %1, %cst_2 [0] : vector<4x256xf32> to vector<256xf32>
    %5 = vector.shape_cast %4 : vector<256xf32> to vector<1x256xf32>
    %cst_3 = arith.constant 2.500000e-01 : f32
    %6 = vector.broadcast %cst_3 : f32 to vector<1x256xf32>
    %7 = arith.mulf %3, %6 : vector<1x256xf32>
    %c0_4 = arith.constant 0 : index
    %c0_5 = arith.constant 0 : index
    %8 = vector.load %arg3[%c0_4, %c0_5] : memref<1x256xi32, #tpu.memory_space<vmem>>, vector<1x256xi32>
    %c0_6 = arith.constant 0 : index
    %c0_7 = arith.constant 0 : index
    %9 = vector.load %arg4[%c0_6, %c0_7] : memref<1x256xi32, #tpu.memory_space<vmem>>, vector<1x256xi32>
    %cst_8 = arith.constant 0.000000e+00 : f32
    %10 = vector.broadcast %cst_8 : f32 to vector<1x256xf32>
    %c-3_i32 = arith.constant -3 : i32
    %11 = vector.broadcast %c-3_i32 : i32 to vector<1x256xi32>
    %12 = arith.addi %8, %11 : vector<1x256xi32>
    %c0_i32 = arith.constant 0 : i32
    %13 = vector.broadcast %c0_i32 : i32 to vector<1x256xi32>
    %14 = arith.cmpi sge, %12, %13 : vector<1x256xi32>
    %c-3_i32_9 = arith.constant -3 : i32
    %15 = vector.broadcast %c-3_i32_9 : i32 to vector<1x256xi32>
    %16 = arith.addi %8, %15 : vector<1x256xi32>
    %c16_i32 = arith.constant 16 : i32
    %17 = vector.broadcast %c16_i32 : i32 to vector<1x256xi32>
    %18 = arith.cmpi slt, %16, %17 : vector<1x256xi32>
    %19 = arith.andi %14, %18 : vector<1x256xi1>
    %c48_i32 = arith.constant 48 : i32
    %20 = tpu.dynamic_rotate %7 by %c48_i32 dim 1 : vector<1x256xf32>, i32 -> vector<1x256xf32>
    %c-3_i32_10 = arith.constant -3 : i32
    %21 = vector.broadcast %c-3_i32_10 : i32 to vector<1x256xi32>
    %22 = arith.addi %9, %21 : vector<1x256xi32>
    %c0_i32_11 = arith.constant 0 : i32
    %23 = vector.broadcast %c0_i32_11 : i32 to vector<1x256xi32>
    %24 = arith.cmpi sge, %22, %23 : vector<1x256xi32>
    %c-3_i32_12 = arith.constant -3 : i32
    %25 = vector.broadcast %c-3_i32_12 : i32 to vector<1x256xi32>
    %26 = arith.addi %9, %25 : vector<1x256xi32>
    %c16_i32_13 = arith.constant 16 : i32
    %27 = vector.broadcast %c16_i32_13 : i32 to vector<1x256xi32>
    %28 = arith.cmpi slt, %26, %27 : vector<1x256xi32>
    %29 = arith.andi %24, %28 : vector<1x256xi1>
    %30 = arith.andi %19, %29 : vector<1x256xi1>
    %c3_i32 = arith.constant 3 : i32
    %31 = tpu.dynamic_rotate %20 by %c3_i32 dim 1 : vector<1x256xf32>, i32 -> vector<1x256xf32>
    %cst_14 = arith.constant 0.000000e+00 : f32
    %32 = vector.broadcast %cst_14 : f32 to vector<1x256xf32>
    %33 = arith.select %30, %31, %32 : vector<1x256xi1>, vector<1x256xf32>
    %c0_15 = arith.constant 0 : index
    %34 = memref.load %arg2[%c0_15] : memref<98xf32, #tpu.memory_space<smem>>
    %35 = vector.broadcast %34 : f32 to vector<1x256xf32>
    %36 = arith.mulf %33, %35 : vector<1x256xf32>
    %37 = arith.addf %10, %36 : vector<1x256xf32>
    %c-2_i32 = arith.constant -2 : i32
    %38 = vector.broadcast %c-2_i32 : i32 to vector<1x256xi32>
    %39 = arith.addi %9, %38 : vector<1x256xi32>
    %c0_i32_16 = arith.constant 0 : i32
    %40 = vector.broadcast %c0_i32_16 : i32 to vector<1x256xi32>
    %41 = arith.cmpi sge, %39, %40 : vector<1x256xi32>
    %c-2_i32_17 = arith.constant -2 : i32
    %42 = vector.broadcast %c-2_i32_17 : i32 to vector<1x256xi32>
    %43 = arith.addi %9, %42 : vector<1x256xi32>
    %c16_i32_18 = arith.constant 16 : i32
    %44 = vector.broadcast %c16_i32_18 : i32 to vector<1x256xi32>
    %45 = arith.cmpi slt, %43, %44 : vector<1x256xi32>
    %46 = arith.andi %41, %45 : vector<1x256xi1>
    %47 = arith.andi %19, %46 : vector<1x256xi1>
    %c2_i32 = arith.constant 2 : i32
    %48 = tpu.dynamic_rotate %20 by %c2_i32 dim 1 : vector<1x256xf32>, i32 -> vector<1x256xf32>
    %cst_19 = arith.constant 0.000000e+00 : f32
    %49 = vector.broadcast %cst_19 : f32 to vector<1x256xf32>
    %50 = arith.select %47, %48, %49 : vector<1x256xi1>, vector<1x256xf32>
    %c1 = arith.constant 1 : index
    %51 = memref.load %arg2[%c1] : memref<98xf32, #tpu.memory_space<smem>>
    %52 = vector.broadcast %51 : f32 to vector<1x256xf32>
    %53 = arith.mulf %50, %52 : vector<1x256xf32>
    %54 = arith.addf %37, %53 : vector<1x256xf32>
    %c-1_i32 = arith.constant -1 : i32
    %55 = vector.broadcast %c-1_i32 : i32 to vector<1x256xi32>
    %56 = arith.addi %9, %55 : vector<1x256xi32>
    %c0_i32_20 = arith.constant 0 : i32
    %57 = vector.broadcast %c0_i32_20 : i32 to vector<1x256xi32>
    %58 = arith.cmpi sge, %56, %57 : vector<1x256xi32>
    %c-1_i32_21 = arith.constant -1 : i32
    %59 = vector.broadcast %c-1_i32_21 : i32 to vector<1x256xi32>
    %60 = arith.addi %9, %59 : vector<1x256xi32>
    %c16_i32_22 = arith.constant 16 : i32
    %61 = vector.broadcast %c16_i32_22 : i32 to vector<1x256xi32>
    %62 = arith.cmpi slt, %60, %61 : vector<1x256xi32>
    %63 = arith.andi %58, %62 : vector<1x256xi1>
    %64 = arith.andi %19, %63 : vector<1x256xi1>
    %c1_i32 = arith.constant 1 : i32
    %65 = tpu.dynamic_rotate %20 by %c1_i32 dim 1 : vector<1x256xf32>, i32 -> vector<1x256xf32>
    %cst_23 = arith.constant 0.000000e+00 : f32
    %66 = vector.broadcast %cst_23 : f32 to vector<1x256xf32>
    %67 = arith.select %64, %65, %66 : vector<1x256xi1>, vector<1x256xf32>
    %c2 = arith.constant 2 : index
    %68 = memref.load %arg2[%c2] : memref<98xf32, #tpu.memory_space<smem>>
    %69 = vector.broadcast %68 : f32 to vector<1x256xf32>
    %70 = arith.mulf %67, %69 : vector<1x256xf32>
    %71 = arith.addf %54, %70 : vector<1x256xf32>
    %c0_i32_24 = arith.constant 0 : i32
    %72 = vector.broadcast %c0_i32_24 : i32 to vector<1x256xi32>
    %73 = arith.addi %9, %72 : vector<1x256xi32>
    %c0_i32_25 = arith.constant 0 : i32
    %74 = vector.broadcast %c0_i32_25 : i32 to vector<1x256xi32>
    %75 = arith.cmpi sge, %73, %74 : vector<1x256xi32>
    %c0_i32_26 = arith.constant 0 : i32
    %76 = vector.broadcast %c0_i32_26 : i32 to vector<1x256xi32>
    %77 = arith.addi %9, %76 : vector<1x256xi32>
    %c16_i32_27 = arith.constant 16 : i32
    %78 = vector.broadcast %c16_i32_27 : i32 to vector<1x256xi32>
    %79 = arith.cmpi slt, %77, %78 : vector<1x256xi32>
    %80 = arith.andi %75, %79 : vector<1x256xi1>
    %81 = arith.andi %19, %80 : vector<1x256xi1>
    %cst_28 = arith.constant 0.000000e+00 : f32
    %82 = vector.broadcast %cst_28 : f32 to vector<1x256xf32>
    %83 = arith.select %81, %20, %82 : vector<1x256xi1>, vector<1x256xf32>
    %c3 = arith.constant 3 : index
    %84 = memref.load %arg2[%c3] : memref<98xf32, #tpu.memory_space<smem>>
    %85 = vector.broadcast %84 : f32 to vector<1x256xf32>
    %86 = arith.mulf %83, %85 : vector<1x256xf32>
    %87 = arith.addf %71, %86 : vector<1x256xf32>
    %c1_i32_29 = arith.constant 1 : i32
    %88 = vector.broadcast %c1_i32_29 : i32 to vector<1x256xi32>
    %89 = arith.addi %9, %88 : vector<1x256xi32>
    %c0_i32_30 = arith.constant 0 : i32
    %90 = vector.broadcast %c0_i32_30 : i32 to vector<1x256xi32>
    %91 = arith.cmpi sge, %89, %90 : vector<1x256xi32>
    %c1_i32_31 = arith.constant 1 : i32
    %92 = vector.broadcast %c1_i32_31 : i32 to vector<1x256xi32>
    %93 = arith.addi %9, %92 : vector<1x256xi32>
    %c16_i32_32 = arith.constant 16 : i32
    %94 = vector.broadcast %c16_i32_32 : i32 to vector<1x256xi32>
    %95 = arith.cmpi slt, %93, %94 : vector<1x256xi32>
    %96 = arith.andi %91, %95 : vector<1x256xi1>
    %97 = arith.andi %19, %96 : vector<1x256xi1>
    %c255_i32 = arith.constant 255 : i32
    %98 = tpu.dynamic_rotate %20 by %c255_i32 dim 1 : vector<1x256xf32>, i32 -> vector<1x256xf32>
    %cst_33 = arith.constant 0.000000e+00 : f32
    %99 = vector.broadcast %cst_33 : f32 to vector<1x256xf32>
    %100 = arith.select %97, %98, %99 : vector<1x256xi1>, vector<1x256xf32>
    %c4 = arith.constant 4 : index
    %101 = memref.load %arg2[%c4] : memref<98xf32, #tpu.memory_space<smem>>
    %102 = vector.broadcast %101 : f32 to vector<1x256xf32>
    %103 = arith.mulf %100, %102 : vector<1x256xf32>
    %104 = arith.addf %87, %103 : vector<1x256xf32>
    %c2_i32_34 = arith.constant 2 : i32
    %105 = vector.broadcast %c2_i32_34 : i32 to vector<1x256xi32>
    %106 = arith.addi %9, %105 : vector<1x256xi32>
    %c0_i32_35 = arith.constant 0 : i32
    %107 = vector.broadcast %c0_i32_35 : i32 to vector<1x256xi32>
    %108 = arith.cmpi sge, %106, %107 : vector<1x256xi32>
    %c2_i32_36 = arith.constant 2 : i32
    %109 = vector.broadcast %c2_i32_36 : i32 to vector<1x256xi32>
    %110 = arith.addi %9, %109 : vector<1x256xi32>
    %c16_i32_37 = arith.constant 16 : i32
    %111 = vector.broadcast %c16_i32_37 : i32 to vector<1x256xi32>
    %112 = arith.cmpi slt, %110, %111 : vector<1x256xi32>
    %113 = arith.andi %108, %112 : vector<1x256xi1>
    %114 = arith.andi %19, %113 : vector<1x256xi1>
    %c254_i32 = arith.constant 254 : i32
    %115 = tpu.dynamic_rotate %20 by %c254_i32 dim 1 : vector<1x256xf32>, i32 -> vector<1x256xf32>
    %cst_38 = arith.constant 0.000000e+00 : f32
    %116 = vector.broadcast %cst_38 : f32 to vector<1x256xf32>
    %117 = arith.select %114, %115, %116 : vector<1x256xi1>, vector<1x256xf32>
    %c5 = arith.constant 5 : index
    %118 = memref.load %arg2[%c5] : memref<98xf32, #tpu.memory_space<smem>>
    %119 = vector.broadcast %118 : f32 to vector<1x256xf32>
    %120 = arith.mulf %117, %119 : vector<1x256xf32>
    %121 = arith.addf %104, %120 : vector<1x256xf32>
    %c3_i32_39 = arith.constant 3 : i32
    %122 = vector.broadcast %c3_i32_39 : i32 to vector<1x256xi32>
    %123 = arith.addi %9, %122 : vector<1x256xi32>
    %c0_i32_40 = arith.constant 0 : i32
    %124 = vector.broadcast %c0_i32_40 : i32 to vector<1x256xi32>
    %125 = arith.cmpi sge, %123, %124 : vector<1x256xi32>
    %c3_i32_41 = arith.constant 3 : i32
    %126 = vector.broadcast %c3_i32_41 : i32 to vector<1x256xi32>
    %127 = arith.addi %9, %126 : vector<1x256xi32>
    %c16_i32_42 = arith.constant 16 : i32
    %128 = vector.broadcast %c16_i32_42 : i32 to vector<1x256xi32>
    %129 = arith.cmpi slt, %127, %128 : vector<1x256xi32>
    %130 = arith.andi %125, %129 : vector<1x256xi1>
    %131 = arith.andi %19, %130 : vector<1x256xi1>
    %c253_i32 = arith.constant 253 : i32
    %132 = tpu.dynamic_rotate %20 by %c253_i32 dim 1 : vector<1x256xf32>, i32 -> vector<1x256xf32>
    %cst_43 = arith.constant 0.000000e+00 : f32
    %133 = vector.broadcast %cst_43 : f32 to vector<1x256xf32>
    %134 = arith.select %131, %132, %133 : vector<1x256xi1>, vector<1x256xf32>
    %c6 = arith.constant 6 : index
    %135 = memref.load %arg2[%c6] : memref<98xf32, #tpu.memory_space<smem>>
    %136 = vector.broadcast %135 : f32 to vector<1x256xf32>
    %137 = arith.mulf %134, %136 : vector<1x256xf32>
    %138 = arith.addf %121, %137 : vector<1x256xf32>
    %c-2_i32_44 = arith.constant -2 : i32
    %139 = vector.broadcast %c-2_i32_44 : i32 to vector<1x256xi32>
    %140 = arith.addi %8, %139 : vector<1x256xi32>
    %c0_i32_45 = arith.constant 0 : i32
    %141 = vector.broadcast %c0_i32_45 : i32 to vector<1x256xi32>
    %142 = arith.cmpi sge, %140, %141 : vector<1x256xi32>
    %c-2_i32_46 = arith.constant -2 : i32
    %143 = vector.broadcast %c-2_i32_46 : i32 to vector<1x256xi32>
    %144 = arith.addi %8, %143 : vector<1x256xi32>
    %c16_i32_47 = arith.constant 16 : i32
    %145 = vector.broadcast %c16_i32_47 : i32 to vector<1x256xi32>
    %146 = arith.cmpi slt, %144, %145 : vector<1x256xi32>
    %147 = arith.andi %142, %146 : vector<1x256xi1>
    %c32_i32 = arith.constant 32 : i32
    %148 = tpu.dynamic_rotate %7 by %c32_i32 dim 1 : vector<1x256xf32>, i32 -> vector<1x256xf32>
    %c-3_i32_48 = arith.constant -3 : i32
    %149 = vector.broadcast %c-3_i32_48 : i32 to vector<1x256xi32>
    %150 = arith.addi %9, %149 : vector<1x256xi32>
    %c0_i32_49 = arith.constant 0 : i32
    %151 = vector.broadcast %c0_i32_49 : i32 to vector<1x256xi32>
    %152 = arith.cmpi sge, %150, %151 : vector<1x256xi32>
    %c-3_i32_50 = arith.constant -3 : i32
    %153 = vector.broadcast %c-3_i32_50 : i32 to vector<1x256xi32>
    %154 = arith.addi %9, %153 : vector<1x256xi32>
    %c16_i32_51 = arith.constant 16 : i32
    %155 = vector.broadcast %c16_i32_51 : i32 to vector<1x256xi32>
    %156 = arith.cmpi slt, %154, %155 : vector<1x256xi32>
    %157 = arith.andi %152, %156 : vector<1x256xi1>
    %158 = arith.andi %147, %157 : vector<1x256xi1>
    %c3_i32_52 = arith.constant 3 : i32
    %159 = tpu.dynamic_rotate %148 by %c3_i32_52 dim 1 : vector<1x256xf32>, i32 -> vector<1x256xf32>
    %cst_53 = arith.constant 0.000000e+00 : f32
    %160 = vector.broadcast %cst_53 : f32 to vector<1x256xf32>
    %161 = arith.select %158, %159, %160 : vector<1x256xi1>, vector<1x256xf32>
    %c7 = arith.constant 7 : index
    %162 = memref.load %arg2[%c7] : memref<98xf32, #tpu.memory_space<smem>>
    %163 = vector.broadcast %162 : f32 to vector<1x256xf32>
    %164 = arith.mulf %161, %163 : vector<1x256xf32>
    %165 = arith.addf %138, %164 : vector<1x256xf32>
    %c-2_i32_54 = arith.constant -2 : i32
    %166 = vector.broadcast %c-2_i32_54 : i32 to vector<1x256xi32>
    %167 = arith.addi %9, %166 : vector<1x256xi32>
    %c0_i32_55 = arith.constant 0 : i32
    %168 = vector.broadcast %c0_i32_55 : i32 to vector<1x256xi32>
    %169 = arith.cmpi sge, %167, %168 : vector<1x256xi32>
    %c-2_i32_56 = arith.constant -2 : i32
    %170 = vector.broadcast %c-2_i32_56 : i32 to vector<1x256xi32>
    %171 = arith.addi %9, %170 : vector<1x256xi32>
    %c16_i32_57 = arith.constant 16 : i32
    %172 = vector.broadcast %c16_i32_57 : i32 to vector<1x256xi32>
    %173 = arith.cmpi slt, %171, %172 : vector<1x256xi32>
    %174 = arith.andi %169, %173 : vector<1x256xi1>
    %175 = arith.andi %147, %174 : vector<1x256xi1>
    %c2_i32_58 = arith.constant 2 : i32
    %176 = tpu.dynamic_rotate %148 by %c2_i32_58 dim 1 : vector<1x256xf32>, i32 -> vector<1x256xf32>
    %cst_59 = arith.constant 0.000000e+00 : f32
    %177 = vector.broadcast %cst_59 : f32 to vector<1x256xf32>
    %178 = arith.select %175, %176, %177 : vector<1x256xi1>, vector<1x256xf32>
    %c8 = arith.constant 8 : index
    %179 = memref.load %arg2[%c8] : memref<98xf32, #tpu.memory_space<smem>>
    %180 = vector.broadcast %179 : f32 to vector<1x256xf32>
    %181 = arith.mulf %178, %180 : vector<1x256xf32>
    %182 = arith.addf %165, %181 : vector<1x256xf32>
    %c-1_i32_60 = arith.constant -1 : i32
    %183 = vector.broadcast %c-1_i32_60 : i32 to vector<1x256xi32>
    %184 = arith.addi %9, %183 : vector<1x256xi32>
    %c0_i32_61 = arith.constant 0 : i32
    %185 = vector.broadcast %c0_i32_61 : i32 to vector<1x256xi32>
    %186 = arith.cmpi sge, %184, %185 : vector<1x256xi32>
    %c-1_i32_62 = arith.constant -1 : i32
    %187 = vector.broadcast %c-1_i32_62 : i32 to vector<1x256xi32>
    %188 = arith.addi %9, %187 : vector<1x256xi32>
    %c16_i32_63 = arith.constant 16 : i32
    %189 = vector.broadcast %c16_i32_63 : i32 to vector<1x256xi32>
    %190 = arith.cmpi slt, %188, %189 : vector<1x256xi32>
    %191 = arith.andi %186, %190 : vector<1x256xi1>
    %192 = arith.andi %147, %191 : vector<1x256xi1>
    %c1_i32_64 = arith.constant 1 : i32
    %193 = tpu.dynamic_rotate %148 by %c1_i32_64 dim 1 : vector<1x256xf32>, i32 -> vector<1x256xf32>
    %cst_65 = arith.constant 0.000000e+00 : f32
    %194 = vector.broadcast %cst_65 : f32 to vector<1x256xf32>
    %195 = arith.select %192, %193, %194 : vector<1x256xi1>, vector<1x256xf32>
    %c9 = arith.constant 9 : index
    %196 = memref.load %arg2[%c9] : memref<98xf32, #tpu.memory_space<smem>>
    %197 = vector.broadcast %196 : f32 to vector<1x256xf32>
    %198 = arith.mulf %195, %197 : vector<1x256xf32>
    %199 = arith.addf %182, %198 : vector<1x256xf32>
    %c0_i32_66 = arith.constant 0 : i32
    %200 = vector.broadcast %c0_i32_66 : i32 to vector<1x256xi32>
    %201 = arith.addi %9, %200 : vector<1x256xi32>
    %c0_i32_67 = arith.constant 0 : i32
    %202 = vector.broadcast %c0_i32_67 : i32 to vector<1x256xi32>
    %203 = arith.cmpi sge, %201, %202 : vector<1x256xi32>
    %c0_i32_68 = arith.constant 0 : i32
    %204 = vector.broadcast %c0_i32_68 : i32 to vector<1x256xi32>
    %205 = arith.addi %9, %204 : vector<1x256xi32>
    %c16_i32_69 = arith.constant 16 : i32
    %206 = vector.broadcast %c16_i32_69 : i32 to vector<1x256xi32>
    %207 = arith.cmpi slt, %205, %206 : vector<1x256xi32>
    %208 = arith.andi %203, %207 : vector<1x256xi1>
    %209 = arith.andi %147, %208 : vector<1x256xi1>
    %cst_70 = arith.constant 0.000000e+00 : f32
    %210 = vector.broadcast %cst_70 : f32 to vector<1x256xf32>
    %211 = arith.select %209, %148, %210 : vector<1x256xi1>, vector<1x256xf32>
    %c10 = arith.constant 10 : index
    %212 = memref.load %arg2[%c10] : memref<98xf32, #tpu.memory_space<smem>>
    %213 = vector.broadcast %212 : f32 to vector<1x256xf32>
    %214 = arith.mulf %211, %213 : vector<1x256xf32>
    %215 = arith.addf %199, %214 : vector<1x256xf32>
    %c1_i32_71 = arith.constant 1 : i32
    %216 = vector.broadcast %c1_i32_71 : i32 to vector<1x256xi32>
    %217 = arith.addi %9, %216 : vector<1x256xi32>
    %c0_i32_72 = arith.constant 0 : i32
    %218 = vector.broadcast %c0_i32_72 : i32 to vector<1x256xi32>
    %219 = arith.cmpi sge, %217, %218 : vector<1x256xi32>
    %c1_i32_73 = arith.constant 1 : i32
    %220 = vector.broadcast %c1_i32_73 : i32 to vector<1x256xi32>
    %221 = arith.addi %9, %220 : vector<1x256xi32>
    %c16_i32_74 = arith.constant 16 : i32
    %222 = vector.broadcast %c16_i32_74 : i32 to vector<1x256xi32>
    %223 = arith.cmpi slt, %221, %222 : vector<1x256xi32>
    %224 = arith.andi %219, %223 : vector<1x256xi1>
    %225 = arith.andi %147, %224 : vector<1x256xi1>
    %c255_i32_75 = arith.constant 255 : i32
    %226 = tpu.dynamic_rotate %148 by %c255_i32_75 dim 1 : vector<1x256xf32>, i32 -> vector<1x256xf32>
    %cst_76 = arith.constant 0.000000e+00 : f32
    %227 = vector.broadcast %cst_76 : f32 to vector<1x256xf32>
    %228 = arith.select %225, %226, %227 : vector<1x256xi1>, vector<1x256xf32>
    %c11 = arith.constant 11 : index
    %229 = memref.load %arg2[%c11] : memref<98xf32, #tpu.memory_space<smem>>
    %230 = vector.broadcast %229 : f32 to vector<1x256xf32>
    %231 = arith.mulf %228, %230 : vector<1x256xf32>
    %232 = arith.addf %215, %231 : vector<1x256xf32>
    %c2_i32_77 = arith.constant 2 : i32
    %233 = vector.broadcast %c2_i32_77 : i32 to vector<1x256xi32>
    %234 = arith.addi %9, %233 : vector<1x256xi32>
    %c0_i32_78 = arith.constant 0 : i32
    %235 = vector.broadcast %c0_i32_78 : i32 to vector<1x256xi32>
    %236 = arith.cmpi sge, %234, %235 : vector<1x256xi32>
    %c2_i32_79 = arith.constant 2 : i32
    %237 = vector.broadcast %c2_i32_79 : i32 to vector<1x256xi32>
    %238 = arith.addi %9, %237 : vector<1x256xi32>
    %c16_i32_80 = arith.constant 16 : i32
    %239 = vector.broadcast %c16_i32_80 : i32 to vector<1x256xi32>
    %240 = arith.cmpi slt, %238, %239 : vector<1x256xi32>
    %241 = arith.andi %236, %240 : vector<1x256xi1>
    %242 = arith.andi %147, %241 : vector<1x256xi1>
    %c254_i32_81 = arith.constant 254 : i32
    %243 = tpu.dynamic_rotate %148 by %c254_i32_81 dim 1 : vector<1x256xf32>, i32 -> vector<1x256xf32>
    %cst_82 = arith.constant 0.000000e+00 : f32
    %244 = vector.broadcast %cst_82 : f32 to vector<1x256xf32>
    %245 = arith.select %242, %243, %244 : vector<1x256xi1>, vector<1x256xf32>
    %c12 = arith.constant 12 : index
    %246 = memref.load %arg2[%c12] : memref<98xf32, #tpu.memory_space<smem>>
    %247 = vector.broadcast %246 : f32 to vector<1x256xf32>
    %248 = arith.mulf %245, %247 : vector<1x256xf32>
    %249 = arith.addf %232, %248 : vector<1x256xf32>
    %c3_i32_83 = arith.constant 3 : i32
    %250 = vector.broadcast %c3_i32_83 : i32 to vector<1x256xi32>
    %251 = arith.addi %9, %250 : vector<1x256xi32>
    %c0_i32_84 = arith.constant 0 : i32
    %252 = vector.broadcast %c0_i32_84 : i32 to vector<1x256xi32>
    %253 = arith.cmpi sge, %251, %252 : vector<1x256xi32>
    %c3_i32_85 = arith.constant 3 : i32
    %254 = vector.broadcast %c3_i32_85 : i32 to vector<1x256xi32>
    %255 = arith.addi %9, %254 : vector<1x256xi32>
    %c16_i32_86 = arith.constant 16 : i32
    %256 = vector.broadcast %c16_i32_86 : i32 to vector<1x256xi32>
    %257 = arith.cmpi slt, %255, %256 : vector<1x256xi32>
    %258 = arith.andi %253, %257 : vector<1x256xi1>
    %259 = arith.andi %147, %258 : vector<1x256xi1>
    %c253_i32_87 = arith.constant 253 : i32
    %260 = tpu.dynamic_rotate %148 by %c253_i32_87 dim 1 : vector<1x256xf32>, i32 -> vector<1x256xf32>
    %cst_88 = arith.constant 0.000000e+00 : f32
    %261 = vector.broadcast %cst_88 : f32 to vector<1x256xf32>
    %262 = arith.select %259, %260, %261 : vector<1x256xi1>, vector<1x256xf32>
    %c13 = arith.constant 13 : index
    %263 = memref.load %arg2[%c13] : memref<98xf32, #tpu.memory_space<smem>>
    %264 = vector.broadcast %263 : f32 to vector<1x256xf32>
    %265 = arith.mulf %262, %264 : vector<1x256xf32>
    %266 = arith.addf %249, %265 : vector<1x256xf32>
    %c-1_i32_89 = arith.constant -1 : i32
    %267 = vector.broadcast %c-1_i32_89 : i32 to vector<1x256xi32>
    %268 = arith.addi %8, %267 : vector<1x256xi32>
    %c0_i32_90 = arith.constant 0 : i32
    %269 = vector.broadcast %c0_i32_90 : i32 to vector<1x256xi32>
    %270 = arith.cmpi sge, %268, %269 : vector<1x256xi32>
    %c-1_i32_91 = arith.constant -1 : i32
    %271 = vector.broadcast %c-1_i32_91 : i32 to vector<1x256xi32>
    %272 = arith.addi %8, %271 : vector<1x256xi32>
    %c16_i32_92 = arith.constant 16 : i32
    %273 = vector.broadcast %c16_i32_92 : i32 to vector<1x256xi32>
    %274 = arith.cmpi slt, %272, %273 : vector<1x256xi32>
    %275 = arith.andi %270, %274 : vector<1x256xi1>
    %c16_i32_93 = arith.constant 16 : i32
    %276 = tpu.dynamic_rotate %7 by %c16_i32_93 dim 1 : vector<1x256xf32>, i32 -> vector<1x256xf32>
    %c-3_i32_94 = arith.constant -3 : i32
    %277 = vector.broadcast %c-3_i32_94 : i32 to vector<1x256xi32>
    %278 = arith.addi %9, %277 : vector<1x256xi32>
    %c0_i32_95 = arith.constant 0 : i32
    %279 = vector.broadcast %c0_i32_95 : i32 to vector<1x256xi32>
    %280 = arith.cmpi sge, %278, %279 : vector<1x256xi32>
    %c-3_i32_96 = arith.constant -3 : i32
    %281 = vector.broadcast %c-3_i32_96 : i32 to vector<1x256xi32>
    %282 = arith.addi %9, %281 : vector<1x256xi32>
    %c16_i32_97 = arith.constant 16 : i32
    %283 = vector.broadcast %c16_i32_97 : i32 to vector<1x256xi32>
    %284 = arith.cmpi slt, %282, %283 : vector<1x256xi32>
    %285 = arith.andi %280, %284 : vector<1x256xi1>
    %286 = arith.andi %275, %285 : vector<1x256xi1>
    %c3_i32_98 = arith.constant 3 : i32
    %287 = tpu.dynamic_rotate %276 by %c3_i32_98 dim 1 : vector<1x256xf32>, i32 -> vector<1x256xf32>
    %cst_99 = arith.constant 0.000000e+00 : f32
    %288 = vector.broadcast %cst_99 : f32 to vector<1x256xf32>
    %289 = arith.select %286, %287, %288 : vector<1x256xi1>, vector<1x256xf32>
    %c14 = arith.constant 14 : index
    %290 = memref.load %arg2[%c14] : memref<98xf32, #tpu.memory_space<smem>>
    %291 = vector.broadcast %290 : f32 to vector<1x256xf32>
    %292 = arith.mulf %289, %291 : vector<1x256xf32>
    %293 = arith.addf %266, %292 : vector<1x256xf32>
    %c-2_i32_100 = arith.constant -2 : i32
    %294 = vector.broadcast %c-2_i32_100 : i32 to vector<1x256xi32>
    %295 = arith.addi %9, %294 : vector<1x256xi32>
    %c0_i32_101 = arith.constant 0 : i32
    %296 = vector.broadcast %c0_i32_101 : i32 to vector<1x256xi32>
    %297 = arith.cmpi sge, %295, %296 : vector<1x256xi32>
    %c-2_i32_102 = arith.constant -2 : i32
    %298 = vector.broadcast %c-2_i32_102 : i32 to vector<1x256xi32>
    %299 = arith.addi %9, %298 : vector<1x256xi32>
    %c16_i32_103 = arith.constant 16 : i32
    %300 = vector.broadcast %c16_i32_103 : i32 to vector<1x256xi32>
    %301 = arith.cmpi slt, %299, %300 : vector<1x256xi32>
    %302 = arith.andi %297, %301 : vector<1x256xi1>
    %303 = arith.andi %275, %302 : vector<1x256xi1>
    %c2_i32_104 = arith.constant 2 : i32
    %304 = tpu.dynamic_rotate %276 by %c2_i32_104 dim 1 : vector<1x256xf32>, i32 -> vector<1x256xf32>
    %cst_105 = arith.constant 0.000000e+00 : f32
    %305 = vector.broadcast %cst_105 : f32 to vector<1x256xf32>
    %306 = arith.select %303, %304, %305 : vector<1x256xi1>, vector<1x256xf32>
    %c15 = arith.constant 15 : index
    %307 = memref.load %arg2[%c15] : memref<98xf32, #tpu.memory_space<smem>>
    %308 = vector.broadcast %307 : f32 to vector<1x256xf32>
    %309 = arith.mulf %306, %308 : vector<1x256xf32>
    %310 = arith.addf %293, %309 : vector<1x256xf32>
    %c-1_i32_106 = arith.constant -1 : i32
    %311 = vector.broadcast %c-1_i32_106 : i32 to vector<1x256xi32>
    %312 = arith.addi %9, %311 : vector<1x256xi32>
    %c0_i32_107 = arith.constant 0 : i32
    %313 = vector.broadcast %c0_i32_107 : i32 to vector<1x256xi32>
    %314 = arith.cmpi sge, %312, %313 : vector<1x256xi32>
    %c-1_i32_108 = arith.constant -1 : i32
    %315 = vector.broadcast %c-1_i32_108 : i32 to vector<1x256xi32>
    %316 = arith.addi %9, %315 : vector<1x256xi32>
    %c16_i32_109 = arith.constant 16 : i32
    %317 = vector.broadcast %c16_i32_109 : i32 to vector<1x256xi32>
    %318 = arith.cmpi slt, %316, %317 : vector<1x256xi32>
    %319 = arith.andi %314, %318 : vector<1x256xi1>
    %320 = arith.andi %275, %319 : vector<1x256xi1>
    %c1_i32_110 = arith.constant 1 : i32
    %321 = tpu.dynamic_rotate %276 by %c1_i32_110 dim 1 : vector<1x256xf32>, i32 -> vector<1x256xf32>
    %cst_111 = arith.constant 0.000000e+00 : f32
    %322 = vector.broadcast %cst_111 : f32 to vector<1x256xf32>
    %323 = arith.select %320, %321, %322 : vector<1x256xi1>, vector<1x256xf32>
    %c16 = arith.constant 16 : index
    %324 = memref.load %arg2[%c16] : memref<98xf32, #tpu.memory_space<smem>>
    %325 = vector.broadcast %324 : f32 to vector<1x256xf32>
    %326 = arith.mulf %323, %325 : vector<1x256xf32>
    %327 = arith.addf %310, %326 : vector<1x256xf32>
    %c0_i32_112 = arith.constant 0 : i32
    %328 = vector.broadcast %c0_i32_112 : i32 to vector<1x256xi32>
    %329 = arith.addi %9, %328 : vector<1x256xi32>
    %c0_i32_113 = arith.constant 0 : i32
    %330 = vector.broadcast %c0_i32_113 : i32 to vector<1x256xi32>
    %331 = arith.cmpi sge, %329, %330 : vector<1x256xi32>
    %c0_i32_114 = arith.constant 0 : i32
    %332 = vector.broadcast %c0_i32_114 : i32 to vector<1x256xi32>
    %333 = arith.addi %9, %332 : vector<1x256xi32>
    %c16_i32_115 = arith.constant 16 : i32
    %334 = vector.broadcast %c16_i32_115 : i32 to vector<1x256xi32>
    %335 = arith.cmpi slt, %333, %334 : vector<1x256xi32>
    %336 = arith.andi %331, %335 : vector<1x256xi1>
    %337 = arith.andi %275, %336 : vector<1x256xi1>
    %cst_116 = arith.constant 0.000000e+00 : f32
    %338 = vector.broadcast %cst_116 : f32 to vector<1x256xf32>
    %339 = arith.select %337, %276, %338 : vector<1x256xi1>, vector<1x256xf32>
    %c17 = arith.constant 17 : index
    %340 = memref.load %arg2[%c17] : memref<98xf32, #tpu.memory_space<smem>>
    %341 = vector.broadcast %340 : f32 to vector<1x256xf32>
    %342 = arith.mulf %339, %341 : vector<1x256xf32>
    %343 = arith.addf %327, %342 : vector<1x256xf32>
    %c1_i32_117 = arith.constant 1 : i32
    %344 = vector.broadcast %c1_i32_117 : i32 to vector<1x256xi32>
    %345 = arith.addi %9, %344 : vector<1x256xi32>
    %c0_i32_118 = arith.constant 0 : i32
    %346 = vector.broadcast %c0_i32_118 : i32 to vector<1x256xi32>
    %347 = arith.cmpi sge, %345, %346 : vector<1x256xi32>
    %c1_i32_119 = arith.constant 1 : i32
    %348 = vector.broadcast %c1_i32_119 : i32 to vector<1x256xi32>
    %349 = arith.addi %9, %348 : vector<1x256xi32>
    %c16_i32_120 = arith.constant 16 : i32
    %350 = vector.broadcast %c16_i32_120 : i32 to vector<1x256xi32>
    %351 = arith.cmpi slt, %349, %350 : vector<1x256xi32>
    %352 = arith.andi %347, %351 : vector<1x256xi1>
    %353 = arith.andi %275, %352 : vector<1x256xi1>
    %c255_i32_121 = arith.constant 255 : i32
    %354 = tpu.dynamic_rotate %276 by %c255_i32_121 dim 1 : vector<1x256xf32>, i32 -> vector<1x256xf32>
    %cst_122 = arith.constant 0.000000e+00 : f32
    %355 = vector.broadcast %cst_122 : f32 to vector<1x256xf32>
    %356 = arith.select %353, %354, %355 : vector<1x256xi1>, vector<1x256xf32>
    %c18 = arith.constant 18 : index
    %357 = memref.load %arg2[%c18] : memref<98xf32, #tpu.memory_space<smem>>
    %358 = vector.broadcast %357 : f32 to vector<1x256xf32>
    %359 = arith.mulf %356, %358 : vector<1x256xf32>
    %360 = arith.addf %343, %359 : vector<1x256xf32>
    %c2_i32_123 = arith.constant 2 : i32
    %361 = vector.broadcast %c2_i32_123 : i32 to vector<1x256xi32>
    %362 = arith.addi %9, %361 : vector<1x256xi32>
    %c0_i32_124 = arith.constant 0 : i32
    %363 = vector.broadcast %c0_i32_124 : i32 to vector<1x256xi32>
    %364 = arith.cmpi sge, %362, %363 : vector<1x256xi32>
    %c2_i32_125 = arith.constant 2 : i32
    %365 = vector.broadcast %c2_i32_125 : i32 to vector<1x256xi32>
    %366 = arith.addi %9, %365 : vector<1x256xi32>
    %c16_i32_126 = arith.constant 16 : i32
    %367 = vector.broadcast %c16_i32_126 : i32 to vector<1x256xi32>
    %368 = arith.cmpi slt, %366, %367 : vector<1x256xi32>
    %369 = arith.andi %364, %368 : vector<1x256xi1>
    %370 = arith.andi %275, %369 : vector<1x256xi1>
    %c254_i32_127 = arith.constant 254 : i32
    %371 = tpu.dynamic_rotate %276 by %c254_i32_127 dim 1 : vector<1x256xf32>, i32 -> vector<1x256xf32>
    %cst_128 = arith.constant 0.000000e+00 : f32
    %372 = vector.broadcast %cst_128 : f32 to vector<1x256xf32>
    %373 = arith.select %370, %371, %372 : vector<1x256xi1>, vector<1x256xf32>
    %c19 = arith.constant 19 : index
    %374 = memref.load %arg2[%c19] : memref<98xf32, #tpu.memory_space<smem>>
    %375 = vector.broadcast %374 : f32 to vector<1x256xf32>
    %376 = arith.mulf %373, %375 : vector<1x256xf32>
    %377 = arith.addf %360, %376 : vector<1x256xf32>
    %c3_i32_129 = arith.constant 3 : i32
    %378 = vector.broadcast %c3_i32_129 : i32 to vector<1x256xi32>
    %379 = arith.addi %9, %378 : vector<1x256xi32>
    %c0_i32_130 = arith.constant 0 : i32
    %380 = vector.broadcast %c0_i32_130 : i32 to vector<1x256xi32>
    %381 = arith.cmpi sge, %379, %380 : vector<1x256xi32>
    %c3_i32_131 = arith.constant 3 : i32
    %382 = vector.broadcast %c3_i32_131 : i32 to vector<1x256xi32>
    %383 = arith.addi %9, %382 : vector<1x256xi32>
    %c16_i32_132 = arith.constant 16 : i32
    %384 = vector.broadcast %c16_i32_132 : i32 to vector<1x256xi32>
    %385 = arith.cmpi slt, %383, %384 : vector<1x256xi32>
    %386 = arith.andi %381, %385 : vector<1x256xi1>
    %387 = arith.andi %275, %386 : vector<1x256xi1>
    %c253_i32_133 = arith.constant 253 : i32
    %388 = tpu.dynamic_rotate %276 by %c253_i32_133 dim 1 : vector<1x256xf32>, i32 -> vector<1x256xf32>
    %cst_134 = arith.constant 0.000000e+00 : f32
    %389 = vector.broadcast %cst_134 : f32 to vector<1x256xf32>
    %390 = arith.select %387, %388, %389 : vector<1x256xi1>, vector<1x256xf32>
    %c20 = arith.constant 20 : index
    %391 = memref.load %arg2[%c20] : memref<98xf32, #tpu.memory_space<smem>>
    %392 = vector.broadcast %391 : f32 to vector<1x256xf32>
    %393 = arith.mulf %390, %392 : vector<1x256xf32>
    %394 = arith.addf %377, %393 : vector<1x256xf32>
    %c0_i32_135 = arith.constant 0 : i32
    %395 = vector.broadcast %c0_i32_135 : i32 to vector<1x256xi32>
    %396 = arith.addi %8, %395 : vector<1x256xi32>
    %c0_i32_136 = arith.constant 0 : i32
    %397 = vector.broadcast %c0_i32_136 : i32 to vector<1x256xi32>
    %398 = arith.cmpi sge, %396, %397 : vector<1x256xi32>
    %c0_i32_137 = arith.constant 0 : i32
    %399 = vector.broadcast %c0_i32_137 : i32 to vector<1x256xi32>
    %400 = arith.addi %8, %399 : vector<1x256xi32>
    %c16_i32_138 = arith.constant 16 : i32
    %401 = vector.broadcast %c16_i32_138 : i32 to vector<1x256xi32>
    %402 = arith.cmpi slt, %400, %401 : vector<1x256xi32>
    %403 = arith.andi %398, %402 : vector<1x256xi1>
    %c-3_i32_139 = arith.constant -3 : i32
    %404 = vector.broadcast %c-3_i32_139 : i32 to vector<1x256xi32>
    %405 = arith.addi %9, %404 : vector<1x256xi32>
    %c0_i32_140 = arith.constant 0 : i32
    %406 = vector.broadcast %c0_i32_140 : i32 to vector<1x256xi32>
    %407 = arith.cmpi sge, %405, %406 : vector<1x256xi32>
    %c-3_i32_141 = arith.constant -3 : i32
    %408 = vector.broadcast %c-3_i32_141 : i32 to vector<1x256xi32>
    %409 = arith.addi %9, %408 : vector<1x256xi32>
    %c16_i32_142 = arith.constant 16 : i32
    %410 = vector.broadcast %c16_i32_142 : i32 to vector<1x256xi32>
    %411 = arith.cmpi slt, %409, %410 : vector<1x256xi32>
    %412 = arith.andi %407, %411 : vector<1x256xi1>
    %413 = arith.andi %403, %412 : vector<1x256xi1>
    %c3_i32_143 = arith.constant 3 : i32
    %414 = tpu.dynamic_rotate %7 by %c3_i32_143 dim 1 : vector<1x256xf32>, i32 -> vector<1x256xf32>
    %cst_144 = arith.constant 0.000000e+00 : f32
    %415 = vector.broadcast %cst_144 : f32 to vector<1x256xf32>
    %416 = arith.select %413, %414, %415 : vector<1x256xi1>, vector<1x256xf32>
    %c21 = arith.constant 21 : index
    %417 = memref.load %arg2[%c21] : memref<98xf32, #tpu.memory_space<smem>>
    %418 = vector.broadcast %417 : f32 to vector<1x256xf32>
    %419 = arith.mulf %416, %418 : vector<1x256xf32>
    %420 = arith.addf %394, %419 : vector<1x256xf32>
    %c-2_i32_145 = arith.constant -2 : i32
    %421 = vector.broadcast %c-2_i32_145 : i32 to vector<1x256xi32>
    %422 = arith.addi %9, %421 : vector<1x256xi32>
    %c0_i32_146 = arith.constant 0 : i32
    %423 = vector.broadcast %c0_i32_146 : i32 to vector<1x256xi32>
    %424 = arith.cmpi sge, %422, %423 : vector<1x256xi32>
    %c-2_i32_147 = arith.constant -2 : i32
    %425 = vector.broadcast %c-2_i32_147 : i32 to vector<1x256xi32>
    %426 = arith.addi %9, %425 : vector<1x256xi32>
    %c16_i32_148 = arith.constant 16 : i32
    %427 = vector.broadcast %c16_i32_148 : i32 to vector<1x256xi32>
    %428 = arith.cmpi slt, %426, %427 : vector<1x256xi32>
    %429 = arith.andi %424, %428 : vector<1x256xi1>
    %430 = arith.andi %403, %429 : vector<1x256xi1>
    %c2_i32_149 = arith.constant 2 : i32
    %431 = tpu.dynamic_rotate %7 by %c2_i32_149 dim 1 : vector<1x256xf32>, i32 -> vector<1x256xf32>
    %cst_150 = arith.constant 0.000000e+00 : f32
    %432 = vector.broadcast %cst_150 : f32 to vector<1x256xf32>
    %433 = arith.select %430, %431, %432 : vector<1x256xi1>, vector<1x256xf32>
    %c22 = arith.constant 22 : index
    %434 = memref.load %arg2[%c22] : memref<98xf32, #tpu.memory_space<smem>>
    %435 = vector.broadcast %434 : f32 to vector<1x256xf32>
    %436 = arith.mulf %433, %435 : vector<1x256xf32>
    %437 = arith.addf %420, %436 : vector<1x256xf32>
    %c-1_i32_151 = arith.constant -1 : i32
    %438 = vector.broadcast %c-1_i32_151 : i32 to vector<1x256xi32>
    %439 = arith.addi %9, %438 : vector<1x256xi32>
    %c0_i32_152 = arith.constant 0 : i32
    %440 = vector.broadcast %c0_i32_152 : i32 to vector<1x256xi32>
    %441 = arith.cmpi sge, %439, %440 : vector<1x256xi32>
    %c-1_i32_153 = arith.constant -1 : i32
    %442 = vector.broadcast %c-1_i32_153 : i32 to vector<1x256xi32>
    %443 = arith.addi %9, %442 : vector<1x256xi32>
    %c16_i32_154 = arith.constant 16 : i32
    %444 = vector.broadcast %c16_i32_154 : i32 to vector<1x256xi32>
    %445 = arith.cmpi slt, %443, %444 : vector<1x256xi32>
    %446 = arith.andi %441, %445 : vector<1x256xi1>
    %447 = arith.andi %403, %446 : vector<1x256xi1>
    %c1_i32_155 = arith.constant 1 : i32
    %448 = tpu.dynamic_rotate %7 by %c1_i32_155 dim 1 : vector<1x256xf32>, i32 -> vector<1x256xf32>
    %cst_156 = arith.constant 0.000000e+00 : f32
    %449 = vector.broadcast %cst_156 : f32 to vector<1x256xf32>
    %450 = arith.select %447, %448, %449 : vector<1x256xi1>, vector<1x256xf32>
    %c23 = arith.constant 23 : index
    %451 = memref.load %arg2[%c23] : memref<98xf32, #tpu.memory_space<smem>>
    %452 = vector.broadcast %451 : f32 to vector<1x256xf32>
    %453 = arith.mulf %450, %452 : vector<1x256xf32>
    %454 = arith.addf %437, %453 : vector<1x256xf32>
    %c0_i32_157 = arith.constant 0 : i32
    %455 = vector.broadcast %c0_i32_157 : i32 to vector<1x256xi32>
    %456 = arith.addi %9, %455 : vector<1x256xi32>
    %c0_i32_158 = arith.constant 0 : i32
    %457 = vector.broadcast %c0_i32_158 : i32 to vector<1x256xi32>
    %458 = arith.cmpi sge, %456, %457 : vector<1x256xi32>
    %c0_i32_159 = arith.constant 0 : i32
    %459 = vector.broadcast %c0_i32_159 : i32 to vector<1x256xi32>
    %460 = arith.addi %9, %459 : vector<1x256xi32>
    %c16_i32_160 = arith.constant 16 : i32
    %461 = vector.broadcast %c16_i32_160 : i32 to vector<1x256xi32>
    %462 = arith.cmpi slt, %460, %461 : vector<1x256xi32>
    %463 = arith.andi %458, %462 : vector<1x256xi1>
    %464 = arith.andi %403, %463 : vector<1x256xi1>
    %cst_161 = arith.constant 0.000000e+00 : f32
    %465 = vector.broadcast %cst_161 : f32 to vector<1x256xf32>
    %466 = arith.select %464, %7, %465 : vector<1x256xi1>, vector<1x256xf32>
    %c24 = arith.constant 24 : index
    %467 = memref.load %arg2[%c24] : memref<98xf32, #tpu.memory_space<smem>>
    %468 = vector.broadcast %467 : f32 to vector<1x256xf32>
    %469 = arith.mulf %466, %468 : vector<1x256xf32>
    %470 = arith.addf %454, %469 : vector<1x256xf32>
    %c1_i32_162 = arith.constant 1 : i32
    %471 = vector.broadcast %c1_i32_162 : i32 to vector<1x256xi32>
    %472 = arith.addi %9, %471 : vector<1x256xi32>
    %c0_i32_163 = arith.constant 0 : i32
    %473 = vector.broadcast %c0_i32_163 : i32 to vector<1x256xi32>
    %474 = arith.cmpi sge, %472, %473 : vector<1x256xi32>
    %c1_i32_164 = arith.constant 1 : i32
    %475 = vector.broadcast %c1_i32_164 : i32 to vector<1x256xi32>
    %476 = arith.addi %9, %475 : vector<1x256xi32>
    %c16_i32_165 = arith.constant 16 : i32
    %477 = vector.broadcast %c16_i32_165 : i32 to vector<1x256xi32>
    %478 = arith.cmpi slt, %476, %477 : vector<1x256xi32>
    %479 = arith.andi %474, %478 : vector<1x256xi1>
    %480 = arith.andi %403, %479 : vector<1x256xi1>
    %c255_i32_166 = arith.constant 255 : i32
    %481 = tpu.dynamic_rotate %7 by %c255_i32_166 dim 1 : vector<1x256xf32>, i32 -> vector<1x256xf32>
    %cst_167 = arith.constant 0.000000e+00 : f32
    %482 = vector.broadcast %cst_167 : f32 to vector<1x256xf32>
    %483 = arith.select %480, %481, %482 : vector<1x256xi1>, vector<1x256xf32>
    %c25 = arith.constant 25 : index
    %484 = memref.load %arg2[%c25] : memref<98xf32, #tpu.memory_space<smem>>
    %485 = vector.broadcast %484 : f32 to vector<1x256xf32>
    %486 = arith.mulf %483, %485 : vector<1x256xf32>
    %487 = arith.addf %470, %486 : vector<1x256xf32>
    %c2_i32_168 = arith.constant 2 : i32
    %488 = vector.broadcast %c2_i32_168 : i32 to vector<1x256xi32>
    %489 = arith.addi %9, %488 : vector<1x256xi32>
    %c0_i32_169 = arith.constant 0 : i32
    %490 = vector.broadcast %c0_i32_169 : i32 to vector<1x256xi32>
    %491 = arith.cmpi sge, %489, %490 : vector<1x256xi32>
    %c2_i32_170 = arith.constant 2 : i32
    %492 = vector.broadcast %c2_i32_170 : i32 to vector<1x256xi32>
    %493 = arith.addi %9, %492 : vector<1x256xi32>
    %c16_i32_171 = arith.constant 16 : i32
    %494 = vector.broadcast %c16_i32_171 : i32 to vector<1x256xi32>
    %495 = arith.cmpi slt, %493, %494 : vector<1x256xi32>
    %496 = arith.andi %491, %495 : vector<1x256xi1>
    %497 = arith.andi %403, %496 : vector<1x256xi1>
    %c254_i32_172 = arith.constant 254 : i32
    %498 = tpu.dynamic_rotate %7 by %c254_i32_172 dim 1 : vector<1x256xf32>, i32 -> vector<1x256xf32>
    %cst_173 = arith.constant 0.000000e+00 : f32
    %499 = vector.broadcast %cst_173 : f32 to vector<1x256xf32>
    %500 = arith.select %497, %498, %499 : vector<1x256xi1>, vector<1x256xf32>
    %c26 = arith.constant 26 : index
    %501 = memref.load %arg2[%c26] : memref<98xf32, #tpu.memory_space<smem>>
    %502 = vector.broadcast %501 : f32 to vector<1x256xf32>
    %503 = arith.mulf %500, %502 : vector<1x256xf32>
    %504 = arith.addf %487, %503 : vector<1x256xf32>
    %c3_i32_174 = arith.constant 3 : i32
    %505 = vector.broadcast %c3_i32_174 : i32 to vector<1x256xi32>
    %506 = arith.addi %9, %505 : vector<1x256xi32>
    %c0_i32_175 = arith.constant 0 : i32
    %507 = vector.broadcast %c0_i32_175 : i32 to vector<1x256xi32>
    %508 = arith.cmpi sge, %506, %507 : vector<1x256xi32>
    %c3_i32_176 = arith.constant 3 : i32
    %509 = vector.broadcast %c3_i32_176 : i32 to vector<1x256xi32>
    %510 = arith.addi %9, %509 : vector<1x256xi32>
    %c16_i32_177 = arith.constant 16 : i32
    %511 = vector.broadcast %c16_i32_177 : i32 to vector<1x256xi32>
    %512 = arith.cmpi slt, %510, %511 : vector<1x256xi32>
    %513 = arith.andi %508, %512 : vector<1x256xi1>
    %514 = arith.andi %403, %513 : vector<1x256xi1>
    %c253_i32_178 = arith.constant 253 : i32
    %515 = tpu.dynamic_rotate %7 by %c253_i32_178 dim 1 : vector<1x256xf32>, i32 -> vector<1x256xf32>
    %cst_179 = arith.constant 0.000000e+00 : f32
    %516 = vector.broadcast %cst_179 : f32 to vector<1x256xf32>
    %517 = arith.select %514, %515, %516 : vector<1x256xi1>, vector<1x256xf32>
    %c27 = arith.constant 27 : index
    %518 = memref.load %arg2[%c27] : memref<98xf32, #tpu.memory_space<smem>>
    %519 = vector.broadcast %518 : f32 to vector<1x256xf32>
    %520 = arith.mulf %517, %519 : vector<1x256xf32>
    %521 = arith.addf %504, %520 : vector<1x256xf32>
    %c1_i32_180 = arith.constant 1 : i32
    %522 = vector.broadcast %c1_i32_180 : i32 to vector<1x256xi32>
    %523 = arith.addi %8, %522 : vector<1x256xi32>
    %c0_i32_181 = arith.constant 0 : i32
    %524 = vector.broadcast %c0_i32_181 : i32 to vector<1x256xi32>
    %525 = arith.cmpi sge, %523, %524 : vector<1x256xi32>
    %c1_i32_182 = arith.constant 1 : i32
    %526 = vector.broadcast %c1_i32_182 : i32 to vector<1x256xi32>
    %527 = arith.addi %8, %526 : vector<1x256xi32>
    %c16_i32_183 = arith.constant 16 : i32
    %528 = vector.broadcast %c16_i32_183 : i32 to vector<1x256xi32>
    %529 = arith.cmpi slt, %527, %528 : vector<1x256xi32>
    %530 = arith.andi %525, %529 : vector<1x256xi1>
    %c240_i32 = arith.constant 240 : i32
    %531 = tpu.dynamic_rotate %7 by %c240_i32 dim 1 : vector<1x256xf32>, i32 -> vector<1x256xf32>
    %c-3_i32_184 = arith.constant -3 : i32
    %532 = vector.broadcast %c-3_i32_184 : i32 to vector<1x256xi32>
    %533 = arith.addi %9, %532 : vector<1x256xi32>
    %c0_i32_185 = arith.constant 0 : i32
    %534 = vector.broadcast %c0_i32_185 : i32 to vector<1x256xi32>
    %535 = arith.cmpi sge, %533, %534 : vector<1x256xi32>
    %c-3_i32_186 = arith.constant -3 : i32
    %536 = vector.broadcast %c-3_i32_186 : i32 to vector<1x256xi32>
    %537 = arith.addi %9, %536 : vector<1x256xi32>
    %c16_i32_187 = arith.constant 16 : i32
    %538 = vector.broadcast %c16_i32_187 : i32 to vector<1x256xi32>
    %539 = arith.cmpi slt, %537, %538 : vector<1x256xi32>
    %540 = arith.andi %535, %539 : vector<1x256xi1>
    %541 = arith.andi %530, %540 : vector<1x256xi1>
    %c3_i32_188 = arith.constant 3 : i32
    %542 = tpu.dynamic_rotate %531 by %c3_i32_188 dim 1 : vector<1x256xf32>, i32 -> vector<1x256xf32>
    %cst_189 = arith.constant 0.000000e+00 : f32
    %543 = vector.broadcast %cst_189 : f32 to vector<1x256xf32>
    %544 = arith.select %541, %542, %543 : vector<1x256xi1>, vector<1x256xf32>
    %c28 = arith.constant 28 : index
    %545 = memref.load %arg2[%c28] : memref<98xf32, #tpu.memory_space<smem>>
    %546 = vector.broadcast %545 : f32 to vector<1x256xf32>
    %547 = arith.mulf %544, %546 : vector<1x256xf32>
    %548 = arith.addf %521, %547 : vector<1x256xf32>
    %c-2_i32_190 = arith.constant -2 : i32
    %549 = vector.broadcast %c-2_i32_190 : i32 to vector<1x256xi32>
    %550 = arith.addi %9, %549 : vector<1x256xi32>
    %c0_i32_191 = arith.constant 0 : i32
    %551 = vector.broadcast %c0_i32_191 : i32 to vector<1x256xi32>
    %552 = arith.cmpi sge, %550, %551 : vector<1x256xi32>
    %c-2_i32_192 = arith.constant -2 : i32
    %553 = vector.broadcast %c-2_i32_192 : i32 to vector<1x256xi32>
    %554 = arith.addi %9, %553 : vector<1x256xi32>
    %c16_i32_193 = arith.constant 16 : i32
    %555 = vector.broadcast %c16_i32_193 : i32 to vector<1x256xi32>
    %556 = arith.cmpi slt, %554, %555 : vector<1x256xi32>
    %557 = arith.andi %552, %556 : vector<1x256xi1>
    %558 = arith.andi %530, %557 : vector<1x256xi1>
    %c2_i32_194 = arith.constant 2 : i32
    %559 = tpu.dynamic_rotate %531 by %c2_i32_194 dim 1 : vector<1x256xf32>, i32 -> vector<1x256xf32>
    %cst_195 = arith.constant 0.000000e+00 : f32
    %560 = vector.broadcast %cst_195 : f32 to vector<1x256xf32>
    %561 = arith.select %558, %559, %560 : vector<1x256xi1>, vector<1x256xf32>
    %c29 = arith.constant 29 : index
    %562 = memref.load %arg2[%c29] : memref<98xf32, #tpu.memory_space<smem>>
    %563 = vector.broadcast %562 : f32 to vector<1x256xf32>
    %564 = arith.mulf %561, %563 : vector<1x256xf32>
    %565 = arith.addf %548, %564 : vector<1x256xf32>
    %c-1_i32_196 = arith.constant -1 : i32
    %566 = vector.broadcast %c-1_i32_196 : i32 to vector<1x256xi32>
    %567 = arith.addi %9, %566 : vector<1x256xi32>
    %c0_i32_197 = arith.constant 0 : i32
    %568 = vector.broadcast %c0_i32_197 : i32 to vector<1x256xi32>
    %569 = arith.cmpi sge, %567, %568 : vector<1x256xi32>
    %c-1_i32_198 = arith.constant -1 : i32
    %570 = vector.broadcast %c-1_i32_198 : i32 to vector<1x256xi32>
    %571 = arith.addi %9, %570 : vector<1x256xi32>
    %c16_i32_199 = arith.constant 16 : i32
    %572 = vector.broadcast %c16_i32_199 : i32 to vector<1x256xi32>
    %573 = arith.cmpi slt, %571, %572 : vector<1x256xi32>
    %574 = arith.andi %569, %573 : vector<1x256xi1>
    %575 = arith.andi %530, %574 : vector<1x256xi1>
    %c1_i32_200 = arith.constant 1 : i32
    %576 = tpu.dynamic_rotate %531 by %c1_i32_200 dim 1 : vector<1x256xf32>, i32 -> vector<1x256xf32>
    %cst_201 = arith.constant 0.000000e+00 : f32
    %577 = vector.broadcast %cst_201 : f32 to vector<1x256xf32>
    %578 = arith.select %575, %576, %577 : vector<1x256xi1>, vector<1x256xf32>
    %c30 = arith.constant 30 : index
    %579 = memref.load %arg2[%c30] : memref<98xf32, #tpu.memory_space<smem>>
    %580 = vector.broadcast %579 : f32 to vector<1x256xf32>
    %581 = arith.mulf %578, %580 : vector<1x256xf32>
    %582 = arith.addf %565, %581 : vector<1x256xf32>
    %c0_i32_202 = arith.constant 0 : i32
    %583 = vector.broadcast %c0_i32_202 : i32 to vector<1x256xi32>
    %584 = arith.addi %9, %583 : vector<1x256xi32>
    %c0_i32_203 = arith.constant 0 : i32
    %585 = vector.broadcast %c0_i32_203 : i32 to vector<1x256xi32>
    %586 = arith.cmpi sge, %584, %585 : vector<1x256xi32>
    %c0_i32_204 = arith.constant 0 : i32
    %587 = vector.broadcast %c0_i32_204 : i32 to vector<1x256xi32>
    %588 = arith.addi %9, %587 : vector<1x256xi32>
    %c16_i32_205 = arith.constant 16 : i32
    %589 = vector.broadcast %c16_i32_205 : i32 to vector<1x256xi32>
    %590 = arith.cmpi slt, %588, %589 : vector<1x256xi32>
    %591 = arith.andi %586, %590 : vector<1x256xi1>
    %592 = arith.andi %530, %591 : vector<1x256xi1>
    %cst_206 = arith.constant 0.000000e+00 : f32
    %593 = vector.broadcast %cst_206 : f32 to vector<1x256xf32>
    %594 = arith.select %592, %531, %593 : vector<1x256xi1>, vector<1x256xf32>
    %c31 = arith.constant 31 : index
    %595 = memref.load %arg2[%c31] : memref<98xf32, #tpu.memory_space<smem>>
    %596 = vector.broadcast %595 : f32 to vector<1x256xf32>
    %597 = arith.mulf %594, %596 : vector<1x256xf32>
    %598 = arith.addf %582, %597 : vector<1x256xf32>
    %c1_i32_207 = arith.constant 1 : i32
    %599 = vector.broadcast %c1_i32_207 : i32 to vector<1x256xi32>
    %600 = arith.addi %9, %599 : vector<1x256xi32>
    %c0_i32_208 = arith.constant 0 : i32
    %601 = vector.broadcast %c0_i32_208 : i32 to vector<1x256xi32>
    %602 = arith.cmpi sge, %600, %601 : vector<1x256xi32>
    %c1_i32_209 = arith.constant 1 : i32
    %603 = vector.broadcast %c1_i32_209 : i32 to vector<1x256xi32>
    %604 = arith.addi %9, %603 : vector<1x256xi32>
    %c16_i32_210 = arith.constant 16 : i32
    %605 = vector.broadcast %c16_i32_210 : i32 to vector<1x256xi32>
    %606 = arith.cmpi slt, %604, %605 : vector<1x256xi32>
    %607 = arith.andi %602, %606 : vector<1x256xi1>
    %608 = arith.andi %530, %607 : vector<1x256xi1>
    %c255_i32_211 = arith.constant 255 : i32
    %609 = tpu.dynamic_rotate %531 by %c255_i32_211 dim 1 : vector<1x256xf32>, i32 -> vector<1x256xf32>
    %cst_212 = arith.constant 0.000000e+00 : f32
    %610 = vector.broadcast %cst_212 : f32 to vector<1x256xf32>
    %611 = arith.select %608, %609, %610 : vector<1x256xi1>, vector<1x256xf32>
    %c32 = arith.constant 32 : index
    %612 = memref.load %arg2[%c32] : memref<98xf32, #tpu.memory_space<smem>>
    %613 = vector.broadcast %612 : f32 to vector<1x256xf32>
    %614 = arith.mulf %611, %613 : vector<1x256xf32>
    %615 = arith.addf %598, %614 : vector<1x256xf32>
    %c2_i32_213 = arith.constant 2 : i32
    %616 = vector.broadcast %c2_i32_213 : i32 to vector<1x256xi32>
    %617 = arith.addi %9, %616 : vector<1x256xi32>
    %c0_i32_214 = arith.constant 0 : i32
    %618 = vector.broadcast %c0_i32_214 : i32 to vector<1x256xi32>
    %619 = arith.cmpi sge, %617, %618 : vector<1x256xi32>
    %c2_i32_215 = arith.constant 2 : i32
    %620 = vector.broadcast %c2_i32_215 : i32 to vector<1x256xi32>
    %621 = arith.addi %9, %620 : vector<1x256xi32>
    %c16_i32_216 = arith.constant 16 : i32
    %622 = vector.broadcast %c16_i32_216 : i32 to vector<1x256xi32>
    %623 = arith.cmpi slt, %621, %622 : vector<1x256xi32>
    %624 = arith.andi %619, %623 : vector<1x256xi1>
    %625 = arith.andi %530, %624 : vector<1x256xi1>
    %c254_i32_217 = arith.constant 254 : i32
    %626 = tpu.dynamic_rotate %531 by %c254_i32_217 dim 1 : vector<1x256xf32>, i32 -> vector<1x256xf32>
    %cst_218 = arith.constant 0.000000e+00 : f32
    %627 = vector.broadcast %cst_218 : f32 to vector<1x256xf32>
    %628 = arith.select %625, %626, %627 : vector<1x256xi1>, vector<1x256xf32>
    %c33 = arith.constant 33 : index
    %629 = memref.load %arg2[%c33] : memref<98xf32, #tpu.memory_space<smem>>
    %630 = vector.broadcast %629 : f32 to vector<1x256xf32>
    %631 = arith.mulf %628, %630 : vector<1x256xf32>
    %632 = arith.addf %615, %631 : vector<1x256xf32>
    %c3_i32_219 = arith.constant 3 : i32
    %633 = vector.broadcast %c3_i32_219 : i32 to vector<1x256xi32>
    %634 = arith.addi %9, %633 : vector<1x256xi32>
    %c0_i32_220 = arith.constant 0 : i32
    %635 = vector.broadcast %c0_i32_220 : i32 to vector<1x256xi32>
    %636 = arith.cmpi sge, %634, %635 : vector<1x256xi32>
    %c3_i32_221 = arith.constant 3 : i32
    %637 = vector.broadcast %c3_i32_221 : i32 to vector<1x256xi32>
    %638 = arith.addi %9, %637 : vector<1x256xi32>
    %c16_i32_222 = arith.constant 16 : i32
    %639 = vector.broadcast %c16_i32_222 : i32 to vector<1x256xi32>
    %640 = arith.cmpi slt, %638, %639 : vector<1x256xi32>
    %641 = arith.andi %636, %640 : vector<1x256xi1>
    %642 = arith.andi %530, %641 : vector<1x256xi1>
    %c253_i32_223 = arith.constant 253 : i32
    %643 = tpu.dynamic_rotate %531 by %c253_i32_223 dim 1 : vector<1x256xf32>, i32 -> vector<1x256xf32>
    %cst_224 = arith.constant 0.000000e+00 : f32
    %644 = vector.broadcast %cst_224 : f32 to vector<1x256xf32>
    %645 = arith.select %642, %643, %644 : vector<1x256xi1>, vector<1x256xf32>
    %c34 = arith.constant 34 : index
    %646 = memref.load %arg2[%c34] : memref<98xf32, #tpu.memory_space<smem>>
    %647 = vector.broadcast %646 : f32 to vector<1x256xf32>
    %648 = arith.mulf %645, %647 : vector<1x256xf32>
    %649 = arith.addf %632, %648 : vector<1x256xf32>
    %c2_i32_225 = arith.constant 2 : i32
    %650 = vector.broadcast %c2_i32_225 : i32 to vector<1x256xi32>
    %651 = arith.addi %8, %650 : vector<1x256xi32>
    %c0_i32_226 = arith.constant 0 : i32
    %652 = vector.broadcast %c0_i32_226 : i32 to vector<1x256xi32>
    %653 = arith.cmpi sge, %651, %652 : vector<1x256xi32>
    %c2_i32_227 = arith.constant 2 : i32
    %654 = vector.broadcast %c2_i32_227 : i32 to vector<1x256xi32>
    %655 = arith.addi %8, %654 : vector<1x256xi32>
    %c16_i32_228 = arith.constant 16 : i32
    %656 = vector.broadcast %c16_i32_228 : i32 to vector<1x256xi32>
    %657 = arith.cmpi slt, %655, %656 : vector<1x256xi32>
    %658 = arith.andi %653, %657 : vector<1x256xi1>
    %c224_i32 = arith.constant 224 : i32
    %659 = tpu.dynamic_rotate %7 by %c224_i32 dim 1 : vector<1x256xf32>, i32 -> vector<1x256xf32>
    %c-3_i32_229 = arith.constant -3 : i32
    %660 = vector.broadcast %c-3_i32_229 : i32 to vector<1x256xi32>
    %661 = arith.addi %9, %660 : vector<1x256xi32>
    %c0_i32_230 = arith.constant 0 : i32
    %662 = vector.broadcast %c0_i32_230 : i32 to vector<1x256xi32>
    %663 = arith.cmpi sge, %661, %662 : vector<1x256xi32>
    %c-3_i32_231 = arith.constant -3 : i32
    %664 = vector.broadcast %c-3_i32_231 : i32 to vector<1x256xi32>
    %665 = arith.addi %9, %664 : vector<1x256xi32>
    %c16_i32_232 = arith.constant 16 : i32
    %666 = vector.broadcast %c16_i32_232 : i32 to vector<1x256xi32>
    %667 = arith.cmpi slt, %665, %666 : vector<1x256xi32>
    %668 = arith.andi %663, %667 : vector<1x256xi1>
    %669 = arith.andi %658, %668 : vector<1x256xi1>
    %c3_i32_233 = arith.constant 3 : i32
    %670 = tpu.dynamic_rotate %659 by %c3_i32_233 dim 1 : vector<1x256xf32>, i32 -> vector<1x256xf32>
    %cst_234 = arith.constant 0.000000e+00 : f32
    %671 = vector.broadcast %cst_234 : f32 to vector<1x256xf32>
    %672 = arith.select %669, %670, %671 : vector<1x256xi1>, vector<1x256xf32>
    %c35 = arith.constant 35 : index
    %673 = memref.load %arg2[%c35] : memref<98xf32, #tpu.memory_space<smem>>
    %674 = vector.broadcast %673 : f32 to vector<1x256xf32>
    %675 = arith.mulf %672, %674 : vector<1x256xf32>
    %676 = arith.addf %649, %675 : vector<1x256xf32>
    %c-2_i32_235 = arith.constant -2 : i32
    %677 = vector.broadcast %c-2_i32_235 : i32 to vector<1x256xi32>
    %678 = arith.addi %9, %677 : vector<1x256xi32>
    %c0_i32_236 = arith.constant 0 : i32
    %679 = vector.broadcast %c0_i32_236 : i32 to vector<1x256xi32>
    %680 = arith.cmpi sge, %678, %679 : vector<1x256xi32>
    %c-2_i32_237 = arith.constant -2 : i32
    %681 = vector.broadcast %c-2_i32_237 : i32 to vector<1x256xi32>
    %682 = arith.addi %9, %681 : vector<1x256xi32>
    %c16_i32_238 = arith.constant 16 : i32
    %683 = vector.broadcast %c16_i32_238 : i32 to vector<1x256xi32>
    %684 = arith.cmpi slt, %682, %683 : vector<1x256xi32>
    %685 = arith.andi %680, %684 : vector<1x256xi1>
    %686 = arith.andi %658, %685 : vector<1x256xi1>
    %c2_i32_239 = arith.constant 2 : i32
    %687 = tpu.dynamic_rotate %659 by %c2_i32_239 dim 1 : vector<1x256xf32>, i32 -> vector<1x256xf32>
    %cst_240 = arith.constant 0.000000e+00 : f32
    %688 = vector.broadcast %cst_240 : f32 to vector<1x256xf32>
    %689 = arith.select %686, %687, %688 : vector<1x256xi1>, vector<1x256xf32>
    %c36 = arith.constant 36 : index
    %690 = memref.load %arg2[%c36] : memref<98xf32, #tpu.memory_space<smem>>
    %691 = vector.broadcast %690 : f32 to vector<1x256xf32>
    %692 = arith.mulf %689, %691 : vector<1x256xf32>
    %693 = arith.addf %676, %692 : vector<1x256xf32>
    %c-1_i32_241 = arith.constant -1 : i32
    %694 = vector.broadcast %c-1_i32_241 : i32 to vector<1x256xi32>
    %695 = arith.addi %9, %694 : vector<1x256xi32>
    %c0_i32_242 = arith.constant 0 : i32
    %696 = vector.broadcast %c0_i32_242 : i32 to vector<1x256xi32>
    %697 = arith.cmpi sge, %695, %696 : vector<1x256xi32>
    %c-1_i32_243 = arith.constant -1 : i32
    %698 = vector.broadcast %c-1_i32_243 : i32 to vector<1x256xi32>
    %699 = arith.addi %9, %698 : vector<1x256xi32>
    %c16_i32_244 = arith.constant 16 : i32
    %700 = vector.broadcast %c16_i32_244 : i32 to vector<1x256xi32>
    %701 = arith.cmpi slt, %699, %700 : vector<1x256xi32>
    %702 = arith.andi %697, %701 : vector<1x256xi1>
    %703 = arith.andi %658, %702 : vector<1x256xi1>
    %c1_i32_245 = arith.constant 1 : i32
    %704 = tpu.dynamic_rotate %659 by %c1_i32_245 dim 1 : vector<1x256xf32>, i32 -> vector<1x256xf32>
    %cst_246 = arith.constant 0.000000e+00 : f32
    %705 = vector.broadcast %cst_246 : f32 to vector<1x256xf32>
    %706 = arith.select %703, %704, %705 : vector<1x256xi1>, vector<1x256xf32>
    %c37 = arith.constant 37 : index
    %707 = memref.load %arg2[%c37] : memref<98xf32, #tpu.memory_space<smem>>
    %708 = vector.broadcast %707 : f32 to vector<1x256xf32>
    %709 = arith.mulf %706, %708 : vector<1x256xf32>
    %710 = arith.addf %693, %709 : vector<1x256xf32>
    %c0_i32_247 = arith.constant 0 : i32
    %711 = vector.broadcast %c0_i32_247 : i32 to vector<1x256xi32>
    %712 = arith.addi %9, %711 : vector<1x256xi32>
    %c0_i32_248 = arith.constant 0 : i32
    %713 = vector.broadcast %c0_i32_248 : i32 to vector<1x256xi32>
    %714 = arith.cmpi sge, %712, %713 : vector<1x256xi32>
    %c0_i32_249 = arith.constant 0 : i32
    %715 = vector.broadcast %c0_i32_249 : i32 to vector<1x256xi32>
    %716 = arith.addi %9, %715 : vector<1x256xi32>
    %c16_i32_250 = arith.constant 16 : i32
    %717 = vector.broadcast %c16_i32_250 : i32 to vector<1x256xi32>
    %718 = arith.cmpi slt, %716, %717 : vector<1x256xi32>
    %719 = arith.andi %714, %718 : vector<1x256xi1>
    %720 = arith.andi %658, %719 : vector<1x256xi1>
    %cst_251 = arith.constant 0.000000e+00 : f32
    %721 = vector.broadcast %cst_251 : f32 to vector<1x256xf32>
    %722 = arith.select %720, %659, %721 : vector<1x256xi1>, vector<1x256xf32>
    %c38 = arith.constant 38 : index
    %723 = memref.load %arg2[%c38] : memref<98xf32, #tpu.memory_space<smem>>
    %724 = vector.broadcast %723 : f32 to vector<1x256xf32>
    %725 = arith.mulf %722, %724 : vector<1x256xf32>
    %726 = arith.addf %710, %725 : vector<1x256xf32>
    %c1_i32_252 = arith.constant 1 : i32
    %727 = vector.broadcast %c1_i32_252 : i32 to vector<1x256xi32>
    %728 = arith.addi %9, %727 : vector<1x256xi32>
    %c0_i32_253 = arith.constant 0 : i32
    %729 = vector.broadcast %c0_i32_253 : i32 to vector<1x256xi32>
    %730 = arith.cmpi sge, %728, %729 : vector<1x256xi32>
    %c1_i32_254 = arith.constant 1 : i32
    %731 = vector.broadcast %c1_i32_254 : i32 to vector<1x256xi32>
    %732 = arith.addi %9, %731 : vector<1x256xi32>
    %c16_i32_255 = arith.constant 16 : i32
    %733 = vector.broadcast %c16_i32_255 : i32 to vector<1x256xi32>
    %734 = arith.cmpi slt, %732, %733 : vector<1x256xi32>
    %735 = arith.andi %730, %734 : vector<1x256xi1>
    %736 = arith.andi %658, %735 : vector<1x256xi1>
    %c255_i32_256 = arith.constant 255 : i32
    %737 = tpu.dynamic_rotate %659 by %c255_i32_256 dim 1 : vector<1x256xf32>, i32 -> vector<1x256xf32>
    %cst_257 = arith.constant 0.000000e+00 : f32
    %738 = vector.broadcast %cst_257 : f32 to vector<1x256xf32>
    %739 = arith.select %736, %737, %738 : vector<1x256xi1>, vector<1x256xf32>
    %c39 = arith.constant 39 : index
    %740 = memref.load %arg2[%c39] : memref<98xf32, #tpu.memory_space<smem>>
    %741 = vector.broadcast %740 : f32 to vector<1x256xf32>
    %742 = arith.mulf %739, %741 : vector<1x256xf32>
    %743 = arith.addf %726, %742 : vector<1x256xf32>
    %c2_i32_258 = arith.constant 2 : i32
    %744 = vector.broadcast %c2_i32_258 : i32 to vector<1x256xi32>
    %745 = arith.addi %9, %744 : vector<1x256xi32>
    %c0_i32_259 = arith.constant 0 : i32
    %746 = vector.broadcast %c0_i32_259 : i32 to vector<1x256xi32>
    %747 = arith.cmpi sge, %745, %746 : vector<1x256xi32>
    %c2_i32_260 = arith.constant 2 : i32
    %748 = vector.broadcast %c2_i32_260 : i32 to vector<1x256xi32>
    %749 = arith.addi %9, %748 : vector<1x256xi32>
    %c16_i32_261 = arith.constant 16 : i32
    %750 = vector.broadcast %c16_i32_261 : i32 to vector<1x256xi32>
    %751 = arith.cmpi slt, %749, %750 : vector<1x256xi32>
    %752 = arith.andi %747, %751 : vector<1x256xi1>
    %753 = arith.andi %658, %752 : vector<1x256xi1>
    %c254_i32_262 = arith.constant 254 : i32
    %754 = tpu.dynamic_rotate %659 by %c254_i32_262 dim 1 : vector<1x256xf32>, i32 -> vector<1x256xf32>
    %cst_263 = arith.constant 0.000000e+00 : f32
    %755 = vector.broadcast %cst_263 : f32 to vector<1x256xf32>
    %756 = arith.select %753, %754, %755 : vector<1x256xi1>, vector<1x256xf32>
    %c40 = arith.constant 40 : index
    %757 = memref.load %arg2[%c40] : memref<98xf32, #tpu.memory_space<smem>>
    %758 = vector.broadcast %757 : f32 to vector<1x256xf32>
    %759 = arith.mulf %756, %758 : vector<1x256xf32>
    %760 = arith.addf %743, %759 : vector<1x256xf32>
    %c3_i32_264 = arith.constant 3 : i32
    %761 = vector.broadcast %c3_i32_264 : i32 to vector<1x256xi32>
    %762 = arith.addi %9, %761 : vector<1x256xi32>
    %c0_i32_265 = arith.constant 0 : i32
    %763 = vector.broadcast %c0_i32_265 : i32 to vector<1x256xi32>
    %764 = arith.cmpi sge, %762, %763 : vector<1x256xi32>
    %c3_i32_266 = arith.constant 3 : i32
    %765 = vector.broadcast %c3_i32_266 : i32 to vector<1x256xi32>
    %766 = arith.addi %9, %765 : vector<1x256xi32>
    %c16_i32_267 = arith.constant 16 : i32
    %767 = vector.broadcast %c16_i32_267 : i32 to vector<1x256xi32>
    %768 = arith.cmpi slt, %766, %767 : vector<1x256xi32>
    %769 = arith.andi %764, %768 : vector<1x256xi1>
    %770 = arith.andi %658, %769 : vector<1x256xi1>
    %c253_i32_268 = arith.constant 253 : i32
    %771 = tpu.dynamic_rotate %659 by %c253_i32_268 dim 1 : vector<1x256xf32>, i32 -> vector<1x256xf32>
    %cst_269 = arith.constant 0.000000e+00 : f32
    %772 = vector.broadcast %cst_269 : f32 to vector<1x256xf32>
    %773 = arith.select %770, %771, %772 : vector<1x256xi1>, vector<1x256xf32>
    %c41 = arith.constant 41 : index
    %774 = memref.load %arg2[%c41] : memref<98xf32, #tpu.memory_space<smem>>
    %775 = vector.broadcast %774 : f32 to vector<1x256xf32>
    %776 = arith.mulf %773, %775 : vector<1x256xf32>
    %777 = arith.addf %760, %776 : vector<1x256xf32>
    %c3_i32_270 = arith.constant 3 : i32
    %778 = vector.broadcast %c3_i32_270 : i32 to vector<1x256xi32>
    %779 = arith.addi %8, %778 : vector<1x256xi32>
    %c0_i32_271 = arith.constant 0 : i32
    %780 = vector.broadcast %c0_i32_271 : i32 to vector<1x256xi32>
    %781 = arith.cmpi sge, %779, %780 : vector<1x256xi32>
    %c3_i32_272 = arith.constant 3 : i32
    %782 = vector.broadcast %c3_i32_272 : i32 to vector<1x256xi32>
    %783 = arith.addi %8, %782 : vector<1x256xi32>
    %c16_i32_273 = arith.constant 16 : i32
    %784 = vector.broadcast %c16_i32_273 : i32 to vector<1x256xi32>
    %785 = arith.cmpi slt, %783, %784 : vector<1x256xi32>
    %786 = arith.andi %781, %785 : vector<1x256xi1>
    %c208_i32 = arith.constant 208 : i32
    %787 = tpu.dynamic_rotate %7 by %c208_i32 dim 1 : vector<1x256xf32>, i32 -> vector<1x256xf32>
    %c-3_i32_274 = arith.constant -3 : i32
    %788 = vector.broadcast %c-3_i32_274 : i32 to vector<1x256xi32>
    %789 = arith.addi %9, %788 : vector<1x256xi32>
    %c0_i32_275 = arith.constant 0 : i32
    %790 = vector.broadcast %c0_i32_275 : i32 to vector<1x256xi32>
    %791 = arith.cmpi sge, %789, %790 : vector<1x256xi32>
    %c-3_i32_276 = arith.constant -3 : i32
    %792 = vector.broadcast %c-3_i32_276 : i32 to vector<1x256xi32>
    %793 = arith.addi %9, %792 : vector<1x256xi32>
    %c16_i32_277 = arith.constant 16 : i32
    %794 = vector.broadcast %c16_i32_277 : i32 to vector<1x256xi32>
    %795 = arith.cmpi slt, %793, %794 : vector<1x256xi32>
    %796 = arith.andi %791, %795 : vector<1x256xi1>
    %797 = arith.andi %786, %796 : vector<1x256xi1>
    %c3_i32_278 = arith.constant 3 : i32
    %798 = tpu.dynamic_rotate %787 by %c3_i32_278 dim 1 : vector<1x256xf32>, i32 -> vector<1x256xf32>
    %cst_279 = arith.constant 0.000000e+00 : f32
    %799 = vector.broadcast %cst_279 : f32 to vector<1x256xf32>
    %800 = arith.select %797, %798, %799 : vector<1x256xi1>, vector<1x256xf32>
    %c42 = arith.constant 42 : index
    %801 = memref.load %arg2[%c42] : memref<98xf32, #tpu.memory_space<smem>>
    %802 = vector.broadcast %801 : f32 to vector<1x256xf32>
    %803 = arith.mulf %800, %802 : vector<1x256xf32>
    %804 = arith.addf %777, %803 : vector<1x256xf32>
    %c-2_i32_280 = arith.constant -2 : i32
    %805 = vector.broadcast %c-2_i32_280 : i32 to vector<1x256xi32>
    %806 = arith.addi %9, %805 : vector<1x256xi32>
    %c0_i32_281 = arith.constant 0 : i32
    %807 = vector.broadcast %c0_i32_281 : i32 to vector<1x256xi32>
    %808 = arith.cmpi sge, %806, %807 : vector<1x256xi32>
    %c-2_i32_282 = arith.constant -2 : i32
    %809 = vector.broadcast %c-2_i32_282 : i32 to vector<1x256xi32>
    %810 = arith.addi %9, %809 : vector<1x256xi32>
    %c16_i32_283 = arith.constant 16 : i32
    %811 = vector.broadcast %c16_i32_283 : i32 to vector<1x256xi32>
    %812 = arith.cmpi slt, %810, %811 : vector<1x256xi32>
    %813 = arith.andi %808, %812 : vector<1x256xi1>
    %814 = arith.andi %786, %813 : vector<1x256xi1>
    %c2_i32_284 = arith.constant 2 : i32
    %815 = tpu.dynamic_rotate %787 by %c2_i32_284 dim 1 : vector<1x256xf32>, i32 -> vector<1x256xf32>
    %cst_285 = arith.constant 0.000000e+00 : f32
    %816 = vector.broadcast %cst_285 : f32 to vector<1x256xf32>
    %817 = arith.select %814, %815, %816 : vector<1x256xi1>, vector<1x256xf32>
    %c43 = arith.constant 43 : index
    %818 = memref.load %arg2[%c43] : memref<98xf32, #tpu.memory_space<smem>>
    %819 = vector.broadcast %818 : f32 to vector<1x256xf32>
    %820 = arith.mulf %817, %819 : vector<1x256xf32>
    %821 = arith.addf %804, %820 : vector<1x256xf32>
    %c-1_i32_286 = arith.constant -1 : i32
    %822 = vector.broadcast %c-1_i32_286 : i32 to vector<1x256xi32>
    %823 = arith.addi %9, %822 : vector<1x256xi32>
    %c0_i32_287 = arith.constant 0 : i32
    %824 = vector.broadcast %c0_i32_287 : i32 to vector<1x256xi32>
    %825 = arith.cmpi sge, %823, %824 : vector<1x256xi32>
    %c-1_i32_288 = arith.constant -1 : i32
    %826 = vector.broadcast %c-1_i32_288 : i32 to vector<1x256xi32>
    %827 = arith.addi %9, %826 : vector<1x256xi32>
    %c16_i32_289 = arith.constant 16 : i32
    %828 = vector.broadcast %c16_i32_289 : i32 to vector<1x256xi32>
    %829 = arith.cmpi slt, %827, %828 : vector<1x256xi32>
    %830 = arith.andi %825, %829 : vector<1x256xi1>
    %831 = arith.andi %786, %830 : vector<1x256xi1>
    %c1_i32_290 = arith.constant 1 : i32
    %832 = tpu.dynamic_rotate %787 by %c1_i32_290 dim 1 : vector<1x256xf32>, i32 -> vector<1x256xf32>
    %cst_291 = arith.constant 0.000000e+00 : f32
    %833 = vector.broadcast %cst_291 : f32 to vector<1x256xf32>
    %834 = arith.select %831, %832, %833 : vector<1x256xi1>, vector<1x256xf32>
    %c44 = arith.constant 44 : index
    %835 = memref.load %arg2[%c44] : memref<98xf32, #tpu.memory_space<smem>>
    %836 = vector.broadcast %835 : f32 to vector<1x256xf32>
    %837 = arith.mulf %834, %836 : vector<1x256xf32>
    %838 = arith.addf %821, %837 : vector<1x256xf32>
    %c0_i32_292 = arith.constant 0 : i32
    %839 = vector.broadcast %c0_i32_292 : i32 to vector<1x256xi32>
    %840 = arith.addi %9, %839 : vector<1x256xi32>
    %c0_i32_293 = arith.constant 0 : i32
    %841 = vector.broadcast %c0_i32_293 : i32 to vector<1x256xi32>
    %842 = arith.cmpi sge, %840, %841 : vector<1x256xi32>
    %c0_i32_294 = arith.constant 0 : i32
    %843 = vector.broadcast %c0_i32_294 : i32 to vector<1x256xi32>
    %844 = arith.addi %9, %843 : vector<1x256xi32>
    %c16_i32_295 = arith.constant 16 : i32
    %845 = vector.broadcast %c16_i32_295 : i32 to vector<1x256xi32>
    %846 = arith.cmpi slt, %844, %845 : vector<1x256xi32>
    %847 = arith.andi %842, %846 : vector<1x256xi1>
    %848 = arith.andi %786, %847 : vector<1x256xi1>
    %cst_296 = arith.constant 0.000000e+00 : f32
    %849 = vector.broadcast %cst_296 : f32 to vector<1x256xf32>
    %850 = arith.select %848, %787, %849 : vector<1x256xi1>, vector<1x256xf32>
    %c45 = arith.constant 45 : index
    %851 = memref.load %arg2[%c45] : memref<98xf32, #tpu.memory_space<smem>>
    %852 = vector.broadcast %851 : f32 to vector<1x256xf32>
    %853 = arith.mulf %850, %852 : vector<1x256xf32>
    %854 = arith.addf %838, %853 : vector<1x256xf32>
    %c1_i32_297 = arith.constant 1 : i32
    %855 = vector.broadcast %c1_i32_297 : i32 to vector<1x256xi32>
    %856 = arith.addi %9, %855 : vector<1x256xi32>
    %c0_i32_298 = arith.constant 0 : i32
    %857 = vector.broadcast %c0_i32_298 : i32 to vector<1x256xi32>
    %858 = arith.cmpi sge, %856, %857 : vector<1x256xi32>
    %c1_i32_299 = arith.constant 1 : i32
    %859 = vector.broadcast %c1_i32_299 : i32 to vector<1x256xi32>
    %860 = arith.addi %9, %859 : vector<1x256xi32>
    %c16_i32_300 = arith.constant 16 : i32
    %861 = vector.broadcast %c16_i32_300 : i32 to vector<1x256xi32>
    %862 = arith.cmpi slt, %860, %861 : vector<1x256xi32>
    %863 = arith.andi %858, %862 : vector<1x256xi1>
    %864 = arith.andi %786, %863 : vector<1x256xi1>
    %c255_i32_301 = arith.constant 255 : i32
    %865 = tpu.dynamic_rotate %787 by %c255_i32_301 dim 1 : vector<1x256xf32>, i32 -> vector<1x256xf32>
    %cst_302 = arith.constant 0.000000e+00 : f32
    %866 = vector.broadcast %cst_302 : f32 to vector<1x256xf32>
    %867 = arith.select %864, %865, %866 : vector<1x256xi1>, vector<1x256xf32>
    %c46 = arith.constant 46 : index
    %868 = memref.load %arg2[%c46] : memref<98xf32, #tpu.memory_space<smem>>
    %869 = vector.broadcast %868 : f32 to vector<1x256xf32>
    %870 = arith.mulf %867, %869 : vector<1x256xf32>
    %871 = arith.addf %854, %870 : vector<1x256xf32>
    %c2_i32_303 = arith.constant 2 : i32
    %872 = vector.broadcast %c2_i32_303 : i32 to vector<1x256xi32>
    %873 = arith.addi %9, %872 : vector<1x256xi32>
    %c0_i32_304 = arith.constant 0 : i32
    %874 = vector.broadcast %c0_i32_304 : i32 to vector<1x256xi32>
    %875 = arith.cmpi sge, %873, %874 : vector<1x256xi32>
    %c2_i32_305 = arith.constant 2 : i32
    %876 = vector.broadcast %c2_i32_305 : i32 to vector<1x256xi32>
    %877 = arith.addi %9, %876 : vector<1x256xi32>
    %c16_i32_306 = arith.constant 16 : i32
    %878 = vector.broadcast %c16_i32_306 : i32 to vector<1x256xi32>
    %879 = arith.cmpi slt, %877, %878 : vector<1x256xi32>
    %880 = arith.andi %875, %879 : vector<1x256xi1>
    %881 = arith.andi %786, %880 : vector<1x256xi1>
    %c254_i32_307 = arith.constant 254 : i32
    %882 = tpu.dynamic_rotate %787 by %c254_i32_307 dim 1 : vector<1x256xf32>, i32 -> vector<1x256xf32>
    %cst_308 = arith.constant 0.000000e+00 : f32
    %883 = vector.broadcast %cst_308 : f32 to vector<1x256xf32>
    %884 = arith.select %881, %882, %883 : vector<1x256xi1>, vector<1x256xf32>
    %c47 = arith.constant 47 : index
    %885 = memref.load %arg2[%c47] : memref<98xf32, #tpu.memory_space<smem>>
    %886 = vector.broadcast %885 : f32 to vector<1x256xf32>
    %887 = arith.mulf %884, %886 : vector<1x256xf32>
    %888 = arith.addf %871, %887 : vector<1x256xf32>
    %c3_i32_309 = arith.constant 3 : i32
    %889 = vector.broadcast %c3_i32_309 : i32 to vector<1x256xi32>
    %890 = arith.addi %9, %889 : vector<1x256xi32>
    %c0_i32_310 = arith.constant 0 : i32
    %891 = vector.broadcast %c0_i32_310 : i32 to vector<1x256xi32>
    %892 = arith.cmpi sge, %890, %891 : vector<1x256xi32>
    %c3_i32_311 = arith.constant 3 : i32
    %893 = vector.broadcast %c3_i32_311 : i32 to vector<1x256xi32>
    %894 = arith.addi %9, %893 : vector<1x256xi32>
    %c16_i32_312 = arith.constant 16 : i32
    %895 = vector.broadcast %c16_i32_312 : i32 to vector<1x256xi32>
    %896 = arith.cmpi slt, %894, %895 : vector<1x256xi32>
    %897 = arith.andi %892, %896 : vector<1x256xi1>
    %898 = arith.andi %786, %897 : vector<1x256xi1>
    %c253_i32_313 = arith.constant 253 : i32
    %899 = tpu.dynamic_rotate %787 by %c253_i32_313 dim 1 : vector<1x256xf32>, i32 -> vector<1x256xf32>
    %cst_314 = arith.constant 0.000000e+00 : f32
    %900 = vector.broadcast %cst_314 : f32 to vector<1x256xf32>
    %901 = arith.select %898, %899, %900 : vector<1x256xi1>, vector<1x256xf32>
    %c48 = arith.constant 48 : index
    %902 = memref.load %arg2[%c48] : memref<98xf32, #tpu.memory_space<smem>>
    %903 = vector.broadcast %902 : f32 to vector<1x256xf32>
    %904 = arith.mulf %901, %903 : vector<1x256xf32>
    %905 = arith.addf %888, %904 : vector<1x256xf32>
    %c-3_i32_315 = arith.constant -3 : i32
    %906 = vector.broadcast %c-3_i32_315 : i32 to vector<1x256xi32>
    %907 = arith.addi %8, %906 : vector<1x256xi32>
    %c0_i32_316 = arith.constant 0 : i32
    %908 = vector.broadcast %c0_i32_316 : i32 to vector<1x256xi32>
    %909 = arith.cmpi sge, %907, %908 : vector<1x256xi32>
    %c-3_i32_317 = arith.constant -3 : i32
    %910 = vector.broadcast %c-3_i32_317 : i32 to vector<1x256xi32>
    %911 = arith.addi %8, %910 : vector<1x256xi32>
    %c16_i32_318 = arith.constant 16 : i32
    %912 = vector.broadcast %c16_i32_318 : i32 to vector<1x256xi32>
    %913 = arith.cmpi slt, %911, %912 : vector<1x256xi32>
    %914 = arith.andi %909, %913 : vector<1x256xi1>
    %c48_i32_319 = arith.constant 48 : i32
    %915 = tpu.dynamic_rotate %5 by %c48_i32_319 dim 1 : vector<1x256xf32>, i32 -> vector<1x256xf32>
    %c-3_i32_320 = arith.constant -3 : i32
    %916 = vector.broadcast %c-3_i32_320 : i32 to vector<1x256xi32>
    %917 = arith.addi %9, %916 : vector<1x256xi32>
    %c0_i32_321 = arith.constant 0 : i32
    %918 = vector.broadcast %c0_i32_321 : i32 to vector<1x256xi32>
    %919 = arith.cmpi sge, %917, %918 : vector<1x256xi32>
    %c-3_i32_322 = arith.constant -3 : i32
    %920 = vector.broadcast %c-3_i32_322 : i32 to vector<1x256xi32>
    %921 = arith.addi %9, %920 : vector<1x256xi32>
    %c16_i32_323 = arith.constant 16 : i32
    %922 = vector.broadcast %c16_i32_323 : i32 to vector<1x256xi32>
    %923 = arith.cmpi slt, %921, %922 : vector<1x256xi32>
    %924 = arith.andi %919, %923 : vector<1x256xi1>
    %925 = arith.andi %914, %924 : vector<1x256xi1>
    %c3_i32_324 = arith.constant 3 : i32
    %926 = tpu.dynamic_rotate %915 by %c3_i32_324 dim 1 : vector<1x256xf32>, i32 -> vector<1x256xf32>
    %cst_325 = arith.constant 0.000000e+00 : f32
    %927 = vector.broadcast %cst_325 : f32 to vector<1x256xf32>
    %928 = arith.select %925, %926, %927 : vector<1x256xi1>, vector<1x256xf32>
    %c49 = arith.constant 49 : index
    %929 = memref.load %arg2[%c49] : memref<98xf32, #tpu.memory_space<smem>>
    %930 = vector.broadcast %929 : f32 to vector<1x256xf32>
    %931 = arith.mulf %928, %930 : vector<1x256xf32>
    %932 = arith.addf %905, %931 : vector<1x256xf32>
    %c-2_i32_326 = arith.constant -2 : i32
    %933 = vector.broadcast %c-2_i32_326 : i32 to vector<1x256xi32>
    %934 = arith.addi %9, %933 : vector<1x256xi32>
    %c0_i32_327 = arith.constant 0 : i32
    %935 = vector.broadcast %c0_i32_327 : i32 to vector<1x256xi32>
    %936 = arith.cmpi sge, %934, %935 : vector<1x256xi32>
    %c-2_i32_328 = arith.constant -2 : i32
    %937 = vector.broadcast %c-2_i32_328 : i32 to vector<1x256xi32>
    %938 = arith.addi %9, %937 : vector<1x256xi32>
    %c16_i32_329 = arith.constant 16 : i32
    %939 = vector.broadcast %c16_i32_329 : i32 to vector<1x256xi32>
    %940 = arith.cmpi slt, %938, %939 : vector<1x256xi32>
    %941 = arith.andi %936, %940 : vector<1x256xi1>
    %942 = arith.andi %914, %941 : vector<1x256xi1>
    %c2_i32_330 = arith.constant 2 : i32
    %943 = tpu.dynamic_rotate %915 by %c2_i32_330 dim 1 : vector<1x256xf32>, i32 -> vector<1x256xf32>
    %cst_331 = arith.constant 0.000000e+00 : f32
    %944 = vector.broadcast %cst_331 : f32 to vector<1x256xf32>
    %945 = arith.select %942, %943, %944 : vector<1x256xi1>, vector<1x256xf32>
    %c50 = arith.constant 50 : index
    %946 = memref.load %arg2[%c50] : memref<98xf32, #tpu.memory_space<smem>>
    %947 = vector.broadcast %946 : f32 to vector<1x256xf32>
    %948 = arith.mulf %945, %947 : vector<1x256xf32>
    %949 = arith.addf %932, %948 : vector<1x256xf32>
    %c-1_i32_332 = arith.constant -1 : i32
    %950 = vector.broadcast %c-1_i32_332 : i32 to vector<1x256xi32>
    %951 = arith.addi %9, %950 : vector<1x256xi32>
    %c0_i32_333 = arith.constant 0 : i32
    %952 = vector.broadcast %c0_i32_333 : i32 to vector<1x256xi32>
    %953 = arith.cmpi sge, %951, %952 : vector<1x256xi32>
    %c-1_i32_334 = arith.constant -1 : i32
    %954 = vector.broadcast %c-1_i32_334 : i32 to vector<1x256xi32>
    %955 = arith.addi %9, %954 : vector<1x256xi32>
    %c16_i32_335 = arith.constant 16 : i32
    %956 = vector.broadcast %c16_i32_335 : i32 to vector<1x256xi32>
    %957 = arith.cmpi slt, %955, %956 : vector<1x256xi32>
    %958 = arith.andi %953, %957 : vector<1x256xi1>
    %959 = arith.andi %914, %958 : vector<1x256xi1>
    %c1_i32_336 = arith.constant 1 : i32
    %960 = tpu.dynamic_rotate %915 by %c1_i32_336 dim 1 : vector<1x256xf32>, i32 -> vector<1x256xf32>
    %cst_337 = arith.constant 0.000000e+00 : f32
    %961 = vector.broadcast %cst_337 : f32 to vector<1x256xf32>
    %962 = arith.select %959, %960, %961 : vector<1x256xi1>, vector<1x256xf32>
    %c51 = arith.constant 51 : index
    %963 = memref.load %arg2[%c51] : memref<98xf32, #tpu.memory_space<smem>>
    %964 = vector.broadcast %963 : f32 to vector<1x256xf32>
    %965 = arith.mulf %962, %964 : vector<1x256xf32>
    %966 = arith.addf %949, %965 : vector<1x256xf32>
    %c0_i32_338 = arith.constant 0 : i32
    %967 = vector.broadcast %c0_i32_338 : i32 to vector<1x256xi32>
    %968 = arith.addi %9, %967 : vector<1x256xi32>
    %c0_i32_339 = arith.constant 0 : i32
    %969 = vector.broadcast %c0_i32_339 : i32 to vector<1x256xi32>
    %970 = arith.cmpi sge, %968, %969 : vector<1x256xi32>
    %c0_i32_340 = arith.constant 0 : i32
    %971 = vector.broadcast %c0_i32_340 : i32 to vector<1x256xi32>
    %972 = arith.addi %9, %971 : vector<1x256xi32>
    %c16_i32_341 = arith.constant 16 : i32
    %973 = vector.broadcast %c16_i32_341 : i32 to vector<1x256xi32>
    %974 = arith.cmpi slt, %972, %973 : vector<1x256xi32>
    %975 = arith.andi %970, %974 : vector<1x256xi1>
    %976 = arith.andi %914, %975 : vector<1x256xi1>
    %cst_342 = arith.constant 0.000000e+00 : f32
    %977 = vector.broadcast %cst_342 : f32 to vector<1x256xf32>
    %978 = arith.select %976, %915, %977 : vector<1x256xi1>, vector<1x256xf32>
    %c52 = arith.constant 52 : index
    %979 = memref.load %arg2[%c52] : memref<98xf32, #tpu.memory_space<smem>>
    %980 = vector.broadcast %979 : f32 to vector<1x256xf32>
    %981 = arith.mulf %978, %980 : vector<1x256xf32>
    %982 = arith.addf %966, %981 : vector<1x256xf32>
    %c1_i32_343 = arith.constant 1 : i32
    %983 = vector.broadcast %c1_i32_343 : i32 to vector<1x256xi32>
    %984 = arith.addi %9, %983 : vector<1x256xi32>
    %c0_i32_344 = arith.constant 0 : i32
    %985 = vector.broadcast %c0_i32_344 : i32 to vector<1x256xi32>
    %986 = arith.cmpi sge, %984, %985 : vector<1x256xi32>
    %c1_i32_345 = arith.constant 1 : i32
    %987 = vector.broadcast %c1_i32_345 : i32 to vector<1x256xi32>
    %988 = arith.addi %9, %987 : vector<1x256xi32>
    %c16_i32_346 = arith.constant 16 : i32
    %989 = vector.broadcast %c16_i32_346 : i32 to vector<1x256xi32>
    %990 = arith.cmpi slt, %988, %989 : vector<1x256xi32>
    %991 = arith.andi %986, %990 : vector<1x256xi1>
    %992 = arith.andi %914, %991 : vector<1x256xi1>
    %c255_i32_347 = arith.constant 255 : i32
    %993 = tpu.dynamic_rotate %915 by %c255_i32_347 dim 1 : vector<1x256xf32>, i32 -> vector<1x256xf32>
    %cst_348 = arith.constant 0.000000e+00 : f32
    %994 = vector.broadcast %cst_348 : f32 to vector<1x256xf32>
    %995 = arith.select %992, %993, %994 : vector<1x256xi1>, vector<1x256xf32>
    %c53 = arith.constant 53 : index
    %996 = memref.load %arg2[%c53] : memref<98xf32, #tpu.memory_space<smem>>
    %997 = vector.broadcast %996 : f32 to vector<1x256xf32>
    %998 = arith.mulf %995, %997 : vector<1x256xf32>
    %999 = arith.addf %982, %998 : vector<1x256xf32>
    %c2_i32_349 = arith.constant 2 : i32
    %1000 = vector.broadcast %c2_i32_349 : i32 to vector<1x256xi32>
    %1001 = arith.addi %9, %1000 : vector<1x256xi32>
    %c0_i32_350 = arith.constant 0 : i32
    %1002 = vector.broadcast %c0_i32_350 : i32 to vector<1x256xi32>
    %1003 = arith.cmpi sge, %1001, %1002 : vector<1x256xi32>
    %c2_i32_351 = arith.constant 2 : i32
    %1004 = vector.broadcast %c2_i32_351 : i32 to vector<1x256xi32>
    %1005 = arith.addi %9, %1004 : vector<1x256xi32>
    %c16_i32_352 = arith.constant 16 : i32
    %1006 = vector.broadcast %c16_i32_352 : i32 to vector<1x256xi32>
    %1007 = arith.cmpi slt, %1005, %1006 : vector<1x256xi32>
    %1008 = arith.andi %1003, %1007 : vector<1x256xi1>
    %1009 = arith.andi %914, %1008 : vector<1x256xi1>
    %c254_i32_353 = arith.constant 254 : i32
    %1010 = tpu.dynamic_rotate %915 by %c254_i32_353 dim 1 : vector<1x256xf32>, i32 -> vector<1x256xf32>
    %cst_354 = arith.constant 0.000000e+00 : f32
    %1011 = vector.broadcast %cst_354 : f32 to vector<1x256xf32>
    %1012 = arith.select %1009, %1010, %1011 : vector<1x256xi1>, vector<1x256xf32>
    %c54 = arith.constant 54 : index
    %1013 = memref.load %arg2[%c54] : memref<98xf32, #tpu.memory_space<smem>>
    %1014 = vector.broadcast %1013 : f32 to vector<1x256xf32>
    %1015 = arith.mulf %1012, %1014 : vector<1x256xf32>
    %1016 = arith.addf %999, %1015 : vector<1x256xf32>
    %c3_i32_355 = arith.constant 3 : i32
    %1017 = vector.broadcast %c3_i32_355 : i32 to vector<1x256xi32>
    %1018 = arith.addi %9, %1017 : vector<1x256xi32>
    %c0_i32_356 = arith.constant 0 : i32
    %1019 = vector.broadcast %c0_i32_356 : i32 to vector<1x256xi32>
    %1020 = arith.cmpi sge, %1018, %1019 : vector<1x256xi32>
    %c3_i32_357 = arith.constant 3 : i32
    %1021 = vector.broadcast %c3_i32_357 : i32 to vector<1x256xi32>
    %1022 = arith.addi %9, %1021 : vector<1x256xi32>
    %c16_i32_358 = arith.constant 16 : i32
    %1023 = vector.broadcast %c16_i32_358 : i32 to vector<1x256xi32>
    %1024 = arith.cmpi slt, %1022, %1023 : vector<1x256xi32>
    %1025 = arith.andi %1020, %1024 : vector<1x256xi1>
    %1026 = arith.andi %914, %1025 : vector<1x256xi1>
    %c253_i32_359 = arith.constant 253 : i32
    %1027 = tpu.dynamic_rotate %915 by %c253_i32_359 dim 1 : vector<1x256xf32>, i32 -> vector<1x256xf32>
    %cst_360 = arith.constant 0.000000e+00 : f32
    %1028 = vector.broadcast %cst_360 : f32 to vector<1x256xf32>
    %1029 = arith.select %1026, %1027, %1028 : vector<1x256xi1>, vector<1x256xf32>
    %c55 = arith.constant 55 : index
    %1030 = memref.load %arg2[%c55] : memref<98xf32, #tpu.memory_space<smem>>
    %1031 = vector.broadcast %1030 : f32 to vector<1x256xf32>
    %1032 = arith.mulf %1029, %1031 : vector<1x256xf32>
    %1033 = arith.addf %1016, %1032 : vector<1x256xf32>
    %c-2_i32_361 = arith.constant -2 : i32
    %1034 = vector.broadcast %c-2_i32_361 : i32 to vector<1x256xi32>
    %1035 = arith.addi %8, %1034 : vector<1x256xi32>
    %c0_i32_362 = arith.constant 0 : i32
    %1036 = vector.broadcast %c0_i32_362 : i32 to vector<1x256xi32>
    %1037 = arith.cmpi sge, %1035, %1036 : vector<1x256xi32>
    %c-2_i32_363 = arith.constant -2 : i32
    %1038 = vector.broadcast %c-2_i32_363 : i32 to vector<1x256xi32>
    %1039 = arith.addi %8, %1038 : vector<1x256xi32>
    %c16_i32_364 = arith.constant 16 : i32
    %1040 = vector.broadcast %c16_i32_364 : i32 to vector<1x256xi32>
    %1041 = arith.cmpi slt, %1039, %1040 : vector<1x256xi32>
    %1042 = arith.andi %1037, %1041 : vector<1x256xi1>
    %c32_i32_365 = arith.constant 32 : i32
    %1043 = tpu.dynamic_rotate %5 by %c32_i32_365 dim 1 : vector<1x256xf32>, i32 -> vector<1x256xf32>
    %c-3_i32_366 = arith.constant -3 : i32
    %1044 = vector.broadcast %c-3_i32_366 : i32 to vector<1x256xi32>
    %1045 = arith.addi %9, %1044 : vector<1x256xi32>
    %c0_i32_367 = arith.constant 0 : i32
    %1046 = vector.broadcast %c0_i32_367 : i32 to vector<1x256xi32>
    %1047 = arith.cmpi sge, %1045, %1046 : vector<1x256xi32>
    %c-3_i32_368 = arith.constant -3 : i32
    %1048 = vector.broadcast %c-3_i32_368 : i32 to vector<1x256xi32>
    %1049 = arith.addi %9, %1048 : vector<1x256xi32>
    %c16_i32_369 = arith.constant 16 : i32
    %1050 = vector.broadcast %c16_i32_369 : i32 to vector<1x256xi32>
    %1051 = arith.cmpi slt, %1049, %1050 : vector<1x256xi32>
    %1052 = arith.andi %1047, %1051 : vector<1x256xi1>
    %1053 = arith.andi %1042, %1052 : vector<1x256xi1>
    %c3_i32_370 = arith.constant 3 : i32
    %1054 = tpu.dynamic_rotate %1043 by %c3_i32_370 dim 1 : vector<1x256xf32>, i32 -> vector<1x256xf32>
    %cst_371 = arith.constant 0.000000e+00 : f32
    %1055 = vector.broadcast %cst_371 : f32 to vector<1x256xf32>
    %1056 = arith.select %1053, %1054, %1055 : vector<1x256xi1>, vector<1x256xf32>
    %c56 = arith.constant 56 : index
    %1057 = memref.load %arg2[%c56] : memref<98xf32, #tpu.memory_space<smem>>
    %1058 = vector.broadcast %1057 : f32 to vector<1x256xf32>
    %1059 = arith.mulf %1056, %1058 : vector<1x256xf32>
    %1060 = arith.addf %1033, %1059 : vector<1x256xf32>
    %c-2_i32_372 = arith.constant -2 : i32
    %1061 = vector.broadcast %c-2_i32_372 : i32 to vector<1x256xi32>
    %1062 = arith.addi %9, %1061 : vector<1x256xi32>
    %c0_i32_373 = arith.constant 0 : i32
    %1063 = vector.broadcast %c0_i32_373 : i32 to vector<1x256xi32>
    %1064 = arith.cmpi sge, %1062, %1063 : vector<1x256xi32>
    %c-2_i32_374 = arith.constant -2 : i32
    %1065 = vector.broadcast %c-2_i32_374 : i32 to vector<1x256xi32>
    %1066 = arith.addi %9, %1065 : vector<1x256xi32>
    %c16_i32_375 = arith.constant 16 : i32
    %1067 = vector.broadcast %c16_i32_375 : i32 to vector<1x256xi32>
    %1068 = arith.cmpi slt, %1066, %1067 : vector<1x256xi32>
    %1069 = arith.andi %1064, %1068 : vector<1x256xi1>
    %1070 = arith.andi %1042, %1069 : vector<1x256xi1>
    %c2_i32_376 = arith.constant 2 : i32
    %1071 = tpu.dynamic_rotate %1043 by %c2_i32_376 dim 1 : vector<1x256xf32>, i32 -> vector<1x256xf32>
    %cst_377 = arith.constant 0.000000e+00 : f32
    %1072 = vector.broadcast %cst_377 : f32 to vector<1x256xf32>
    %1073 = arith.select %1070, %1071, %1072 : vector<1x256xi1>, vector<1x256xf32>
    %c57 = arith.constant 57 : index
    %1074 = memref.load %arg2[%c57] : memref<98xf32, #tpu.memory_space<smem>>
    %1075 = vector.broadcast %1074 : f32 to vector<1x256xf32>
    %1076 = arith.mulf %1073, %1075 : vector<1x256xf32>
    %1077 = arith.addf %1060, %1076 : vector<1x256xf32>
    %c-1_i32_378 = arith.constant -1 : i32
    %1078 = vector.broadcast %c-1_i32_378 : i32 to vector<1x256xi32>
    %1079 = arith.addi %9, %1078 : vector<1x256xi32>
    %c0_i32_379 = arith.constant 0 : i32
    %1080 = vector.broadcast %c0_i32_379 : i32 to vector<1x256xi32>
    %1081 = arith.cmpi sge, %1079, %1080 : vector<1x256xi32>
    %c-1_i32_380 = arith.constant -1 : i32
    %1082 = vector.broadcast %c-1_i32_380 : i32 to vector<1x256xi32>
    %1083 = arith.addi %9, %1082 : vector<1x256xi32>
    %c16_i32_381 = arith.constant 16 : i32
    %1084 = vector.broadcast %c16_i32_381 : i32 to vector<1x256xi32>
    %1085 = arith.cmpi slt, %1083, %1084 : vector<1x256xi32>
    %1086 = arith.andi %1081, %1085 : vector<1x256xi1>
    %1087 = arith.andi %1042, %1086 : vector<1x256xi1>
    %c1_i32_382 = arith.constant 1 : i32
    %1088 = tpu.dynamic_rotate %1043 by %c1_i32_382 dim 1 : vector<1x256xf32>, i32 -> vector<1x256xf32>
    %cst_383 = arith.constant 0.000000e+00 : f32
    %1089 = vector.broadcast %cst_383 : f32 to vector<1x256xf32>
    %1090 = arith.select %1087, %1088, %1089 : vector<1x256xi1>, vector<1x256xf32>
    %c58 = arith.constant 58 : index
    %1091 = memref.load %arg2[%c58] : memref<98xf32, #tpu.memory_space<smem>>
    %1092 = vector.broadcast %1091 : f32 to vector<1x256xf32>
    %1093 = arith.mulf %1090, %1092 : vector<1x256xf32>
    %1094 = arith.addf %1077, %1093 : vector<1x256xf32>
    %c0_i32_384 = arith.constant 0 : i32
    %1095 = vector.broadcast %c0_i32_384 : i32 to vector<1x256xi32>
    %1096 = arith.addi %9, %1095 : vector<1x256xi32>
    %c0_i32_385 = arith.constant 0 : i32
    %1097 = vector.broadcast %c0_i32_385 : i32 to vector<1x256xi32>
    %1098 = arith.cmpi sge, %1096, %1097 : vector<1x256xi32>
    %c0_i32_386 = arith.constant 0 : i32
    %1099 = vector.broadcast %c0_i32_386 : i32 to vector<1x256xi32>
    %1100 = arith.addi %9, %1099 : vector<1x256xi32>
    %c16_i32_387 = arith.constant 16 : i32
    %1101 = vector.broadcast %c16_i32_387 : i32 to vector<1x256xi32>
    %1102 = arith.cmpi slt, %1100, %1101 : vector<1x256xi32>
    %1103 = arith.andi %1098, %1102 : vector<1x256xi1>
    %1104 = arith.andi %1042, %1103 : vector<1x256xi1>
    %cst_388 = arith.constant 0.000000e+00 : f32
    %1105 = vector.broadcast %cst_388 : f32 to vector<1x256xf32>
    %1106 = arith.select %1104, %1043, %1105 : vector<1x256xi1>, vector<1x256xf32>
    %c59 = arith.constant 59 : index
    %1107 = memref.load %arg2[%c59] : memref<98xf32, #tpu.memory_space<smem>>
    %1108 = vector.broadcast %1107 : f32 to vector<1x256xf32>
    %1109 = arith.mulf %1106, %1108 : vector<1x256xf32>
    %1110 = arith.addf %1094, %1109 : vector<1x256xf32>
    %c1_i32_389 = arith.constant 1 : i32
    %1111 = vector.broadcast %c1_i32_389 : i32 to vector<1x256xi32>
    %1112 = arith.addi %9, %1111 : vector<1x256xi32>
    %c0_i32_390 = arith.constant 0 : i32
    %1113 = vector.broadcast %c0_i32_390 : i32 to vector<1x256xi32>
    %1114 = arith.cmpi sge, %1112, %1113 : vector<1x256xi32>
    %c1_i32_391 = arith.constant 1 : i32
    %1115 = vector.broadcast %c1_i32_391 : i32 to vector<1x256xi32>
    %1116 = arith.addi %9, %1115 : vector<1x256xi32>
    %c16_i32_392 = arith.constant 16 : i32
    %1117 = vector.broadcast %c16_i32_392 : i32 to vector<1x256xi32>
    %1118 = arith.cmpi slt, %1116, %1117 : vector<1x256xi32>
    %1119 = arith.andi %1114, %1118 : vector<1x256xi1>
    %1120 = arith.andi %1042, %1119 : vector<1x256xi1>
    %c255_i32_393 = arith.constant 255 : i32
    %1121 = tpu.dynamic_rotate %1043 by %c255_i32_393 dim 1 : vector<1x256xf32>, i32 -> vector<1x256xf32>
    %cst_394 = arith.constant 0.000000e+00 : f32
    %1122 = vector.broadcast %cst_394 : f32 to vector<1x256xf32>
    %1123 = arith.select %1120, %1121, %1122 : vector<1x256xi1>, vector<1x256xf32>
    %c60 = arith.constant 60 : index
    %1124 = memref.load %arg2[%c60] : memref<98xf32, #tpu.memory_space<smem>>
    %1125 = vector.broadcast %1124 : f32 to vector<1x256xf32>
    %1126 = arith.mulf %1123, %1125 : vector<1x256xf32>
    %1127 = arith.addf %1110, %1126 : vector<1x256xf32>
    %c2_i32_395 = arith.constant 2 : i32
    %1128 = vector.broadcast %c2_i32_395 : i32 to vector<1x256xi32>
    %1129 = arith.addi %9, %1128 : vector<1x256xi32>
    %c0_i32_396 = arith.constant 0 : i32
    %1130 = vector.broadcast %c0_i32_396 : i32 to vector<1x256xi32>
    %1131 = arith.cmpi sge, %1129, %1130 : vector<1x256xi32>
    %c2_i32_397 = arith.constant 2 : i32
    %1132 = vector.broadcast %c2_i32_397 : i32 to vector<1x256xi32>
    %1133 = arith.addi %9, %1132 : vector<1x256xi32>
    %c16_i32_398 = arith.constant 16 : i32
    %1134 = vector.broadcast %c16_i32_398 : i32 to vector<1x256xi32>
    %1135 = arith.cmpi slt, %1133, %1134 : vector<1x256xi32>
    %1136 = arith.andi %1131, %1135 : vector<1x256xi1>
    %1137 = arith.andi %1042, %1136 : vector<1x256xi1>
    %c254_i32_399 = arith.constant 254 : i32
    %1138 = tpu.dynamic_rotate %1043 by %c254_i32_399 dim 1 : vector<1x256xf32>, i32 -> vector<1x256xf32>
    %cst_400 = arith.constant 0.000000e+00 : f32
    %1139 = vector.broadcast %cst_400 : f32 to vector<1x256xf32>
    %1140 = arith.select %1137, %1138, %1139 : vector<1x256xi1>, vector<1x256xf32>
    %c61 = arith.constant 61 : index
    %1141 = memref.load %arg2[%c61] : memref<98xf32, #tpu.memory_space<smem>>
    %1142 = vector.broadcast %1141 : f32 to vector<1x256xf32>
    %1143 = arith.mulf %1140, %1142 : vector<1x256xf32>
    %1144 = arith.addf %1127, %1143 : vector<1x256xf32>
    %c3_i32_401 = arith.constant 3 : i32
    %1145 = vector.broadcast %c3_i32_401 : i32 to vector<1x256xi32>
    %1146 = arith.addi %9, %1145 : vector<1x256xi32>
    %c0_i32_402 = arith.constant 0 : i32
    %1147 = vector.broadcast %c0_i32_402 : i32 to vector<1x256xi32>
    %1148 = arith.cmpi sge, %1146, %1147 : vector<1x256xi32>
    %c3_i32_403 = arith.constant 3 : i32
    %1149 = vector.broadcast %c3_i32_403 : i32 to vector<1x256xi32>
    %1150 = arith.addi %9, %1149 : vector<1x256xi32>
    %c16_i32_404 = arith.constant 16 : i32
    %1151 = vector.broadcast %c16_i32_404 : i32 to vector<1x256xi32>
    %1152 = arith.cmpi slt, %1150, %1151 : vector<1x256xi32>
    %1153 = arith.andi %1148, %1152 : vector<1x256xi1>
    %1154 = arith.andi %1042, %1153 : vector<1x256xi1>
    %c253_i32_405 = arith.constant 253 : i32
    %1155 = tpu.dynamic_rotate %1043 by %c253_i32_405 dim 1 : vector<1x256xf32>, i32 -> vector<1x256xf32>
    %cst_406 = arith.constant 0.000000e+00 : f32
    %1156 = vector.broadcast %cst_406 : f32 to vector<1x256xf32>
    %1157 = arith.select %1154, %1155, %1156 : vector<1x256xi1>, vector<1x256xf32>
    %c62 = arith.constant 62 : index
    %1158 = memref.load %arg2[%c62] : memref<98xf32, #tpu.memory_space<smem>>
    %1159 = vector.broadcast %1158 : f32 to vector<1x256xf32>
    %1160 = arith.mulf %1157, %1159 : vector<1x256xf32>
    %1161 = arith.addf %1144, %1160 : vector<1x256xf32>
    %c-1_i32_407 = arith.constant -1 : i32
    %1162 = vector.broadcast %c-1_i32_407 : i32 to vector<1x256xi32>
    %1163 = arith.addi %8, %1162 : vector<1x256xi32>
    %c0_i32_408 = arith.constant 0 : i32
    %1164 = vector.broadcast %c0_i32_408 : i32 to vector<1x256xi32>
    %1165 = arith.cmpi sge, %1163, %1164 : vector<1x256xi32>
    %c-1_i32_409 = arith.constant -1 : i32
    %1166 = vector.broadcast %c-1_i32_409 : i32 to vector<1x256xi32>
    %1167 = arith.addi %8, %1166 : vector<1x256xi32>
    %c16_i32_410 = arith.constant 16 : i32
    %1168 = vector.broadcast %c16_i32_410 : i32 to vector<1x256xi32>
    %1169 = arith.cmpi slt, %1167, %1168 : vector<1x256xi32>
    %1170 = arith.andi %1165, %1169 : vector<1x256xi1>
    %c16_i32_411 = arith.constant 16 : i32
    %1171 = tpu.dynamic_rotate %5 by %c16_i32_411 dim 1 : vector<1x256xf32>, i32 -> vector<1x256xf32>
    %c-3_i32_412 = arith.constant -3 : i32
    %1172 = vector.broadcast %c-3_i32_412 : i32 to vector<1x256xi32>
    %1173 = arith.addi %9, %1172 : vector<1x256xi32>
    %c0_i32_413 = arith.constant 0 : i32
    %1174 = vector.broadcast %c0_i32_413 : i32 to vector<1x256xi32>
    %1175 = arith.cmpi sge, %1173, %1174 : vector<1x256xi32>
    %c-3_i32_414 = arith.constant -3 : i32
    %1176 = vector.broadcast %c-3_i32_414 : i32 to vector<1x256xi32>
    %1177 = arith.addi %9, %1176 : vector<1x256xi32>
    %c16_i32_415 = arith.constant 16 : i32
    %1178 = vector.broadcast %c16_i32_415 : i32 to vector<1x256xi32>
    %1179 = arith.cmpi slt, %1177, %1178 : vector<1x256xi32>
    %1180 = arith.andi %1175, %1179 : vector<1x256xi1>
    %1181 = arith.andi %1170, %1180 : vector<1x256xi1>
    %c3_i32_416 = arith.constant 3 : i32
    %1182 = tpu.dynamic_rotate %1171 by %c3_i32_416 dim 1 : vector<1x256xf32>, i32 -> vector<1x256xf32>
    %cst_417 = arith.constant 0.000000e+00 : f32
    %1183 = vector.broadcast %cst_417 : f32 to vector<1x256xf32>
    %1184 = arith.select %1181, %1182, %1183 : vector<1x256xi1>, vector<1x256xf32>
    %c63 = arith.constant 63 : index
    %1185 = memref.load %arg2[%c63] : memref<98xf32, #tpu.memory_space<smem>>
    %1186 = vector.broadcast %1185 : f32 to vector<1x256xf32>
    %1187 = arith.mulf %1184, %1186 : vector<1x256xf32>
    %1188 = arith.addf %1161, %1187 : vector<1x256xf32>
    %c-2_i32_418 = arith.constant -2 : i32
    %1189 = vector.broadcast %c-2_i32_418 : i32 to vector<1x256xi32>
    %1190 = arith.addi %9, %1189 : vector<1x256xi32>
    %c0_i32_419 = arith.constant 0 : i32
    %1191 = vector.broadcast %c0_i32_419 : i32 to vector<1x256xi32>
    %1192 = arith.cmpi sge, %1190, %1191 : vector<1x256xi32>
    %c-2_i32_420 = arith.constant -2 : i32
    %1193 = vector.broadcast %c-2_i32_420 : i32 to vector<1x256xi32>
    %1194 = arith.addi %9, %1193 : vector<1x256xi32>
    %c16_i32_421 = arith.constant 16 : i32
    %1195 = vector.broadcast %c16_i32_421 : i32 to vector<1x256xi32>
    %1196 = arith.cmpi slt, %1194, %1195 : vector<1x256xi32>
    %1197 = arith.andi %1192, %1196 : vector<1x256xi1>
    %1198 = arith.andi %1170, %1197 : vector<1x256xi1>
    %c2_i32_422 = arith.constant 2 : i32
    %1199 = tpu.dynamic_rotate %1171 by %c2_i32_422 dim 1 : vector<1x256xf32>, i32 -> vector<1x256xf32>
    %cst_423 = arith.constant 0.000000e+00 : f32
    %1200 = vector.broadcast %cst_423 : f32 to vector<1x256xf32>
    %1201 = arith.select %1198, %1199, %1200 : vector<1x256xi1>, vector<1x256xf32>
    %c64 = arith.constant 64 : index
    %1202 = memref.load %arg2[%c64] : memref<98xf32, #tpu.memory_space<smem>>
    %1203 = vector.broadcast %1202 : f32 to vector<1x256xf32>
    %1204 = arith.mulf %1201, %1203 : vector<1x256xf32>
    %1205 = arith.addf %1188, %1204 : vector<1x256xf32>
    %c-1_i32_424 = arith.constant -1 : i32
    %1206 = vector.broadcast %c-1_i32_424 : i32 to vector<1x256xi32>
    %1207 = arith.addi %9, %1206 : vector<1x256xi32>
    %c0_i32_425 = arith.constant 0 : i32
    %1208 = vector.broadcast %c0_i32_425 : i32 to vector<1x256xi32>
    %1209 = arith.cmpi sge, %1207, %1208 : vector<1x256xi32>
    %c-1_i32_426 = arith.constant -1 : i32
    %1210 = vector.broadcast %c-1_i32_426 : i32 to vector<1x256xi32>
    %1211 = arith.addi %9, %1210 : vector<1x256xi32>
    %c16_i32_427 = arith.constant 16 : i32
    %1212 = vector.broadcast %c16_i32_427 : i32 to vector<1x256xi32>
    %1213 = arith.cmpi slt, %1211, %1212 : vector<1x256xi32>
    %1214 = arith.andi %1209, %1213 : vector<1x256xi1>
    %1215 = arith.andi %1170, %1214 : vector<1x256xi1>
    %c1_i32_428 = arith.constant 1 : i32
    %1216 = tpu.dynamic_rotate %1171 by %c1_i32_428 dim 1 : vector<1x256xf32>, i32 -> vector<1x256xf32>
    %cst_429 = arith.constant 0.000000e+00 : f32
    %1217 = vector.broadcast %cst_429 : f32 to vector<1x256xf32>
    %1218 = arith.select %1215, %1216, %1217 : vector<1x256xi1>, vector<1x256xf32>
    %c65 = arith.constant 65 : index
    %1219 = memref.load %arg2[%c65] : memref<98xf32, #tpu.memory_space<smem>>
    %1220 = vector.broadcast %1219 : f32 to vector<1x256xf32>
    %1221 = arith.mulf %1218, %1220 : vector<1x256xf32>
    %1222 = arith.addf %1205, %1221 : vector<1x256xf32>
    %c0_i32_430 = arith.constant 0 : i32
    %1223 = vector.broadcast %c0_i32_430 : i32 to vector<1x256xi32>
    %1224 = arith.addi %9, %1223 : vector<1x256xi32>
    %c0_i32_431 = arith.constant 0 : i32
    %1225 = vector.broadcast %c0_i32_431 : i32 to vector<1x256xi32>
    %1226 = arith.cmpi sge, %1224, %1225 : vector<1x256xi32>
    %c0_i32_432 = arith.constant 0 : i32
    %1227 = vector.broadcast %c0_i32_432 : i32 to vector<1x256xi32>
    %1228 = arith.addi %9, %1227 : vector<1x256xi32>
    %c16_i32_433 = arith.constant 16 : i32
    %1229 = vector.broadcast %c16_i32_433 : i32 to vector<1x256xi32>
    %1230 = arith.cmpi slt, %1228, %1229 : vector<1x256xi32>
    %1231 = arith.andi %1226, %1230 : vector<1x256xi1>
    %1232 = arith.andi %1170, %1231 : vector<1x256xi1>
    %cst_434 = arith.constant 0.000000e+00 : f32
    %1233 = vector.broadcast %cst_434 : f32 to vector<1x256xf32>
    %1234 = arith.select %1232, %1171, %1233 : vector<1x256xi1>, vector<1x256xf32>
    %c66 = arith.constant 66 : index
    %1235 = memref.load %arg2[%c66] : memref<98xf32, #tpu.memory_space<smem>>
    %1236 = vector.broadcast %1235 : f32 to vector<1x256xf32>
    %1237 = arith.mulf %1234, %1236 : vector<1x256xf32>
    %1238 = arith.addf %1222, %1237 : vector<1x256xf32>
    %c1_i32_435 = arith.constant 1 : i32
    %1239 = vector.broadcast %c1_i32_435 : i32 to vector<1x256xi32>
    %1240 = arith.addi %9, %1239 : vector<1x256xi32>
    %c0_i32_436 = arith.constant 0 : i32
    %1241 = vector.broadcast %c0_i32_436 : i32 to vector<1x256xi32>
    %1242 = arith.cmpi sge, %1240, %1241 : vector<1x256xi32>
    %c1_i32_437 = arith.constant 1 : i32
    %1243 = vector.broadcast %c1_i32_437 : i32 to vector<1x256xi32>
    %1244 = arith.addi %9, %1243 : vector<1x256xi32>
    %c16_i32_438 = arith.constant 16 : i32
    %1245 = vector.broadcast %c16_i32_438 : i32 to vector<1x256xi32>
    %1246 = arith.cmpi slt, %1244, %1245 : vector<1x256xi32>
    %1247 = arith.andi %1242, %1246 : vector<1x256xi1>
    %1248 = arith.andi %1170, %1247 : vector<1x256xi1>
    %c255_i32_439 = arith.constant 255 : i32
    %1249 = tpu.dynamic_rotate %1171 by %c255_i32_439 dim 1 : vector<1x256xf32>, i32 -> vector<1x256xf32>
    %cst_440 = arith.constant 0.000000e+00 : f32
    %1250 = vector.broadcast %cst_440 : f32 to vector<1x256xf32>
    %1251 = arith.select %1248, %1249, %1250 : vector<1x256xi1>, vector<1x256xf32>
    %c67 = arith.constant 67 : index
    %1252 = memref.load %arg2[%c67] : memref<98xf32, #tpu.memory_space<smem>>
    %1253 = vector.broadcast %1252 : f32 to vector<1x256xf32>
    %1254 = arith.mulf %1251, %1253 : vector<1x256xf32>
    %1255 = arith.addf %1238, %1254 : vector<1x256xf32>
    %c2_i32_441 = arith.constant 2 : i32
    %1256 = vector.broadcast %c2_i32_441 : i32 to vector<1x256xi32>
    %1257 = arith.addi %9, %1256 : vector<1x256xi32>
    %c0_i32_442 = arith.constant 0 : i32
    %1258 = vector.broadcast %c0_i32_442 : i32 to vector<1x256xi32>
    %1259 = arith.cmpi sge, %1257, %1258 : vector<1x256xi32>
    %c2_i32_443 = arith.constant 2 : i32
    %1260 = vector.broadcast %c2_i32_443 : i32 to vector<1x256xi32>
    %1261 = arith.addi %9, %1260 : vector<1x256xi32>
    %c16_i32_444 = arith.constant 16 : i32
    %1262 = vector.broadcast %c16_i32_444 : i32 to vector<1x256xi32>
    %1263 = arith.cmpi slt, %1261, %1262 : vector<1x256xi32>
    %1264 = arith.andi %1259, %1263 : vector<1x256xi1>
    %1265 = arith.andi %1170, %1264 : vector<1x256xi1>
    %c254_i32_445 = arith.constant 254 : i32
    %1266 = tpu.dynamic_rotate %1171 by %c254_i32_445 dim 1 : vector<1x256xf32>, i32 -> vector<1x256xf32>
    %cst_446 = arith.constant 0.000000e+00 : f32
    %1267 = vector.broadcast %cst_446 : f32 to vector<1x256xf32>
    %1268 = arith.select %1265, %1266, %1267 : vector<1x256xi1>, vector<1x256xf32>
    %c68 = arith.constant 68 : index
    %1269 = memref.load %arg2[%c68] : memref<98xf32, #tpu.memory_space<smem>>
    %1270 = vector.broadcast %1269 : f32 to vector<1x256xf32>
    %1271 = arith.mulf %1268, %1270 : vector<1x256xf32>
    %1272 = arith.addf %1255, %1271 : vector<1x256xf32>
    %c3_i32_447 = arith.constant 3 : i32
    %1273 = vector.broadcast %c3_i32_447 : i32 to vector<1x256xi32>
    %1274 = arith.addi %9, %1273 : vector<1x256xi32>
    %c0_i32_448 = arith.constant 0 : i32
    %1275 = vector.broadcast %c0_i32_448 : i32 to vector<1x256xi32>
    %1276 = arith.cmpi sge, %1274, %1275 : vector<1x256xi32>
    %c3_i32_449 = arith.constant 3 : i32
    %1277 = vector.broadcast %c3_i32_449 : i32 to vector<1x256xi32>
    %1278 = arith.addi %9, %1277 : vector<1x256xi32>
    %c16_i32_450 = arith.constant 16 : i32
    %1279 = vector.broadcast %c16_i32_450 : i32 to vector<1x256xi32>
    %1280 = arith.cmpi slt, %1278, %1279 : vector<1x256xi32>
    %1281 = arith.andi %1276, %1280 : vector<1x256xi1>
    %1282 = arith.andi %1170, %1281 : vector<1x256xi1>
    %c253_i32_451 = arith.constant 253 : i32
    %1283 = tpu.dynamic_rotate %1171 by %c253_i32_451 dim 1 : vector<1x256xf32>, i32 -> vector<1x256xf32>
    %cst_452 = arith.constant 0.000000e+00 : f32
    %1284 = vector.broadcast %cst_452 : f32 to vector<1x256xf32>
    %1285 = arith.select %1282, %1283, %1284 : vector<1x256xi1>, vector<1x256xf32>
    %c69 = arith.constant 69 : index
    %1286 = memref.load %arg2[%c69] : memref<98xf32, #tpu.memory_space<smem>>
    %1287 = vector.broadcast %1286 : f32 to vector<1x256xf32>
    %1288 = arith.mulf %1285, %1287 : vector<1x256xf32>
    %1289 = arith.addf %1272, %1288 : vector<1x256xf32>
    %c0_i32_453 = arith.constant 0 : i32
    %1290 = vector.broadcast %c0_i32_453 : i32 to vector<1x256xi32>
    %1291 = arith.addi %8, %1290 : vector<1x256xi32>
    %c0_i32_454 = arith.constant 0 : i32
    %1292 = vector.broadcast %c0_i32_454 : i32 to vector<1x256xi32>
    %1293 = arith.cmpi sge, %1291, %1292 : vector<1x256xi32>
    %c0_i32_455 = arith.constant 0 : i32
    %1294 = vector.broadcast %c0_i32_455 : i32 to vector<1x256xi32>
    %1295 = arith.addi %8, %1294 : vector<1x256xi32>
    %c16_i32_456 = arith.constant 16 : i32
    %1296 = vector.broadcast %c16_i32_456 : i32 to vector<1x256xi32>
    %1297 = arith.cmpi slt, %1295, %1296 : vector<1x256xi32>
    %1298 = arith.andi %1293, %1297 : vector<1x256xi1>
    %c-3_i32_457 = arith.constant -3 : i32
    %1299 = vector.broadcast %c-3_i32_457 : i32 to vector<1x256xi32>
    %1300 = arith.addi %9, %1299 : vector<1x256xi32>
    %c0_i32_458 = arith.constant 0 : i32
    %1301 = vector.broadcast %c0_i32_458 : i32 to vector<1x256xi32>
    %1302 = arith.cmpi sge, %1300, %1301 : vector<1x256xi32>
    %c-3_i32_459 = arith.constant -3 : i32
    %1303 = vector.broadcast %c-3_i32_459 : i32 to vector<1x256xi32>
    %1304 = arith.addi %9, %1303 : vector<1x256xi32>
    %c16_i32_460 = arith.constant 16 : i32
    %1305 = vector.broadcast %c16_i32_460 : i32 to vector<1x256xi32>
    %1306 = arith.cmpi slt, %1304, %1305 : vector<1x256xi32>
    %1307 = arith.andi %1302, %1306 : vector<1x256xi1>
    %1308 = arith.andi %1298, %1307 : vector<1x256xi1>
    %c3_i32_461 = arith.constant 3 : i32
    %1309 = tpu.dynamic_rotate %5 by %c3_i32_461 dim 1 : vector<1x256xf32>, i32 -> vector<1x256xf32>
    %cst_462 = arith.constant 0.000000e+00 : f32
    %1310 = vector.broadcast %cst_462 : f32 to vector<1x256xf32>
    %1311 = arith.select %1308, %1309, %1310 : vector<1x256xi1>, vector<1x256xf32>
    %c70 = arith.constant 70 : index
    %1312 = memref.load %arg2[%c70] : memref<98xf32, #tpu.memory_space<smem>>
    %1313 = vector.broadcast %1312 : f32 to vector<1x256xf32>
    %1314 = arith.mulf %1311, %1313 : vector<1x256xf32>
    %1315 = arith.addf %1289, %1314 : vector<1x256xf32>
    %c-2_i32_463 = arith.constant -2 : i32
    %1316 = vector.broadcast %c-2_i32_463 : i32 to vector<1x256xi32>
    %1317 = arith.addi %9, %1316 : vector<1x256xi32>
    %c0_i32_464 = arith.constant 0 : i32
    %1318 = vector.broadcast %c0_i32_464 : i32 to vector<1x256xi32>
    %1319 = arith.cmpi sge, %1317, %1318 : vector<1x256xi32>
    %c-2_i32_465 = arith.constant -2 : i32
    %1320 = vector.broadcast %c-2_i32_465 : i32 to vector<1x256xi32>
    %1321 = arith.addi %9, %1320 : vector<1x256xi32>
    %c16_i32_466 = arith.constant 16 : i32
    %1322 = vector.broadcast %c16_i32_466 : i32 to vector<1x256xi32>
    %1323 = arith.cmpi slt, %1321, %1322 : vector<1x256xi32>
    %1324 = arith.andi %1319, %1323 : vector<1x256xi1>
    %1325 = arith.andi %1298, %1324 : vector<1x256xi1>
    %c2_i32_467 = arith.constant 2 : i32
    %1326 = tpu.dynamic_rotate %5 by %c2_i32_467 dim 1 : vector<1x256xf32>, i32 -> vector<1x256xf32>
    %cst_468 = arith.constant 0.000000e+00 : f32
    %1327 = vector.broadcast %cst_468 : f32 to vector<1x256xf32>
    %1328 = arith.select %1325, %1326, %1327 : vector<1x256xi1>, vector<1x256xf32>
    %c71 = arith.constant 71 : index
    %1329 = memref.load %arg2[%c71] : memref<98xf32, #tpu.memory_space<smem>>
    %1330 = vector.broadcast %1329 : f32 to vector<1x256xf32>
    %1331 = arith.mulf %1328, %1330 : vector<1x256xf32>
    %1332 = arith.addf %1315, %1331 : vector<1x256xf32>
    %c-1_i32_469 = arith.constant -1 : i32
    %1333 = vector.broadcast %c-1_i32_469 : i32 to vector<1x256xi32>
    %1334 = arith.addi %9, %1333 : vector<1x256xi32>
    %c0_i32_470 = arith.constant 0 : i32
    %1335 = vector.broadcast %c0_i32_470 : i32 to vector<1x256xi32>
    %1336 = arith.cmpi sge, %1334, %1335 : vector<1x256xi32>
    %c-1_i32_471 = arith.constant -1 : i32
    %1337 = vector.broadcast %c-1_i32_471 : i32 to vector<1x256xi32>
    %1338 = arith.addi %9, %1337 : vector<1x256xi32>
    %c16_i32_472 = arith.constant 16 : i32
    %1339 = vector.broadcast %c16_i32_472 : i32 to vector<1x256xi32>
    %1340 = arith.cmpi slt, %1338, %1339 : vector<1x256xi32>
    %1341 = arith.andi %1336, %1340 : vector<1x256xi1>
    %1342 = arith.andi %1298, %1341 : vector<1x256xi1>
    %c1_i32_473 = arith.constant 1 : i32
    %1343 = tpu.dynamic_rotate %5 by %c1_i32_473 dim 1 : vector<1x256xf32>, i32 -> vector<1x256xf32>
    %cst_474 = arith.constant 0.000000e+00 : f32
    %1344 = vector.broadcast %cst_474 : f32 to vector<1x256xf32>
    %1345 = arith.select %1342, %1343, %1344 : vector<1x256xi1>, vector<1x256xf32>
    %c72 = arith.constant 72 : index
    %1346 = memref.load %arg2[%c72] : memref<98xf32, #tpu.memory_space<smem>>
    %1347 = vector.broadcast %1346 : f32 to vector<1x256xf32>
    %1348 = arith.mulf %1345, %1347 : vector<1x256xf32>
    %1349 = arith.addf %1332, %1348 : vector<1x256xf32>
    %c0_i32_475 = arith.constant 0 : i32
    %1350 = vector.broadcast %c0_i32_475 : i32 to vector<1x256xi32>
    %1351 = arith.addi %9, %1350 : vector<1x256xi32>
    %c0_i32_476 = arith.constant 0 : i32
    %1352 = vector.broadcast %c0_i32_476 : i32 to vector<1x256xi32>
    %1353 = arith.cmpi sge, %1351, %1352 : vector<1x256xi32>
    %c0_i32_477 = arith.constant 0 : i32
    %1354 = vector.broadcast %c0_i32_477 : i32 to vector<1x256xi32>
    %1355 = arith.addi %9, %1354 : vector<1x256xi32>
    %c16_i32_478 = arith.constant 16 : i32
    %1356 = vector.broadcast %c16_i32_478 : i32 to vector<1x256xi32>
    %1357 = arith.cmpi slt, %1355, %1356 : vector<1x256xi32>
    %1358 = arith.andi %1353, %1357 : vector<1x256xi1>
    %1359 = arith.andi %1298, %1358 : vector<1x256xi1>
    %cst_479 = arith.constant 0.000000e+00 : f32
    %1360 = vector.broadcast %cst_479 : f32 to vector<1x256xf32>
    %1361 = arith.select %1359, %5, %1360 : vector<1x256xi1>, vector<1x256xf32>
    %c73 = arith.constant 73 : index
    %1362 = memref.load %arg2[%c73] : memref<98xf32, #tpu.memory_space<smem>>
    %1363 = vector.broadcast %1362 : f32 to vector<1x256xf32>
    %1364 = arith.mulf %1361, %1363 : vector<1x256xf32>
    %1365 = arith.addf %1349, %1364 : vector<1x256xf32>
    %c1_i32_480 = arith.constant 1 : i32
    %1366 = vector.broadcast %c1_i32_480 : i32 to vector<1x256xi32>
    %1367 = arith.addi %9, %1366 : vector<1x256xi32>
    %c0_i32_481 = arith.constant 0 : i32
    %1368 = vector.broadcast %c0_i32_481 : i32 to vector<1x256xi32>
    %1369 = arith.cmpi sge, %1367, %1368 : vector<1x256xi32>
    %c1_i32_482 = arith.constant 1 : i32
    %1370 = vector.broadcast %c1_i32_482 : i32 to vector<1x256xi32>
    %1371 = arith.addi %9, %1370 : vector<1x256xi32>
    %c16_i32_483 = arith.constant 16 : i32
    %1372 = vector.broadcast %c16_i32_483 : i32 to vector<1x256xi32>
    %1373 = arith.cmpi slt, %1371, %1372 : vector<1x256xi32>
    %1374 = arith.andi %1369, %1373 : vector<1x256xi1>
    %1375 = arith.andi %1298, %1374 : vector<1x256xi1>
    %c255_i32_484 = arith.constant 255 : i32
    %1376 = tpu.dynamic_rotate %5 by %c255_i32_484 dim 1 : vector<1x256xf32>, i32 -> vector<1x256xf32>
    %cst_485 = arith.constant 0.000000e+00 : f32
    %1377 = vector.broadcast %cst_485 : f32 to vector<1x256xf32>
    %1378 = arith.select %1375, %1376, %1377 : vector<1x256xi1>, vector<1x256xf32>
    %c74 = arith.constant 74 : index
    %1379 = memref.load %arg2[%c74] : memref<98xf32, #tpu.memory_space<smem>>
    %1380 = vector.broadcast %1379 : f32 to vector<1x256xf32>
    %1381 = arith.mulf %1378, %1380 : vector<1x256xf32>
    %1382 = arith.addf %1365, %1381 : vector<1x256xf32>
    %c2_i32_486 = arith.constant 2 : i32
    %1383 = vector.broadcast %c2_i32_486 : i32 to vector<1x256xi32>
    %1384 = arith.addi %9, %1383 : vector<1x256xi32>
    %c0_i32_487 = arith.constant 0 : i32
    %1385 = vector.broadcast %c0_i32_487 : i32 to vector<1x256xi32>
    %1386 = arith.cmpi sge, %1384, %1385 : vector<1x256xi32>
    %c2_i32_488 = arith.constant 2 : i32
    %1387 = vector.broadcast %c2_i32_488 : i32 to vector<1x256xi32>
    %1388 = arith.addi %9, %1387 : vector<1x256xi32>
    %c16_i32_489 = arith.constant 16 : i32
    %1389 = vector.broadcast %c16_i32_489 : i32 to vector<1x256xi32>
    %1390 = arith.cmpi slt, %1388, %1389 : vector<1x256xi32>
    %1391 = arith.andi %1386, %1390 : vector<1x256xi1>
    %1392 = arith.andi %1298, %1391 : vector<1x256xi1>
    %c254_i32_490 = arith.constant 254 : i32
    %1393 = tpu.dynamic_rotate %5 by %c254_i32_490 dim 1 : vector<1x256xf32>, i32 -> vector<1x256xf32>
    %cst_491 = arith.constant 0.000000e+00 : f32
    %1394 = vector.broadcast %cst_491 : f32 to vector<1x256xf32>
    %1395 = arith.select %1392, %1393, %1394 : vector<1x256xi1>, vector<1x256xf32>
    %c75 = arith.constant 75 : index
    %1396 = memref.load %arg2[%c75] : memref<98xf32, #tpu.memory_space<smem>>
    %1397 = vector.broadcast %1396 : f32 to vector<1x256xf32>
    %1398 = arith.mulf %1395, %1397 : vector<1x256xf32>
    %1399 = arith.addf %1382, %1398 : vector<1x256xf32>
    %c3_i32_492 = arith.constant 3 : i32
    %1400 = vector.broadcast %c3_i32_492 : i32 to vector<1x256xi32>
    %1401 = arith.addi %9, %1400 : vector<1x256xi32>
    %c0_i32_493 = arith.constant 0 : i32
    %1402 = vector.broadcast %c0_i32_493 : i32 to vector<1x256xi32>
    %1403 = arith.cmpi sge, %1401, %1402 : vector<1x256xi32>
    %c3_i32_494 = arith.constant 3 : i32
    %1404 = vector.broadcast %c3_i32_494 : i32 to vector<1x256xi32>
    %1405 = arith.addi %9, %1404 : vector<1x256xi32>
    %c16_i32_495 = arith.constant 16 : i32
    %1406 = vector.broadcast %c16_i32_495 : i32 to vector<1x256xi32>
    %1407 = arith.cmpi slt, %1405, %1406 : vector<1x256xi32>
    %1408 = arith.andi %1403, %1407 : vector<1x256xi1>
    %1409 = arith.andi %1298, %1408 : vector<1x256xi1>
    %c253_i32_496 = arith.constant 253 : i32
    %1410 = tpu.dynamic_rotate %5 by %c253_i32_496 dim 1 : vector<1x256xf32>, i32 -> vector<1x256xf32>
    %cst_497 = arith.constant 0.000000e+00 : f32
    %1411 = vector.broadcast %cst_497 : f32 to vector<1x256xf32>
    %1412 = arith.select %1409, %1410, %1411 : vector<1x256xi1>, vector<1x256xf32>
    %c76 = arith.constant 76 : index
    %1413 = memref.load %arg2[%c76] : memref<98xf32, #tpu.memory_space<smem>>
    %1414 = vector.broadcast %1413 : f32 to vector<1x256xf32>
    %1415 = arith.mulf %1412, %1414 : vector<1x256xf32>
    %1416 = arith.addf %1399, %1415 : vector<1x256xf32>
    %c1_i32_498 = arith.constant 1 : i32
    %1417 = vector.broadcast %c1_i32_498 : i32 to vector<1x256xi32>
    %1418 = arith.addi %8, %1417 : vector<1x256xi32>
    %c0_i32_499 = arith.constant 0 : i32
    %1419 = vector.broadcast %c0_i32_499 : i32 to vector<1x256xi32>
    %1420 = arith.cmpi sge, %1418, %1419 : vector<1x256xi32>
    %c1_i32_500 = arith.constant 1 : i32
    %1421 = vector.broadcast %c1_i32_500 : i32 to vector<1x256xi32>
    %1422 = arith.addi %8, %1421 : vector<1x256xi32>
    %c16_i32_501 = arith.constant 16 : i32
    %1423 = vector.broadcast %c16_i32_501 : i32 to vector<1x256xi32>
    %1424 = arith.cmpi slt, %1422, %1423 : vector<1x256xi32>
    %1425 = arith.andi %1420, %1424 : vector<1x256xi1>
    %c240_i32_502 = arith.constant 240 : i32
    %1426 = tpu.dynamic_rotate %5 by %c240_i32_502 dim 1 : vector<1x256xf32>, i32 -> vector<1x256xf32>
    %c-3_i32_503 = arith.constant -3 : i32
    %1427 = vector.broadcast %c-3_i32_503 : i32 to vector<1x256xi32>
    %1428 = arith.addi %9, %1427 : vector<1x256xi32>
    %c0_i32_504 = arith.constant 0 : i32
    %1429 = vector.broadcast %c0_i32_504 : i32 to vector<1x256xi32>
    %1430 = arith.cmpi sge, %1428, %1429 : vector<1x256xi32>
    %c-3_i32_505 = arith.constant -3 : i32
    %1431 = vector.broadcast %c-3_i32_505 : i32 to vector<1x256xi32>
    %1432 = arith.addi %9, %1431 : vector<1x256xi32>
    %c16_i32_506 = arith.constant 16 : i32
    %1433 = vector.broadcast %c16_i32_506 : i32 to vector<1x256xi32>
    %1434 = arith.cmpi slt, %1432, %1433 : vector<1x256xi32>
    %1435 = arith.andi %1430, %1434 : vector<1x256xi1>
    %1436 = arith.andi %1425, %1435 : vector<1x256xi1>
    %c3_i32_507 = arith.constant 3 : i32
    %1437 = tpu.dynamic_rotate %1426 by %c3_i32_507 dim 1 : vector<1x256xf32>, i32 -> vector<1x256xf32>
    %cst_508 = arith.constant 0.000000e+00 : f32
    %1438 = vector.broadcast %cst_508 : f32 to vector<1x256xf32>
    %1439 = arith.select %1436, %1437, %1438 : vector<1x256xi1>, vector<1x256xf32>
    %c77 = arith.constant 77 : index
    %1440 = memref.load %arg2[%c77] : memref<98xf32, #tpu.memory_space<smem>>
    %1441 = vector.broadcast %1440 : f32 to vector<1x256xf32>
    %1442 = arith.mulf %1439, %1441 : vector<1x256xf32>
    %1443 = arith.addf %1416, %1442 : vector<1x256xf32>
    %c-2_i32_509 = arith.constant -2 : i32
    %1444 = vector.broadcast %c-2_i32_509 : i32 to vector<1x256xi32>
    %1445 = arith.addi %9, %1444 : vector<1x256xi32>
    %c0_i32_510 = arith.constant 0 : i32
    %1446 = vector.broadcast %c0_i32_510 : i32 to vector<1x256xi32>
    %1447 = arith.cmpi sge, %1445, %1446 : vector<1x256xi32>
    %c-2_i32_511 = arith.constant -2 : i32
    %1448 = vector.broadcast %c-2_i32_511 : i32 to vector<1x256xi32>
    %1449 = arith.addi %9, %1448 : vector<1x256xi32>
    %c16_i32_512 = arith.constant 16 : i32
    %1450 = vector.broadcast %c16_i32_512 : i32 to vector<1x256xi32>
    %1451 = arith.cmpi slt, %1449, %1450 : vector<1x256xi32>
    %1452 = arith.andi %1447, %1451 : vector<1x256xi1>
    %1453 = arith.andi %1425, %1452 : vector<1x256xi1>
    %c2_i32_513 = arith.constant 2 : i32
    %1454 = tpu.dynamic_rotate %1426 by %c2_i32_513 dim 1 : vector<1x256xf32>, i32 -> vector<1x256xf32>
    %cst_514 = arith.constant 0.000000e+00 : f32
    %1455 = vector.broadcast %cst_514 : f32 to vector<1x256xf32>
    %1456 = arith.select %1453, %1454, %1455 : vector<1x256xi1>, vector<1x256xf32>
    %c78 = arith.constant 78 : index
    %1457 = memref.load %arg2[%c78] : memref<98xf32, #tpu.memory_space<smem>>
    %1458 = vector.broadcast %1457 : f32 to vector<1x256xf32>
    %1459 = arith.mulf %1456, %1458 : vector<1x256xf32>
    %1460 = arith.addf %1443, %1459 : vector<1x256xf32>
    %c-1_i32_515 = arith.constant -1 : i32
    %1461 = vector.broadcast %c-1_i32_515 : i32 to vector<1x256xi32>
    %1462 = arith.addi %9, %1461 : vector<1x256xi32>
    %c0_i32_516 = arith.constant 0 : i32
    %1463 = vector.broadcast %c0_i32_516 : i32 to vector<1x256xi32>
    %1464 = arith.cmpi sge, %1462, %1463 : vector<1x256xi32>
    %c-1_i32_517 = arith.constant -1 : i32
    %1465 = vector.broadcast %c-1_i32_517 : i32 to vector<1x256xi32>
    %1466 = arith.addi %9, %1465 : vector<1x256xi32>
    %c16_i32_518 = arith.constant 16 : i32
    %1467 = vector.broadcast %c16_i32_518 : i32 to vector<1x256xi32>
    %1468 = arith.cmpi slt, %1466, %1467 : vector<1x256xi32>
    %1469 = arith.andi %1464, %1468 : vector<1x256xi1>
    %1470 = arith.andi %1425, %1469 : vector<1x256xi1>
    %c1_i32_519 = arith.constant 1 : i32
    %1471 = tpu.dynamic_rotate %1426 by %c1_i32_519 dim 1 : vector<1x256xf32>, i32 -> vector<1x256xf32>
    %cst_520 = arith.constant 0.000000e+00 : f32
    %1472 = vector.broadcast %cst_520 : f32 to vector<1x256xf32>
    %1473 = arith.select %1470, %1471, %1472 : vector<1x256xi1>, vector<1x256xf32>
    %c79 = arith.constant 79 : index
    %1474 = memref.load %arg2[%c79] : memref<98xf32, #tpu.memory_space<smem>>
    %1475 = vector.broadcast %1474 : f32 to vector<1x256xf32>
    %1476 = arith.mulf %1473, %1475 : vector<1x256xf32>
    %1477 = arith.addf %1460, %1476 : vector<1x256xf32>
    %c0_i32_521 = arith.constant 0 : i32
    %1478 = vector.broadcast %c0_i32_521 : i32 to vector<1x256xi32>
    %1479 = arith.addi %9, %1478 : vector<1x256xi32>
    %c0_i32_522 = arith.constant 0 : i32
    %1480 = vector.broadcast %c0_i32_522 : i32 to vector<1x256xi32>
    %1481 = arith.cmpi sge, %1479, %1480 : vector<1x256xi32>
    %c0_i32_523 = arith.constant 0 : i32
    %1482 = vector.broadcast %c0_i32_523 : i32 to vector<1x256xi32>
    %1483 = arith.addi %9, %1482 : vector<1x256xi32>
    %c16_i32_524 = arith.constant 16 : i32
    %1484 = vector.broadcast %c16_i32_524 : i32 to vector<1x256xi32>
    %1485 = arith.cmpi slt, %1483, %1484 : vector<1x256xi32>
    %1486 = arith.andi %1481, %1485 : vector<1x256xi1>
    %1487 = arith.andi %1425, %1486 : vector<1x256xi1>
    %cst_525 = arith.constant 0.000000e+00 : f32
    %1488 = vector.broadcast %cst_525 : f32 to vector<1x256xf32>
    %1489 = arith.select %1487, %1426, %1488 : vector<1x256xi1>, vector<1x256xf32>
    %c80 = arith.constant 80 : index
    %1490 = memref.load %arg2[%c80] : memref<98xf32, #tpu.memory_space<smem>>
    %1491 = vector.broadcast %1490 : f32 to vector<1x256xf32>
    %1492 = arith.mulf %1489, %1491 : vector<1x256xf32>
    %1493 = arith.addf %1477, %1492 : vector<1x256xf32>
    %c1_i32_526 = arith.constant 1 : i32
    %1494 = vector.broadcast %c1_i32_526 : i32 to vector<1x256xi32>
    %1495 = arith.addi %9, %1494 : vector<1x256xi32>
    %c0_i32_527 = arith.constant 0 : i32
    %1496 = vector.broadcast %c0_i32_527 : i32 to vector<1x256xi32>
    %1497 = arith.cmpi sge, %1495, %1496 : vector<1x256xi32>
    %c1_i32_528 = arith.constant 1 : i32
    %1498 = vector.broadcast %c1_i32_528 : i32 to vector<1x256xi32>
    %1499 = arith.addi %9, %1498 : vector<1x256xi32>
    %c16_i32_529 = arith.constant 16 : i32
    %1500 = vector.broadcast %c16_i32_529 : i32 to vector<1x256xi32>
    %1501 = arith.cmpi slt, %1499, %1500 : vector<1x256xi32>
    %1502 = arith.andi %1497, %1501 : vector<1x256xi1>
    %1503 = arith.andi %1425, %1502 : vector<1x256xi1>
    %c255_i32_530 = arith.constant 255 : i32
    %1504 = tpu.dynamic_rotate %1426 by %c255_i32_530 dim 1 : vector<1x256xf32>, i32 -> vector<1x256xf32>
    %cst_531 = arith.constant 0.000000e+00 : f32
    %1505 = vector.broadcast %cst_531 : f32 to vector<1x256xf32>
    %1506 = arith.select %1503, %1504, %1505 : vector<1x256xi1>, vector<1x256xf32>
    %c81 = arith.constant 81 : index
    %1507 = memref.load %arg2[%c81] : memref<98xf32, #tpu.memory_space<smem>>
    %1508 = vector.broadcast %1507 : f32 to vector<1x256xf32>
    %1509 = arith.mulf %1506, %1508 : vector<1x256xf32>
    %1510 = arith.addf %1493, %1509 : vector<1x256xf32>
    %c2_i32_532 = arith.constant 2 : i32
    %1511 = vector.broadcast %c2_i32_532 : i32 to vector<1x256xi32>
    %1512 = arith.addi %9, %1511 : vector<1x256xi32>
    %c0_i32_533 = arith.constant 0 : i32
    %1513 = vector.broadcast %c0_i32_533 : i32 to vector<1x256xi32>
    %1514 = arith.cmpi sge, %1512, %1513 : vector<1x256xi32>
    %c2_i32_534 = arith.constant 2 : i32
    %1515 = vector.broadcast %c2_i32_534 : i32 to vector<1x256xi32>
    %1516 = arith.addi %9, %1515 : vector<1x256xi32>
    %c16_i32_535 = arith.constant 16 : i32
    %1517 = vector.broadcast %c16_i32_535 : i32 to vector<1x256xi32>
    %1518 = arith.cmpi slt, %1516, %1517 : vector<1x256xi32>
    %1519 = arith.andi %1514, %1518 : vector<1x256xi1>
    %1520 = arith.andi %1425, %1519 : vector<1x256xi1>
    %c254_i32_536 = arith.constant 254 : i32
    %1521 = tpu.dynamic_rotate %1426 by %c254_i32_536 dim 1 : vector<1x256xf32>, i32 -> vector<1x256xf32>
    %cst_537 = arith.constant 0.000000e+00 : f32
    %1522 = vector.broadcast %cst_537 : f32 to vector<1x256xf32>
    %1523 = arith.select %1520, %1521, %1522 : vector<1x256xi1>, vector<1x256xf32>
    %c82 = arith.constant 82 : index
    %1524 = memref.load %arg2[%c82] : memref<98xf32, #tpu.memory_space<smem>>
    %1525 = vector.broadcast %1524 : f32 to vector<1x256xf32>
    %1526 = arith.mulf %1523, %1525 : vector<1x256xf32>
    %1527 = arith.addf %1510, %1526 : vector<1x256xf32>
    %c3_i32_538 = arith.constant 3 : i32
    %1528 = vector.broadcast %c3_i32_538 : i32 to vector<1x256xi32>
    %1529 = arith.addi %9, %1528 : vector<1x256xi32>
    %c0_i32_539 = arith.constant 0 : i32
    %1530 = vector.broadcast %c0_i32_539 : i32 to vector<1x256xi32>
    %1531 = arith.cmpi sge, %1529, %1530 : vector<1x256xi32>
    %c3_i32_540 = arith.constant 3 : i32
    %1532 = vector.broadcast %c3_i32_540 : i32 to vector<1x256xi32>
    %1533 = arith.addi %9, %1532 : vector<1x256xi32>
    %c16_i32_541 = arith.constant 16 : i32
    %1534 = vector.broadcast %c16_i32_541 : i32 to vector<1x256xi32>
    %1535 = arith.cmpi slt, %1533, %1534 : vector<1x256xi32>
    %1536 = arith.andi %1531, %1535 : vector<1x256xi1>
    %1537 = arith.andi %1425, %1536 : vector<1x256xi1>
    %c253_i32_542 = arith.constant 253 : i32
    %1538 = tpu.dynamic_rotate %1426 by %c253_i32_542 dim 1 : vector<1x256xf32>, i32 -> vector<1x256xf32>
    %cst_543 = arith.constant 0.000000e+00 : f32
    %1539 = vector.broadcast %cst_543 : f32 to vector<1x256xf32>
    %1540 = arith.select %1537, %1538, %1539 : vector<1x256xi1>, vector<1x256xf32>
    %c83 = arith.constant 83 : index
    %1541 = memref.load %arg2[%c83] : memref<98xf32, #tpu.memory_space<smem>>
    %1542 = vector.broadcast %1541 : f32 to vector<1x256xf32>
    %1543 = arith.mulf %1540, %1542 : vector<1x256xf32>
    %1544 = arith.addf %1527, %1543 : vector<1x256xf32>
    %c2_i32_544 = arith.constant 2 : i32
    %1545 = vector.broadcast %c2_i32_544 : i32 to vector<1x256xi32>
    %1546 = arith.addi %8, %1545 : vector<1x256xi32>
    %c0_i32_545 = arith.constant 0 : i32
    %1547 = vector.broadcast %c0_i32_545 : i32 to vector<1x256xi32>
    %1548 = arith.cmpi sge, %1546, %1547 : vector<1x256xi32>
    %c2_i32_546 = arith.constant 2 : i32
    %1549 = vector.broadcast %c2_i32_546 : i32 to vector<1x256xi32>
    %1550 = arith.addi %8, %1549 : vector<1x256xi32>
    %c16_i32_547 = arith.constant 16 : i32
    %1551 = vector.broadcast %c16_i32_547 : i32 to vector<1x256xi32>
    %1552 = arith.cmpi slt, %1550, %1551 : vector<1x256xi32>
    %1553 = arith.andi %1548, %1552 : vector<1x256xi1>
    %c224_i32_548 = arith.constant 224 : i32
    %1554 = tpu.dynamic_rotate %5 by %c224_i32_548 dim 1 : vector<1x256xf32>, i32 -> vector<1x256xf32>
    %c-3_i32_549 = arith.constant -3 : i32
    %1555 = vector.broadcast %c-3_i32_549 : i32 to vector<1x256xi32>
    %1556 = arith.addi %9, %1555 : vector<1x256xi32>
    %c0_i32_550 = arith.constant 0 : i32
    %1557 = vector.broadcast %c0_i32_550 : i32 to vector<1x256xi32>
    %1558 = arith.cmpi sge, %1556, %1557 : vector<1x256xi32>
    %c-3_i32_551 = arith.constant -3 : i32
    %1559 = vector.broadcast %c-3_i32_551 : i32 to vector<1x256xi32>
    %1560 = arith.addi %9, %1559 : vector<1x256xi32>
    %c16_i32_552 = arith.constant 16 : i32
    %1561 = vector.broadcast %c16_i32_552 : i32 to vector<1x256xi32>
    %1562 = arith.cmpi slt, %1560, %1561 : vector<1x256xi32>
    %1563 = arith.andi %1558, %1562 : vector<1x256xi1>
    %1564 = arith.andi %1553, %1563 : vector<1x256xi1>
    %c3_i32_553 = arith.constant 3 : i32
    %1565 = tpu.dynamic_rotate %1554 by %c3_i32_553 dim 1 : vector<1x256xf32>, i32 -> vector<1x256xf32>
    %cst_554 = arith.constant 0.000000e+00 : f32
    %1566 = vector.broadcast %cst_554 : f32 to vector<1x256xf32>
    %1567 = arith.select %1564, %1565, %1566 : vector<1x256xi1>, vector<1x256xf32>
    %c84 = arith.constant 84 : index
    %1568 = memref.load %arg2[%c84] : memref<98xf32, #tpu.memory_space<smem>>
    %1569 = vector.broadcast %1568 : f32 to vector<1x256xf32>
    %1570 = arith.mulf %1567, %1569 : vector<1x256xf32>
    %1571 = arith.addf %1544, %1570 : vector<1x256xf32>
    %c-2_i32_555 = arith.constant -2 : i32
    %1572 = vector.broadcast %c-2_i32_555 : i32 to vector<1x256xi32>
    %1573 = arith.addi %9, %1572 : vector<1x256xi32>
    %c0_i32_556 = arith.constant 0 : i32
    %1574 = vector.broadcast %c0_i32_556 : i32 to vector<1x256xi32>
    %1575 = arith.cmpi sge, %1573, %1574 : vector<1x256xi32>
    %c-2_i32_557 = arith.constant -2 : i32
    %1576 = vector.broadcast %c-2_i32_557 : i32 to vector<1x256xi32>
    %1577 = arith.addi %9, %1576 : vector<1x256xi32>
    %c16_i32_558 = arith.constant 16 : i32
    %1578 = vector.broadcast %c16_i32_558 : i32 to vector<1x256xi32>
    %1579 = arith.cmpi slt, %1577, %1578 : vector<1x256xi32>
    %1580 = arith.andi %1575, %1579 : vector<1x256xi1>
    %1581 = arith.andi %1553, %1580 : vector<1x256xi1>
    %c2_i32_559 = arith.constant 2 : i32
    %1582 = tpu.dynamic_rotate %1554 by %c2_i32_559 dim 1 : vector<1x256xf32>, i32 -> vector<1x256xf32>
    %cst_560 = arith.constant 0.000000e+00 : f32
    %1583 = vector.broadcast %cst_560 : f32 to vector<1x256xf32>
    %1584 = arith.select %1581, %1582, %1583 : vector<1x256xi1>, vector<1x256xf32>
    %c85 = arith.constant 85 : index
    %1585 = memref.load %arg2[%c85] : memref<98xf32, #tpu.memory_space<smem>>
    %1586 = vector.broadcast %1585 : f32 to vector<1x256xf32>
    %1587 = arith.mulf %1584, %1586 : vector<1x256xf32>
    %1588 = arith.addf %1571, %1587 : vector<1x256xf32>
    %c-1_i32_561 = arith.constant -1 : i32
    %1589 = vector.broadcast %c-1_i32_561 : i32 to vector<1x256xi32>
    %1590 = arith.addi %9, %1589 : vector<1x256xi32>
    %c0_i32_562 = arith.constant 0 : i32
    %1591 = vector.broadcast %c0_i32_562 : i32 to vector<1x256xi32>
    %1592 = arith.cmpi sge, %1590, %1591 : vector<1x256xi32>
    %c-1_i32_563 = arith.constant -1 : i32
    %1593 = vector.broadcast %c-1_i32_563 : i32 to vector<1x256xi32>
    %1594 = arith.addi %9, %1593 : vector<1x256xi32>
    %c16_i32_564 = arith.constant 16 : i32
    %1595 = vector.broadcast %c16_i32_564 : i32 to vector<1x256xi32>
    %1596 = arith.cmpi slt, %1594, %1595 : vector<1x256xi32>
    %1597 = arith.andi %1592, %1596 : vector<1x256xi1>
    %1598 = arith.andi %1553, %1597 : vector<1x256xi1>
    %c1_i32_565 = arith.constant 1 : i32
    %1599 = tpu.dynamic_rotate %1554 by %c1_i32_565 dim 1 : vector<1x256xf32>, i32 -> vector<1x256xf32>
    %cst_566 = arith.constant 0.000000e+00 : f32
    %1600 = vector.broadcast %cst_566 : f32 to vector<1x256xf32>
    %1601 = arith.select %1598, %1599, %1600 : vector<1x256xi1>, vector<1x256xf32>
    %c86 = arith.constant 86 : index
    %1602 = memref.load %arg2[%c86] : memref<98xf32, #tpu.memory_space<smem>>
    %1603 = vector.broadcast %1602 : f32 to vector<1x256xf32>
    %1604 = arith.mulf %1601, %1603 : vector<1x256xf32>
    %1605 = arith.addf %1588, %1604 : vector<1x256xf32>
    %c0_i32_567 = arith.constant 0 : i32
    %1606 = vector.broadcast %c0_i32_567 : i32 to vector<1x256xi32>
    %1607 = arith.addi %9, %1606 : vector<1x256xi32>
    %c0_i32_568 = arith.constant 0 : i32
    %1608 = vector.broadcast %c0_i32_568 : i32 to vector<1x256xi32>
    %1609 = arith.cmpi sge, %1607, %1608 : vector<1x256xi32>
    %c0_i32_569 = arith.constant 0 : i32
    %1610 = vector.broadcast %c0_i32_569 : i32 to vector<1x256xi32>
    %1611 = arith.addi %9, %1610 : vector<1x256xi32>
    %c16_i32_570 = arith.constant 16 : i32
    %1612 = vector.broadcast %c16_i32_570 : i32 to vector<1x256xi32>
    %1613 = arith.cmpi slt, %1611, %1612 : vector<1x256xi32>
    %1614 = arith.andi %1609, %1613 : vector<1x256xi1>
    %1615 = arith.andi %1553, %1614 : vector<1x256xi1>
    %cst_571 = arith.constant 0.000000e+00 : f32
    %1616 = vector.broadcast %cst_571 : f32 to vector<1x256xf32>
    %1617 = arith.select %1615, %1554, %1616 : vector<1x256xi1>, vector<1x256xf32>
    %c87 = arith.constant 87 : index
    %1618 = memref.load %arg2[%c87] : memref<98xf32, #tpu.memory_space<smem>>
    %1619 = vector.broadcast %1618 : f32 to vector<1x256xf32>
    %1620 = arith.mulf %1617, %1619 : vector<1x256xf32>
    %1621 = arith.addf %1605, %1620 : vector<1x256xf32>
    %c1_i32_572 = arith.constant 1 : i32
    %1622 = vector.broadcast %c1_i32_572 : i32 to vector<1x256xi32>
    %1623 = arith.addi %9, %1622 : vector<1x256xi32>
    %c0_i32_573 = arith.constant 0 : i32
    %1624 = vector.broadcast %c0_i32_573 : i32 to vector<1x256xi32>
    %1625 = arith.cmpi sge, %1623, %1624 : vector<1x256xi32>
    %c1_i32_574 = arith.constant 1 : i32
    %1626 = vector.broadcast %c1_i32_574 : i32 to vector<1x256xi32>
    %1627 = arith.addi %9, %1626 : vector<1x256xi32>
    %c16_i32_575 = arith.constant 16 : i32
    %1628 = vector.broadcast %c16_i32_575 : i32 to vector<1x256xi32>
    %1629 = arith.cmpi slt, %1627, %1628 : vector<1x256xi32>
    %1630 = arith.andi %1625, %1629 : vector<1x256xi1>
    %1631 = arith.andi %1553, %1630 : vector<1x256xi1>
    %c255_i32_576 = arith.constant 255 : i32
    %1632 = tpu.dynamic_rotate %1554 by %c255_i32_576 dim 1 : vector<1x256xf32>, i32 -> vector<1x256xf32>
    %cst_577 = arith.constant 0.000000e+00 : f32
    %1633 = vector.broadcast %cst_577 : f32 to vector<1x256xf32>
    %1634 = arith.select %1631, %1632, %1633 : vector<1x256xi1>, vector<1x256xf32>
    %c88 = arith.constant 88 : index
    %1635 = memref.load %arg2[%c88] : memref<98xf32, #tpu.memory_space<smem>>
    %1636 = vector.broadcast %1635 : f32 to vector<1x256xf32>
    %1637 = arith.mulf %1634, %1636 : vector<1x256xf32>
    %1638 = arith.addf %1621, %1637 : vector<1x256xf32>
    %c2_i32_578 = arith.constant 2 : i32
    %1639 = vector.broadcast %c2_i32_578 : i32 to vector<1x256xi32>
    %1640 = arith.addi %9, %1639 : vector<1x256xi32>
    %c0_i32_579 = arith.constant 0 : i32
    %1641 = vector.broadcast %c0_i32_579 : i32 to vector<1x256xi32>
    %1642 = arith.cmpi sge, %1640, %1641 : vector<1x256xi32>
    %c2_i32_580 = arith.constant 2 : i32
    %1643 = vector.broadcast %c2_i32_580 : i32 to vector<1x256xi32>
    %1644 = arith.addi %9, %1643 : vector<1x256xi32>
    %c16_i32_581 = arith.constant 16 : i32
    %1645 = vector.broadcast %c16_i32_581 : i32 to vector<1x256xi32>
    %1646 = arith.cmpi slt, %1644, %1645 : vector<1x256xi32>
    %1647 = arith.andi %1642, %1646 : vector<1x256xi1>
    %1648 = arith.andi %1553, %1647 : vector<1x256xi1>
    %c254_i32_582 = arith.constant 254 : i32
    %1649 = tpu.dynamic_rotate %1554 by %c254_i32_582 dim 1 : vector<1x256xf32>, i32 -> vector<1x256xf32>
    %cst_583 = arith.constant 0.000000e+00 : f32
    %1650 = vector.broadcast %cst_583 : f32 to vector<1x256xf32>
    %1651 = arith.select %1648, %1649, %1650 : vector<1x256xi1>, vector<1x256xf32>
    %c89 = arith.constant 89 : index
    %1652 = memref.load %arg2[%c89] : memref<98xf32, #tpu.memory_space<smem>>
    %1653 = vector.broadcast %1652 : f32 to vector<1x256xf32>
    %1654 = arith.mulf %1651, %1653 : vector<1x256xf32>
    %1655 = arith.addf %1638, %1654 : vector<1x256xf32>
    %c3_i32_584 = arith.constant 3 : i32
    %1656 = vector.broadcast %c3_i32_584 : i32 to vector<1x256xi32>
    %1657 = arith.addi %9, %1656 : vector<1x256xi32>
    %c0_i32_585 = arith.constant 0 : i32
    %1658 = vector.broadcast %c0_i32_585 : i32 to vector<1x256xi32>
    %1659 = arith.cmpi sge, %1657, %1658 : vector<1x256xi32>
    %c3_i32_586 = arith.constant 3 : i32
    %1660 = vector.broadcast %c3_i32_586 : i32 to vector<1x256xi32>
    %1661 = arith.addi %9, %1660 : vector<1x256xi32>
    %c16_i32_587 = arith.constant 16 : i32
    %1662 = vector.broadcast %c16_i32_587 : i32 to vector<1x256xi32>
    %1663 = arith.cmpi slt, %1661, %1662 : vector<1x256xi32>
    %1664 = arith.andi %1659, %1663 : vector<1x256xi1>
    %1665 = arith.andi %1553, %1664 : vector<1x256xi1>
    %c253_i32_588 = arith.constant 253 : i32
    %1666 = tpu.dynamic_rotate %1554 by %c253_i32_588 dim 1 : vector<1x256xf32>, i32 -> vector<1x256xf32>
    %cst_589 = arith.constant 0.000000e+00 : f32
    %1667 = vector.broadcast %cst_589 : f32 to vector<1x256xf32>
    %1668 = arith.select %1665, %1666, %1667 : vector<1x256xi1>, vector<1x256xf32>
    %c90 = arith.constant 90 : index
    %1669 = memref.load %arg2[%c90] : memref<98xf32, #tpu.memory_space<smem>>
    %1670 = vector.broadcast %1669 : f32 to vector<1x256xf32>
    %1671 = arith.mulf %1668, %1670 : vector<1x256xf32>
    %1672 = arith.addf %1655, %1671 : vector<1x256xf32>
    %c3_i32_590 = arith.constant 3 : i32
    %1673 = vector.broadcast %c3_i32_590 : i32 to vector<1x256xi32>
    %1674 = arith.addi %8, %1673 : vector<1x256xi32>
    %c0_i32_591 = arith.constant 0 : i32
    %1675 = vector.broadcast %c0_i32_591 : i32 to vector<1x256xi32>
    %1676 = arith.cmpi sge, %1674, %1675 : vector<1x256xi32>
    %c3_i32_592 = arith.constant 3 : i32
    %1677 = vector.broadcast %c3_i32_592 : i32 to vector<1x256xi32>
    %1678 = arith.addi %8, %1677 : vector<1x256xi32>
    %c16_i32_593 = arith.constant 16 : i32
    %1679 = vector.broadcast %c16_i32_593 : i32 to vector<1x256xi32>
    %1680 = arith.cmpi slt, %1678, %1679 : vector<1x256xi32>
    %1681 = arith.andi %1676, %1680 : vector<1x256xi1>
    %c208_i32_594 = arith.constant 208 : i32
    %1682 = tpu.dynamic_rotate %5 by %c208_i32_594 dim 1 : vector<1x256xf32>, i32 -> vector<1x256xf32>
    %c-3_i32_595 = arith.constant -3 : i32
    %1683 = vector.broadcast %c-3_i32_595 : i32 to vector<1x256xi32>
    %1684 = arith.addi %9, %1683 : vector<1x256xi32>
    %c0_i32_596 = arith.constant 0 : i32
    %1685 = vector.broadcast %c0_i32_596 : i32 to vector<1x256xi32>
    %1686 = arith.cmpi sge, %1684, %1685 : vector<1x256xi32>
    %c-3_i32_597 = arith.constant -3 : i32
    %1687 = vector.broadcast %c-3_i32_597 : i32 to vector<1x256xi32>
    %1688 = arith.addi %9, %1687 : vector<1x256xi32>
    %c16_i32_598 = arith.constant 16 : i32
    %1689 = vector.broadcast %c16_i32_598 : i32 to vector<1x256xi32>
    %1690 = arith.cmpi slt, %1688, %1689 : vector<1x256xi32>
    %1691 = arith.andi %1686, %1690 : vector<1x256xi1>
    %1692 = arith.andi %1681, %1691 : vector<1x256xi1>
    %c3_i32_599 = arith.constant 3 : i32
    %1693 = tpu.dynamic_rotate %1682 by %c3_i32_599 dim 1 : vector<1x256xf32>, i32 -> vector<1x256xf32>
    %cst_600 = arith.constant 0.000000e+00 : f32
    %1694 = vector.broadcast %cst_600 : f32 to vector<1x256xf32>
    %1695 = arith.select %1692, %1693, %1694 : vector<1x256xi1>, vector<1x256xf32>
    %c91 = arith.constant 91 : index
    %1696 = memref.load %arg2[%c91] : memref<98xf32, #tpu.memory_space<smem>>
    %1697 = vector.broadcast %1696 : f32 to vector<1x256xf32>
    %1698 = arith.mulf %1695, %1697 : vector<1x256xf32>
    %1699 = arith.addf %1672, %1698 : vector<1x256xf32>
    %c-2_i32_601 = arith.constant -2 : i32
    %1700 = vector.broadcast %c-2_i32_601 : i32 to vector<1x256xi32>
    %1701 = arith.addi %9, %1700 : vector<1x256xi32>
    %c0_i32_602 = arith.constant 0 : i32
    %1702 = vector.broadcast %c0_i32_602 : i32 to vector<1x256xi32>
    %1703 = arith.cmpi sge, %1701, %1702 : vector<1x256xi32>
    %c-2_i32_603 = arith.constant -2 : i32
    %1704 = vector.broadcast %c-2_i32_603 : i32 to vector<1x256xi32>
    %1705 = arith.addi %9, %1704 : vector<1x256xi32>
    %c16_i32_604 = arith.constant 16 : i32
    %1706 = vector.broadcast %c16_i32_604 : i32 to vector<1x256xi32>
    %1707 = arith.cmpi slt, %1705, %1706 : vector<1x256xi32>
    %1708 = arith.andi %1703, %1707 : vector<1x256xi1>
    %1709 = arith.andi %1681, %1708 : vector<1x256xi1>
    %c2_i32_605 = arith.constant 2 : i32
    %1710 = tpu.dynamic_rotate %1682 by %c2_i32_605 dim 1 : vector<1x256xf32>, i32 -> vector<1x256xf32>
    %cst_606 = arith.constant 0.000000e+00 : f32
    %1711 = vector.broadcast %cst_606 : f32 to vector<1x256xf32>
    %1712 = arith.select %1709, %1710, %1711 : vector<1x256xi1>, vector<1x256xf32>
    %c92 = arith.constant 92 : index
    %1713 = memref.load %arg2[%c92] : memref<98xf32, #tpu.memory_space<smem>>
    %1714 = vector.broadcast %1713 : f32 to vector<1x256xf32>
    %1715 = arith.mulf %1712, %1714 : vector<1x256xf32>
    %1716 = arith.addf %1699, %1715 : vector<1x256xf32>
    %c-1_i32_607 = arith.constant -1 : i32
    %1717 = vector.broadcast %c-1_i32_607 : i32 to vector<1x256xi32>
    %1718 = arith.addi %9, %1717 : vector<1x256xi32>
    %c0_i32_608 = arith.constant 0 : i32
    %1719 = vector.broadcast %c0_i32_608 : i32 to vector<1x256xi32>
    %1720 = arith.cmpi sge, %1718, %1719 : vector<1x256xi32>
    %c-1_i32_609 = arith.constant -1 : i32
    %1721 = vector.broadcast %c-1_i32_609 : i32 to vector<1x256xi32>
    %1722 = arith.addi %9, %1721 : vector<1x256xi32>
    %c16_i32_610 = arith.constant 16 : i32
    %1723 = vector.broadcast %c16_i32_610 : i32 to vector<1x256xi32>
    %1724 = arith.cmpi slt, %1722, %1723 : vector<1x256xi32>
    %1725 = arith.andi %1720, %1724 : vector<1x256xi1>
    %1726 = arith.andi %1681, %1725 : vector<1x256xi1>
    %c1_i32_611 = arith.constant 1 : i32
    %1727 = tpu.dynamic_rotate %1682 by %c1_i32_611 dim 1 : vector<1x256xf32>, i32 -> vector<1x256xf32>
    %cst_612 = arith.constant 0.000000e+00 : f32
    %1728 = vector.broadcast %cst_612 : f32 to vector<1x256xf32>
    %1729 = arith.select %1726, %1727, %1728 : vector<1x256xi1>, vector<1x256xf32>
    %c93 = arith.constant 93 : index
    %1730 = memref.load %arg2[%c93] : memref<98xf32, #tpu.memory_space<smem>>
    %1731 = vector.broadcast %1730 : f32 to vector<1x256xf32>
    %1732 = arith.mulf %1729, %1731 : vector<1x256xf32>
    %1733 = arith.addf %1716, %1732 : vector<1x256xf32>
    %c0_i32_613 = arith.constant 0 : i32
    %1734 = vector.broadcast %c0_i32_613 : i32 to vector<1x256xi32>
    %1735 = arith.addi %9, %1734 : vector<1x256xi32>
    %c0_i32_614 = arith.constant 0 : i32
    %1736 = vector.broadcast %c0_i32_614 : i32 to vector<1x256xi32>
    %1737 = arith.cmpi sge, %1735, %1736 : vector<1x256xi32>
    %c0_i32_615 = arith.constant 0 : i32
    %1738 = vector.broadcast %c0_i32_615 : i32 to vector<1x256xi32>
    %1739 = arith.addi %9, %1738 : vector<1x256xi32>
    %c16_i32_616 = arith.constant 16 : i32
    %1740 = vector.broadcast %c16_i32_616 : i32 to vector<1x256xi32>
    %1741 = arith.cmpi slt, %1739, %1740 : vector<1x256xi32>
    %1742 = arith.andi %1737, %1741 : vector<1x256xi1>
    %1743 = arith.andi %1681, %1742 : vector<1x256xi1>
    %cst_617 = arith.constant 0.000000e+00 : f32
    %1744 = vector.broadcast %cst_617 : f32 to vector<1x256xf32>
    %1745 = arith.select %1743, %1682, %1744 : vector<1x256xi1>, vector<1x256xf32>
    %c94 = arith.constant 94 : index
    %1746 = memref.load %arg2[%c94] : memref<98xf32, #tpu.memory_space<smem>>
    %1747 = vector.broadcast %1746 : f32 to vector<1x256xf32>
    %1748 = arith.mulf %1745, %1747 : vector<1x256xf32>
    %1749 = arith.addf %1733, %1748 : vector<1x256xf32>
    %c1_i32_618 = arith.constant 1 : i32
    %1750 = vector.broadcast %c1_i32_618 : i32 to vector<1x256xi32>
    %1751 = arith.addi %9, %1750 : vector<1x256xi32>
    %c0_i32_619 = arith.constant 0 : i32
    %1752 = vector.broadcast %c0_i32_619 : i32 to vector<1x256xi32>
    %1753 = arith.cmpi sge, %1751, %1752 : vector<1x256xi32>
    %c1_i32_620 = arith.constant 1 : i32
    %1754 = vector.broadcast %c1_i32_620 : i32 to vector<1x256xi32>
    %1755 = arith.addi %9, %1754 : vector<1x256xi32>
    %c16_i32_621 = arith.constant 16 : i32
    %1756 = vector.broadcast %c16_i32_621 : i32 to vector<1x256xi32>
    %1757 = arith.cmpi slt, %1755, %1756 : vector<1x256xi32>
    %1758 = arith.andi %1753, %1757 : vector<1x256xi1>
    %1759 = arith.andi %1681, %1758 : vector<1x256xi1>
    %c255_i32_622 = arith.constant 255 : i32
    %1760 = tpu.dynamic_rotate %1682 by %c255_i32_622 dim 1 : vector<1x256xf32>, i32 -> vector<1x256xf32>
    %cst_623 = arith.constant 0.000000e+00 : f32
    %1761 = vector.broadcast %cst_623 : f32 to vector<1x256xf32>
    %1762 = arith.select %1759, %1760, %1761 : vector<1x256xi1>, vector<1x256xf32>
    %c95 = arith.constant 95 : index
    %1763 = memref.load %arg2[%c95] : memref<98xf32, #tpu.memory_space<smem>>
    %1764 = vector.broadcast %1763 : f32 to vector<1x256xf32>
    %1765 = arith.mulf %1762, %1764 : vector<1x256xf32>
    %1766 = arith.addf %1749, %1765 : vector<1x256xf32>
    %c2_i32_624 = arith.constant 2 : i32
    %1767 = vector.broadcast %c2_i32_624 : i32 to vector<1x256xi32>
    %1768 = arith.addi %9, %1767 : vector<1x256xi32>
    %c0_i32_625 = arith.constant 0 : i32
    %1769 = vector.broadcast %c0_i32_625 : i32 to vector<1x256xi32>
    %1770 = arith.cmpi sge, %1768, %1769 : vector<1x256xi32>
    %c2_i32_626 = arith.constant 2 : i32
    %1771 = vector.broadcast %c2_i32_626 : i32 to vector<1x256xi32>
    %1772 = arith.addi %9, %1771 : vector<1x256xi32>
    %c16_i32_627 = arith.constant 16 : i32
    %1773 = vector.broadcast %c16_i32_627 : i32 to vector<1x256xi32>
    %1774 = arith.cmpi slt, %1772, %1773 : vector<1x256xi32>
    %1775 = arith.andi %1770, %1774 : vector<1x256xi1>
    %1776 = arith.andi %1681, %1775 : vector<1x256xi1>
    %c254_i32_628 = arith.constant 254 : i32
    %1777 = tpu.dynamic_rotate %1682 by %c254_i32_628 dim 1 : vector<1x256xf32>, i32 -> vector<1x256xf32>
    %cst_629 = arith.constant 0.000000e+00 : f32
    %1778 = vector.broadcast %cst_629 : f32 to vector<1x256xf32>
    %1779 = arith.select %1776, %1777, %1778 : vector<1x256xi1>, vector<1x256xf32>
    %c96 = arith.constant 96 : index
    %1780 = memref.load %arg2[%c96] : memref<98xf32, #tpu.memory_space<smem>>
    %1781 = vector.broadcast %1780 : f32 to vector<1x256xf32>
    %1782 = arith.mulf %1779, %1781 : vector<1x256xf32>
    %1783 = arith.addf %1766, %1782 : vector<1x256xf32>
    %c3_i32_630 = arith.constant 3 : i32
    %1784 = vector.broadcast %c3_i32_630 : i32 to vector<1x256xi32>
    %1785 = arith.addi %9, %1784 : vector<1x256xi32>
    %c0_i32_631 = arith.constant 0 : i32
    %1786 = vector.broadcast %c0_i32_631 : i32 to vector<1x256xi32>
    %1787 = arith.cmpi sge, %1785, %1786 : vector<1x256xi32>
    %c3_i32_632 = arith.constant 3 : i32
    %1788 = vector.broadcast %c3_i32_632 : i32 to vector<1x256xi32>
    %1789 = arith.addi %9, %1788 : vector<1x256xi32>
    %c16_i32_633 = arith.constant 16 : i32
    %1790 = vector.broadcast %c16_i32_633 : i32 to vector<1x256xi32>
    %1791 = arith.cmpi slt, %1789, %1790 : vector<1x256xi32>
    %1792 = arith.andi %1787, %1791 : vector<1x256xi1>
    %1793 = arith.andi %1681, %1792 : vector<1x256xi1>
    %c253_i32_634 = arith.constant 253 : i32
    %1794 = tpu.dynamic_rotate %1682 by %c253_i32_634 dim 1 : vector<1x256xf32>, i32 -> vector<1x256xf32>
    %cst_635 = arith.constant 0.000000e+00 : f32
    %1795 = vector.broadcast %cst_635 : f32 to vector<1x256xf32>
    %1796 = arith.select %1793, %1794, %1795 : vector<1x256xi1>, vector<1x256xf32>
    %c97 = arith.constant 97 : index
    %1797 = memref.load %arg2[%c97] : memref<98xf32, #tpu.memory_space<smem>>
    %1798 = vector.broadcast %1797 : f32 to vector<1x256xf32>
    %1799 = arith.mulf %1796, %1798 : vector<1x256xf32>
    %1800 = arith.addf %1783, %1799 : vector<1x256xf32>
    %1801 = arith.negf %1800 : vector<1x256xf32>
    %1802 = math.exp %1801 : vector<1x256xf32>
    %cst_636 = arith.constant 1.000000e+00 : f32
    %1803 = vector.broadcast %cst_636 : f32 to vector<1x256xf32>
    %1804 = arith.addf %1803, %1802 : vector<1x256xf32>
    %1805 = arith.divf %1803, %1804 : vector<1x256xf32>
    %1806 = vector.broadcast %1805 : vector<1x256xf32> to vector<4x256xf32>
    %1807 = arith.mulf %1, %1806 : vector<4x256xf32>
    %c0_637 = arith.constant 0 : index
    %c0_638 = arith.constant 0 : index
    %c0_639 = arith.constant 0 : index
    %1808 = vector.load %arg5[%c0_637, %c0_638, %c0_639] : memref<1x4x256xf32, #tpu.memory_space<vmem>>, vector<1x4x256xf32>
    %1809 = vector.shape_cast %1808 : vector<1x4x256xf32> to vector<4x256xf32>
    %1810 = vector.shape_cast %1807 : vector<4x256xf32> to vector<1x4x256xf32>
    tpu.vector_store %arg5[%c0_637, %c0_638, %c0_639], %1810 {strides = array<i32>} : memref<1x4x256xf32, #tpu.memory_space<vmem>>, vector<1x4x256xf32>,
    return
  }
  func.func @transform_0(%arg0: i32) -> (i32, i32, i32) {
    %c0_i32 = arith.constant 0 : i32
    %c0_i32_0 = arith.constant 0 : i32
    %c0_i32_1 = arith.constant 0 : i32
    return %arg0, %c0_i32, %c0_i32_0 : i32, i32, i32
  }
  func.func @transform_1(%arg0: i32) -> i32 {
    %c0_i32 = arith.constant 0 : i32
    %c0_i32_0 = arith.constant 0 : i32
    return %c0_i32 : i32
  }
  func.func @transform_2(%arg0: i32) -> (i32, i32) {
    %c0_i32 = arith.constant 0 : i32
    %c0_i32_0 = arith.constant 0 : i32
    %c0_i32_1 = arith.constant 0 : i32
    return %c0_i32, %c0_i32_0 : i32, i32
  }
  func.func @transform_3(%arg0: i32) -> (i32, i32) {
    %c0_i32 = arith.constant 0 : i32
    %c0_i32_0 = arith.constant 0 : i32
    %c0_i32_1 = arith.constant 0 : i32
    return %c0_i32, %c0_i32_0 : i32, i32
  }
  func.func @transform_4(%arg0: i32) -> (i32, i32, i32) {
    %c0_i32 = arith.constant 0 : i32
    %c0_i32_0 = arith.constant 0 : i32
    %c0_i32_1 = arith.constant 0 : i32
    return %arg0, %c0_i32, %c0_i32_0 : i32, i32, i32
  }
}

</mosaic_0001>

<bundles_post_ra>
// kernel: tpu_custom_call.1
= control target key start
LH: loop header
LB: loop body
LE: loop exit
PB: predicated region body
PF: predicated region fallthrough
CT: control target
= control target key end

     0   :  { %9 = vsyncpa [#allocation3], 0  ;;  %s6120_s0 = inlined_call_operand.hbm [shape: f32[2,4,256], index: 0, kind: input, shape index: {}]   ;;  %s6121_s1 = inlined_call_operand.vmem [shape: f32[98], index: 1, kind: input, shape index: {}]   ;;  %s6122_s2 = inlined_call_operand.vmem [shape: s32[1,256], index: 2, kind: input, shape index: {}]   ;;  %s6123_s3 = inlined_call_operand.vmem [shape: s32[1,256], index: 3, kind: input, shape index: {}]   ;;  %s6124_s4 = inlined_call_operand.hbm [shape: f32[2,4,256], index: 4, kind: output, shape index: {}]  }
   0x1   :  { %11 = vsyncpa [#allocation3 + $0x1], 0 }
   0x2   :  { %12 = vsyncpa [#allocation5], 0 }
   0x3   :  { %13 = vsyncpa [#allocation4], 0 }
   0x4   :  { %15 = vsyncpa [#allocation4 + $0x1], 0  ;;  %s3675_s15 = smov 0   ;;  %s3677_s16 = smov 0  }
   0x5   :  { %s3679_s17 = smov 0   ;;  %s3681_s18 = smov 0  }
   0x6 LB: > { %s3696_s19 = sadd.s32 4294967295, %s3632_s18   ;;  %s3328_s20 = sadd.s32 4294967294, %s3632_s18   ;;  %s3632_s18 = sphi %s3681_s18, %s6458_s18   ;;  %s3628_s17 = sphi %s3679_s17, %s6457_s17   ;;  %s3624_s16 = sphi %s3677_s16, %s6456_s16   ;;  %s3620_s15 = sphi %s3675_s15, %s6455_s15  }
   0x7   : > { %p41_p0 = scmp.ne.s32.totalorder %s3624_s16, %s3620_s15  ;;  %p6125_p1 = scmp.eq.s32.totalorder %s3696_s19, 0 }
   0x8   : > { %p134_p3 = scmp.eq.s32.totalorder %s3328_s20, 1  ;;  %p3329_p5 = scmp.ge.s32.totalorder %s3632_s18, 1 }
   0x9   : > { %p3705_p4 = por %p6125_p1, %p41_p0  ;;  %p141_p7 = scmp.lt.s32.totalorder %s3632_s18, 3 }
   0xa   : > { %p3710_p6 = por %p134_p3, %p41_p0  ;;  %s154_s25 = sshll.u32 %s6121_s1, 4  ;;  %s155_s25 = int_to_ptr.vmem [resolvable:$true] %s154_s25 }
   0xb   : > { %s6189_s21 = scalar_select %p3705_p4, 1, 0 }
   0xc   : > { %s6190_s22 = scalar_select %p3710_p6, 1, 0 }
   0xd   : > { %p3718_p8 = pnand %p3329_p5, %p141_p7  ;;  %s3726_s27 = sadd.s32 1, %s3632_s18  }
   0xe   : > { %s25_s29 = ssub.s32 %s3632_s18, %s3726_s27  ;;  %s28_s5 = sadd.s32 1, %s3628_s17 }
   0xf   : > { %s6191_s26 = scalar_select %p3718_p8, 1, 0 }
  0x10   : > { %p3452_p10 = pneg %p3718_p8  ;;  %p3736_p12 = scmp.eq.s32.totalorder %s25_s29, 0 }
  0x11   : > { %p35_p13 = scmp.ne.s32.totalorder %s3628_s17, %s3624_s16  ;;  %s3521_s6 = scalar_lea.vmem %s155_s25, 16 }
  0x12   : > { %p3730_p11 = pnand %p3452_p10, %p6125_p1  ;;  %p3522_p0 = scmp.ne.s32.totalorder %s155_s25, %s3521_s6 }
  0x13   : > { %p3529_p9 = scmp.lt.s32.totalorder %s155_s25, %s155_s25  ;;  %p3530_p2 = scmp.lt.s32.totalorder %s3521_s6, %s3521_s6 }
  0x14   : > { %p3523_p3 = pneg %p3730_p11 }
  0x15   : > { %p3531_p10 = por %p3530_p2, %p3529_p9 }
  0x16   : > { %p3524_p5 = pnand %p3523_p3, %p3522_p0 }
  0x18   : > { %p3525_p7 = pneg %p3524_p5 }
  0x1a   : > { %p3532_p1 = pnand %p3531_p10, %p3525_p7 }
  0x1c   : > { %3535 = shalt.err (!%p3532_p1)
}
  0x1d   : > { %s3634_s7 = smov [#allocation6]   ;;  %p36_p2 = scmp.eq.s32.totalorder %s3632_s18, 0 }
  0x1e   : > { %3455 = dma.vmem_to_smem (!%p3730_p11), %s155_s25, 16, %s3634_s7, [#allocation5]  }
  0x1f   : > { %s3750_s8 = scalar_select %p3736_p12, %s3628_s17, %s28_s5  }
  0x20   : > { %p6194_p1 = scmp.eq.s32.totalorder %s3696_s19, 1  ;;  %p3465_p0 = scmp.lt.s32.totalorder %s3632_s18, 2 }
  0x21   : > { %s171_s10 = sand.u32 1, %s3628_s17   ;;  %p37_p3 = por %p36_p2, %p35_p13 }
  0x22   : > { %p3758_p9 = por %p6194_p1, %p35_p13  ;;  %s3332_s11 = sshll.u32 %s171_s10, 3 }
  0x23   : > { %s3442_s12 = sshll.u32 %s3632_s18, 7  ;;  %s175_s23 = scalar_lea.vmem [#allocation2], %s3332_s11 }
  0x24   : > { %s6195_s9 = scalar_select %p3758_p9, 1, 0 }
  0x25   : > { %s3771_s20 = scalar_lea.hbm %s6120_s0, %s3442_s12  ;;  %s183_s24 = sshll.u32 %s175_s23, 4  ;;  %s184_s24 = int_to_ptr.vmem [resolvable:$true] %s183_s24 }
  0x26   : > { %p3773_p11 = pnand %p3465_p0, %p37_p3  ;;  %s172_s28 = scalar_lea.sflag [#allocation3], %s171_s10 }
  0x27   : > { %s3536_s29 = scalar_lea.hbm %s3771_s20, 128  ;;  %s3541_s6 = scalar_lea.hbm %s6120_s0, 256 }
  0x28   : > { %p3537_p12 = scmp.ne.s32.totalorder %s3771_s20, %s3536_s29  ;;  %p3538_p13 = pneg %p3773_p11 }
  0x29   : > { %p3542_p10 = scmp.lt.s32.totalorder %s3771_s20, %s6120_s0  ;;  %p3543_p2 = scmp.lt.s32.totalorder %s3541_s6, %s3536_s29 }
  0x2a   : > { %p3539_p5 = pnand %p3538_p13, %p3537_p12 }
  0x2b   : > { %p3544_p1 = por %p3543_p2, %p3542_p10 }
  0x2c   : > { %p3540_p7 = pneg %p3539_p5 }
  0x2e   : > { %p3545_p0 = pnand %p3544_p1, %p3540_p7 }
  0x30   : > { %3548 = shalt.err (!%p3545_p0)
}
  0x31   : > { %s3549_s12 = scalar_lea.vmem %s184_s24, 128  ;;  %s3635_s10 = smov [#allocation2]  }
  0x32   : > { %p3550_p3 = scmp.ne.s32.totalorder %s184_s24, %s3549_s12  ;;  %s3554_s13 = sshll.u32 %s3635_s10, 4  ;;  %s3555_s13 = int_to_ptr.vmem [resolvable:$false] %s3554_s13 }
  0x33   : > { %s3556_s14 = scalar_lea.vmem %s3555_s13, 256  ;;  %p3557_p12 = scmp.lt.s32.totalorder %s184_s24, %s3555_s13 }
  0x34   : > { %p3552_p6 = pnand %p3550_p3, %p3538_p13  ;;  %p3558_p5 = scmp.lt.s32.totalorder %s3556_s14, %s3549_s12 }
  0x36   : > { %p3553_p9 = pneg %p3552_p6  ;;  %p3559_p4 = por %p3558_p5, %p3557_p12 }
  0x38   : > { %p3560_p8 = pnand %p3559_p4, %p3553_p9 }
  0x3a   : > { %3563 = shalt.err (!%p3560_p8)
}
  0x3b   : > { %3459 = dma.hbm_to_vmem [thread:$0]  (!%p3773_p11), %s3771_s20, 128, %s184_s24, %s172_s28  }
  0x3c   : > { %p6197_p7 = scmp.ne.s32.totalorder %s6191_s26, 0 }
  0x3d   : > { %s3794_s23 = sand.u32 (!%p6197_p7), 1, %s3624_s16   ;;  %p6198_p4 = scmp.ne.s32.totalorder (!%p6197_p7), %s6189_s21, 0 }
  0x3e   : > { %192 = sbr.rel (%p6197_p7) target bundleno = 748 (0x2ec), region = 36  ;;  %s3336_s29 = sshll.u32 (!%p6197_p7), %s3794_s23, 3 }
  0x3f   : > { %s195_s30 = scalar_lea.sflag (!%p6197_p7), [#allocation3], %s3794_s23  ;;  %s3800_s5 = scalar_lea.vmem (!%p6197_p7), [#allocation2], %s3336_s29 }
  0x43   : > { %3607 = dma.done.wait (%p6198_p4), %s195_s30, 128  }
  0x44   : > { %3609 = vsyncadd (%p6198_p4), %s195_s30, 4294967168  ;;  %p6199_p6 = scmp.eq.s32.totalorder %s3696_s19, 0 }
  0x46   : > { %3611 = dma.done.wait (%p6199_p6), [#allocation5], 16   ;;  %p6200_p8 = pmov %p6199_p6 }
  0x48   : > { %3613 = vsyncadd (%p6200_p8), [#allocation5], 4294967280 }
  0x49   : > { %207 = sfence }
  0x4a   : > { %v228_v0 = vld [vmem:[%s3800_s5] sm:$0xff]  ;;  %vm232_vm0 = vcmask 1043456   ;;  %s3636_s21 = smov 16   ;;  %s3637_s26 = smov 48   ;;  %v273_v32 = vlaneseq }
  0x4b   : > { %v233_v1 = vsel %vm232_vm0, %v228_v0, 0.0  ;;  %v230_v2 = vcombine.high %v228_v0, %v228_v0  ;;  %s3638_s20 = smov 112   ;;  %s3639_s24 = smov 32   ;;  %v247_v20 = vsel %vm232_vm0, %v228_v0, -inf }
  0x4c   : > { %v234_v3 = vrot.slane %v233_v1, 4  ;;  %s3640_s25 = smov 3   ;;  %s3641_s28 = smov 96   ;;  %v248_v22 = vrot.slane %v247_v20, 4  ;;  %v3878_v35 = vand.u32 127, %v273_v32 }
  0x4d   : > { %v240_v4 = vsel %vm232_vm0, %v230_v2, 0.0  ;;  %v254_v18 = vsel %vm232_vm0, %v230_v2, -inf  ;;  %s3642_s6 = smov 2   ;;  %s3643_s7 = smov 1  }
  0x4e   : > { %v235_v5 = vadd.f32 %v234_v3, %v233_v1  ;;  %v241_v6 = vrot.slane %v240_v4, 4  ;;  %v255_v19 = vrot.slane %v254_v18, 4  ;;  %s3644_s11 = smov 80   ;;  %v249_v24 = vmax.f32 %v247_v20, %v248_v22  ;;  %s3645_s12 = smov 127   ;;  %v4100_v20 = vld [vmem:[%s6123_s3] sm:$0x3] }
  0x4f   : > { %s3646_s10 = smov 126   ;;  %s3647_s13 = smov 125   ;;  %vm6133_vm1 = vcmp.lt.s32.totalorder %v3878_v35, 32  ;;  %vm6141_vm2 = vcmp.lt.s32.totalorder %v3878_v35, 48  ;;  %vm6132_vm3 = vcmp.lt.s32.totalorder %v3878_v35, 16  ;;  %vm6130_vm4 = vcmp.lt.s32.totalorder %v3878_v35, 112 }
  0x50   : > { %v236_v7 = vrot.slane %v235_v5, 2  ;;  %v242_v8 = vadd.f32 %v241_v6, %v240_v4  ;;  %v256_v21 = vmax.f32 %v254_v18, %v255_v19  ;;  %v250_v26 = vrot.slane %v249_v24, 2  ;;  %s4136_s14 = sld [smem:[#allocation6 + $0x1]]  ;;  %p6452_p11 = scmp.ne.s32.totalorder %s6195_s9, 0 }
  0x51   : > { %vm6129_vm5 = vcmp.lt.s32.totalorder %v3878_v35, 96  ;;  %v4093_v19 = vshrl.u32 %v273_v32, 7  ;;  %vm6152_vm6 = vcmp.lt.s32.totalorder %v3878_v35, 3  ;;  %vm6131_vm7 = vcmp.lt.s32.totalorder %v3878_v35, 80  ;;  %s4154_s30 = sld [smem:[#allocation6 + $0x2]] }
  0x52   : > { %v237_v9 = vadd.f32 %v236_v7, %v235_v5  ;;  %v243_v10 = vrot.slane %v242_v8, 2  ;;  %v257_v23 = vrot.slane %v256_v21, 2  ;;  %v251_v28 = vmax.f32 %v249_v24, %v250_v26 }
  0x53   : > { %v278_v24 = vadd.s32 4294967293, %v4100_v20  ;;  %vm6142_vm8 = vcmp.lt.s32.totalorder %v3878_v35, 2  ;;  %vm6140_vm11 = vcmp.lt.s32.totalorder %v3878_v35, 1 }
  0x54   : > { %v238_v11 = vrot.slane %v237_v9, 1  ;;  %v244_v12 = vadd.f32 %v243_v10, %v242_v8  ;;  %v258_v25 = vmax.f32 %v256_v21, %v257_v23  ;;  %v252_v30 = vrot.slane %v251_v28, 1 }
  0x55   : > { %vm279_vm12 = vcmp.ge.s32.totalorder %v278_v24, 0  ;;  %vm280_vm13 = vcmp.lt.s32.totalorder %v278_v24, 16 }
  0x56   : > { %v239_v13 = vadd.f32 %v238_v11, %v237_v9  ;;  %v245_v14 = vrot.slane %v244_v12, 1  ;;  %v259_v27 = vrot.slane %v258_v25, 1  ;;  %v3869_v31 = vmax.f32 %v251_v28, %v252_v30 }
  0x57   : > { %v3648_v11 = vmov 1966171168   ;;  %v313_v28 = vadd.s32 4294967294, %v4100_v20 }
  0x58   : > { %v3813_v15 = vmul.f32 0.25, %v239_v13  ;;  %v246_v16 = vadd.f32 %v245_v14, %v244_v12  ;;  %v3863_v29 = vmax.f32 %v258_v25, %v259_v27  ;;  %v294_v12 = vunpack.c.l.s4 %v3648_v11  ;;  %v4090_v13 = vld [vmem:[%s6122_s2] sm:$0x3] }
  0x59   : > { %v265_v21 = vadd.s32 4294967293, %v4090_v13  ;;  %v348_v27 = vadd.s32 4294967295, %v4100_v20  ;;  %vm314_vm15 = vcmp.ge.s32.totalorder %v313_v28, 0  ;;  %vm315_vm0 = vcmp.lt.s32.totalorder %v313_v28, 16 }
  0x5a   : > { %734 = vrot.lane.b32.xlu1 %v3813_v15, %s3636_s21  ;;  %269 = vrot.lane.b32.xlu0 %v3813_v15, %s3637_s26  ;;  %v3823_v17 = vmul.f32 0.25, %v246_v16  ;;  %v295_v18 = vunpack.c.0.s8 %v294_v12  ;;  %v410_v28 = vadd.s32 1, %v4100_v20 }
  0x5b   : > { %vm266_vm9 = vcmp.ge.s32.totalorder %v265_v21, 0  ;;  %vm267_vm10 = vcmp.lt.s32.totalorder %v265_v21, 16  ;;  %vm349_vm14 = vcmp.ge.s32.totalorder %v348_v27, 0 }
  0x5c   : > { %v4116_v30 = vsub.s32 %v295_v18, %v4093_v19 }
  0x5e   : > { %1156 = vrot.lane.b32.xlu1 %v3813_v15, %s3638_s20  ;;  %519 = vrot.lane.b32.xlu0 %v3813_v15, %s3639_s24 }
  0x62   : > { %521 = vrot.lane.b32.xlu1 %v3823_v17, %s3639_s24  ;;  %271 = vrot.lane.b32.xlu0 %v3823_v17, %s3637_s26 }
  0x66   : > { %736 = vrot.lane.b32.xlu0 %v3823_v17, %s3636_s21  ;;  %951 = vrot.lane.b32.xlu1 %v3823_v17, %s3640_s25 }
  0x6a   : > { %1158 = vrot.lane.b32.xlu0 %v3823_v17, %s3638_s20  ;;  %1373 = vrot.lane.b32.xlu1 %v3823_v17, %s3641_s28 }
  0x6e   : > { %949 = vrot.lane.b32.xlu0 %v3813_v15, %s3640_s25  ;;  %981 = vrot.lane.b32.xlu1 %v3823_v17, %s3642_s6 }
  0x72   : > { %1371 = vrot.lane.b32.xlu0 %v3813_v15, %s3641_s28  ;;  %1011 = vrot.lane.b32.xlu1 %v3823_v17, %s3643_s7 }
  0x76   : > { %979 = vrot.lane.b32.xlu0 %v3813_v15, %s3642_s6  ;;  %1586 = vrot.lane.b32.xlu1 %v3813_v15, %s3644_s11 }
  0x7a   : > { %1009 = vrot.lane.b32.xlu0 %v3813_v15, %s3643_s7  ;;  %1065 = vrot.lane.b32.xlu1 %v3823_v17, %s3645_s12 }
  0x7e   : > { %1063 = vrot.lane.b32.xlu0 %v3813_v15, %s3645_s12  ;;  %1095 = vrot.lane.b32.xlu1 %v3823_v17, %s3646_s10 }
  0x82   : > { %1588 = vrot.lane.b32.xlu0 %v3823_v17, %s3644_s11  ;;  %1125 = vrot.lane.b32.xlu1 %v3823_v17, %s3647_s13 }
  0x86   : > { %1093 = vrot.lane.b32.xlu0 %v3813_v15, %s3646_s10  ;;  %1799 = vrot.lane.b32.xlu1 %v3863_v29, %s3637_s26 }
  0x8a   : > { %1123 = vrot.lane.b32.xlu0 %v3813_v15, %s3647_s13  ;;  %2000 = vrot.lane.b32.xlu1 %v3869_v31, %s3639_s24 }
  0x8e   : > { %1797 = vrot.lane.b32.xlu0 %v3869_v31, %s3637_s26  ;;  %s4251_s26 = sld [smem:[#allocation6 + $0x4]] }
  0xcc   : > { %v735_v33 = vpop.permute.xlu1 %734  ;;  %v270_v34 = vpop.permute.xlu0 %269 }
  0xd0   : > { %v3880_v36 = vpop.permute.xlu1 %1156  ;;  %v520_v37 = vpop.permute.xlu0 %519 }
  0xd4   : > { %v522_v38 = vpop.permute.xlu1 %521  ;;  %v272_v39 = vpop.permute.xlu0 %271 }
  0xd5   : > { %v3886_v40 = vsel %vm6133_vm1, %v520_v37, %v522_v38  ;;  %v3890_v41 = vsel %vm6133_vm1, %v522_v38, %v520_v37  ;;  %v3894_v42 = vsel %vm6141_vm2, %v270_v34, %v272_v39  ;;  %v3898_v43 = vsel %vm6141_vm2, %v272_v39, %v270_v34 }
  0xd6   : > { %v619_v44 = vcombine.low %v3890_v41, %v3886_v40  ;;  %v389_v45 = vcombine.low %v3898_v43, %v3894_v42  ;;  %318 = vrot.lane.b32.xlu0 %v3898_v43, %s3642_s6  ;;  %283 = vrot.lane.b32.xlu1 %v3898_v43, %s3640_s25 }
  0xd8   : > { %v737_v46 = vpop.permute.xlu0 %736  ;;  %v3969_v49 = vpop.permute.xlu1 %951 }
  0xd9   : > { %v3951_v47 = vsel %vm6132_vm3, %v737_v46, %v735_v33  ;;  %v3963_v48 = vsel %vm6132_vm3, %v735_v33, %v737_v46 }
  0xda   : > { %353 = vrot.lane.b32.xlu0 %v3898_v43, %s3643_s7  ;;  %285 = vrot.lane.b32.xlu1 %v3894_v42, %s3640_s25 }
  0xdc   : > { %v1159_v50 = vpop.permute.xlu0 %1158  ;;  %v1374_v51 = vpop.permute.xlu1 %1373 }
  0xdd   : > { %v3991_v55 = vsel %vm6130_vm4, %v3880_v36, %v1159_v50  ;;  %v4008_v58 = vsel %vm6130_vm4, %v1159_v50, %v3880_v36  ;;  %vm350_vm4 = vcmp.lt.s32.totalorder %v348_v27, 16 }
  0xde   : > { %415 = vrot.lane.b32.xlu0 %v3898_v43, %s3645_s12  ;;  %320 = vrot.lane.b32.xlu1 %v3894_v42, %s3642_s6  ;;  %vm4175_vm3 = vmand %vm349_vm14, %vm350_vm4  ;;  %vm383_vm14 = vcmp.ge.s32.totalorder %v4100_v20, 0 }
  0xe0   : > { %v3979_v52 = vpop.permute.xlu0 %949  ;;  %v3986_v53 = vpop.permute.xlu1 %981 }
  0xe2   : > { %450 = vrot.lane.b32.xlu0 %v3898_v43, %s3646_s10  ;;  %355 = vrot.lane.b32.xlu1 %v3894_v42, %s3643_s7 }
  0xe4   : > { %v1372_v54 = vpop.permute.xlu0 %1371  ;;  %v4001_v56 = vpop.permute.xlu1 %1011 }
  0xe5   : > { %v4053_v3 = vsel %vm6129_vm5, %v1372_v54, %v1374_v51  ;;  %v4065_v6 = vsel %vm6129_vm5, %v1374_v51, %v1372_v54  ;;  %vm4146_vm5 = vmand %vm266_vm9, %vm267_vm10 }
  0xe6   : > { %485 = vrot.lane.b32.xlu0 %v3898_v43, %s3647_s13  ;;  %417 = vrot.lane.b32.xlu1 %v3894_v42, %s3645_s12  ;;  %vm4163_vm9 = vmand %vm279_vm12, %vm280_vm13  ;;  %vm6138_vm12 = vcmp.lt.s32.totalorder %v3878_v35, 126 }
  0xe7   : > { %vm4167_vm10 = vmand %vm314_vm15, %vm315_vm0  ;;  %vm6139_vm15 = vcmp.lt.s32.totalorder %v3878_v35, 125  ;;  %vm384_vm0 = vcmp.lt.s32.totalorder %v4100_v20, 16 }
  0xe8   : > { %v4003_v57 = vpop.permute.xlu0 %979  ;;  %v4014_v59 = vpop.permute.xlu1 %1586  ;;  %vm6135_vm13 = vmand %vm4146_vm5, %vm4167_vm10 }
  0xe9   : > { %vm6136_vm4 = vmand %vm4146_vm5, %vm4163_vm9 }
  0xea   : > { %527 = vrot.lane.b32.xlu0 %v3890_v41, %s3640_s25  ;;  %452 = vrot.lane.b32.xlu1 %v3894_v42, %s3646_s10  ;;  %vm6137_vm1 = vmand %vm4146_vm5, %vm4175_vm3 }
  0xec   : > { %v4016_v60 = vpop.permute.xlu0 %1009  ;;  %v4026_v61 = vpop.permute.xlu1 %1065 }
  0xee   : > { %557 = vrot.lane.b32.xlu0 %v3890_v41, %s3642_s6  ;;  %487 = vrot.lane.b32.xlu1 %v3894_v42, %s3647_s13 }
  0xf0   : > { %v4028_v62 = vpop.permute.xlu0 %1063  ;;  %v4034_v63 = vpop.permute.xlu1 %1095 }
  0xf2   : > { %587 = vrot.lane.b32.xlu0 %v3890_v41, %s3643_s7  ;;  %529 = vrot.lane.b32.xlu1 %v3886_v40, %s3640_s25 }
  0xf4   : > { %v4036_v0 = vpop.permute.xlu0 %1588  ;;  %v4047_v1 = vpop.permute.xlu1 %1125 }
  0xf5   : > { %v4122_v32 = vsel %vm6131_vm7, %v4014_v59, %v4036_v0  ;;  %v4142_v50 = vsel %vm6131_vm7, %v4036_v0, %v4014_v59  ;;  %vm6134_vm7 = vcmp.lt.s32.totalorder %v3878_v35, 127 }
  0xf6   : > { %641 = vrot.lane.b32.xlu0 %v3890_v41, %s3645_s12  ;;  %559 = vrot.lane.b32.xlu1 %v3886_v40, %s3642_s6 }
  0xf8   : > { %v4049_v2 = vpop.permute.xlu0 %1093  ;;  %v4059_v4 = vpop.permute.xlu1 %1799 }
  0xfa   : > { %671 = vrot.lane.b32.xlu0 %v3890_v41, %s3646_s10  ;;  %589 = vrot.lane.b32.xlu1 %v3886_v40, %s3643_s7 }
  0xfc   : > { %v4061_v5 = vpop.permute.xlu0 %1123  ;;  %v4075_v7 = vpop.permute.xlu1 %2000 }
  0xfe   : > { %701 = vrot.lane.b32.xlu0 %v3890_v41, %s3647_s13  ;;  %643 = vrot.lane.b32.xlu1 %v3886_v40, %s3645_s12 }
 0x100   : > { %v4077_v8 = vpop.permute.xlu0 %1797 }
 0x102   : > { %673 = vrot.lane.b32.xlu1 %v3886_v40, %s3646_s10  ;;  %742 = vrot.lane.b32.xlu0 %v3951_v47, %s3640_s25 }
 0x106   : > { %703 = vrot.lane.b32.xlu1 %v3886_v40, %s3647_s13  ;;  %772 = vrot.lane.b32.xlu0 %v3951_v47, %s3642_s6 }
 0x10a   : > { %802 = vrot.lane.b32.xlu0 %v3951_v47, %s3643_s7  ;;  %744 = vrot.lane.b32.xlu1 %v3963_v48, %s3640_s25 }
 0x10e   : > { %856 = vrot.lane.b32.xlu0 %v3951_v47, %s3645_s12  ;;  %774 = vrot.lane.b32.xlu1 %v3963_v48, %s3642_s6 }
 0x112   : > { %886 = vrot.lane.b32.xlu0 %v3951_v47, %s3646_s10  ;;  %804 = vrot.lane.b32.xlu1 %v3963_v48, %s3643_s7 }
 0x116   : > { %916 = vrot.lane.b32.xlu0 %v3951_v47, %s3647_s13  ;;  %858 = vrot.lane.b32.xlu1 %v3963_v48, %s3645_s12 }
 0x11a   : > { %888 = vrot.lane.b32.xlu1 %v3963_v48, %s3646_s10  ;;  %1164 = vrot.lane.b32.xlu0 %v3991_v55, %s3640_s25 }
 0x11e   : > { %918 = vrot.lane.b32.xlu1 %v3963_v48, %s3647_s13  ;;  %1194 = vrot.lane.b32.xlu0 %v3991_v55, %s3642_s6 }
 0x122   : > { %1166 = vrot.lane.b32.xlu1 %v4008_v58, %s3640_s25  ;;  %1224 = vrot.lane.b32.xlu0 %v3991_v55, %s3643_s7 }
 0x126   : > { %1196 = vrot.lane.b32.xlu1 %v4008_v58, %s3642_s6  ;;  %2002 = vrot.lane.b32.xlu0 %v3863_v29, %s3639_s24  ;;  %s4133_s24 = sld [smem:[#allocation6]] }
 0x12a   : > { %1226 = vrot.lane.b32.xlu1 %v4008_v58, %s3643_s7  ;;  %1278 = vrot.lane.b32.xlu0 %v3991_v55, %s3645_s12 }
 0x12c   : > { %v310_v43 = vstv %s4133_s24  ;;  %s4256_s24 = sld [smem:[#allocation6 + $0x5]] }
 0x12e   : > { %1280 = vrot.lane.b32.xlu1 %v4008_v58, %s3645_s12  ;;  %1308 = vrot.lane.b32.xlu0 %v3991_v55, %s3646_s10 }
 0x132   : > { %1310 = vrot.lane.b32.xlu1 %v4008_v58, %s3646_s10  ;;  %2203 = vrot.lane.b32.xlu0 %v3869_v31, %s3636_s21 }
 0x136   : > { %2205 = vrot.lane.b32.xlu1 %v3863_v29, %s3636_s21  ;;  %1338 = vrot.lane.b32.xlu0 %v3991_v55, %s3647_s13  ;;  %s4220_s21 = sld [smem:[#allocation6 + $0x3]] }
 0x13a   : > { %1340 = vrot.lane.b32.xlu1 %v4008_v58, %s3647_s13  ;;  %1379 = vrot.lane.b32.xlu0 %v4053_v3, %s3640_s25 }
 0x13e   : > { %1381 = vrot.lane.b32.xlu1 %v4065_v6, %s3640_s25  ;;  %1409 = vrot.lane.b32.xlu0 %v4053_v3, %s3642_s6 }
 0x142   : > { %1411 = vrot.lane.b32.xlu1 %v4065_v6, %s3642_s6  ;;  %1439 = vrot.lane.b32.xlu0 %v4053_v3, %s3643_s7 }
 0x146   : > { %1441 = vrot.lane.b32.xlu1 %v4065_v6, %s3643_s7  ;;  %1493 = vrot.lane.b32.xlu0 %v4053_v3, %s3645_s12 }
 0x148   : > { %v284_v9 = vpop.permute.xlu1 %283  ;;  %v319_v10 = vpop.permute.xlu0 %318 }
 0x14a   : > { %1495 = vrot.lane.b32.xlu1 %v4065_v6, %s3645_s12  ;;  %1523 = vrot.lane.b32.xlu0 %v4053_v3, %s3646_s10 }
 0x14c   : > { %v286_v14 = vpop.permute.xlu1 %285  ;;  %v354_v16 = vpop.permute.xlu0 %353 }
 0x14d   : > { %v288_v22 = vsel %vm6152_vm6, %v284_v9, %v286_v14  ;;  %v289_v23 = vsel %vm6152_vm6, %v286_v14, %v284_v9 }
 0x14e   : > { %1525 = vrot.lane.b32.xlu1 %v4065_v6, %s3646_s10  ;;  %1553 = vrot.lane.b32.xlu0 %v4053_v3, %s3647_s13  ;;  %v292_v36 = vcombine.low %v289_v23, %v288_v22 }
 0x150   : > { %v321_v25 = vpop.permute.xlu1 %320  ;;  %v416_v26 = vpop.permute.xlu0 %415 }
 0x151   : > { %v323_v33 = vsel %vm6142_vm8, %v319_v10, %v321_v25  ;;  %v324_v34 = vsel %vm6142_vm8, %v321_v25, %v319_v10  ;;  %v299_v10 = vrot.slane %v292_v36, %v4116_v30 }
 0x152   : > { %v327_v37 = vcombine.low %v324_v34, %v323_v33  ;;  %1555 = vrot.lane.b32.xlu1 %v4065_v6, %s3647_s13  ;;  %1594 = vrot.lane.b32.xlu0 %v4122_v32, %s3640_s25  ;;  %v396_v33 = vrot.slane %v389_v45, %v4116_v30  ;;  %v380_v45 = vstv %s4154_s30  ;;  %s4298_s30 = sld [smem:[#allocation6 + $0x7]] }
 0x153   : > { %v306_v24 = vrot.slane %v299_v10, %v4116_v30 }
 0x154   : > { %v334_v38 = vrot.slane %v327_v37, %v4116_v30  ;;  %v356_v39 = vpop.permute.xlu1 %355  ;;  %v451_v46 = vpop.permute.xlu0 %450  ;;  %v445_v37 = vadd.s32 2, %v4100_v20 }
 0x155   : > { %v358_v54 = vsel %vm6140_vm11, %v354_v16, %v356_v39  ;;  %v359_v9 = vsel %vm6140_vm11, %v356_v39, %v354_v16 }
 0x156   : > { %v362_v11 = vcombine.low %v359_v9, %v358_v54  ;;  %1596 = vrot.lane.b32.xlu1 %v4142_v50, %s3640_s25  ;;  %1624 = vrot.lane.b32.xlu0 %v4122_v32, %s3642_s6  ;;  %v341_v12 = vrot.slane %v334_v38, %v4116_v30  ;;  %v345_v38 = vstv %s4136_s14  ;;  %s4277_s14 = sld [smem:[#allocation6 + $0x6]] }
 0x158   : > { %v369_v14 = vrot.slane %v362_v11, %v4116_v30  ;;  %v418_v16 = vpop.permute.xlu1 %417  ;;  %v486_v18 = vpop.permute.xlu0 %485  ;;  %v343_v39 = vsel %vm6135_vm13, %v341_v12, 0.0  ;;  %vm446_vm13 = vcmp.ge.s32.totalorder %v445_v37, 0  ;;  %v553_v40 = vstv %s4298_s30  ;;  %s4467_s30 = sld [smem:[#allocation6 + $0xd]] }
 0x159   : > { %v420_v22 = vsel %vm6134_vm7, %v416_v26, %v418_v16  ;;  %v421_v23 = vsel %vm6134_vm7, %v418_v16, %v416_v26  ;;  %v4202_v26 = vadd.s32 4294967294, %v4090_v13  ;;  %vm4232_vm7 = vmand %vm383_vm14, %vm384_vm0  ;;  %vm411_vm14 = vcmp.ge.s32.totalorder %v410_v28, 0 }
 0x15a   : > { %v376_v25 = vrot.slane %v369_v14, %v4116_v30  ;;  %v424_v27 = vcombine.low %v420_v22, %v421_v23  ;;  %1626 = vrot.lane.b32.xlu1 %v4142_v50, %s3642_s6  ;;  %1654 = vrot.lane.b32.xlu0 %v4122_v32, %s3643_s7  ;;  %vm412_vm0 = vcmp.lt.s32.totalorder %v410_v28, 16  ;;  %v480_v14 = vadd.s32 3, %v4100_v20 }
 0x15b   : > { %v346_v16 = vmul.f32 %v345_v38, %v343_v39  ;;  %v403_v22 = vrot.slane %v396_v33, %v4116_v30 }
 0x15c   : > { %v453_v34 = vpop.permute.xlu1 %452  ;;  %v528_v36 = vpop.permute.xlu0 %527  ;;  %v431_v10 = vrot.slane %v424_v27, %v4116_v30  ;;  %v378_v12 = vsel %vm6137_vm1, %v376_v25, 0.0  ;;  %vm6143_vm1 = vmand %vm4146_vm5, %vm4232_vm7  ;;  %vm481_vm11 = vcmp.ge.s32.totalorder %v480_v14, 0  ;;  %vm482_vm2 = vcmp.lt.s32.totalorder %v480_v14, 16 }
 0x15d   : > { %v455_v54 = vsel %vm6138_vm12, %v451_v46, %v453_v34  ;;  %v456_v42 = vsel %vm6138_vm12, %v453_v34, %v451_v46  ;;  %v308_v46 = vsel %vm6136_vm4, %v306_v24, 0.0  ;;  %vm447_vm4 = vcmp.lt.s32.totalorder %v445_v37, 16  ;;  %vm4273_vm12 = vmand %vm411_vm14, %vm412_vm0 }
 0x15e   : > { %v459_v11 = vcombine.low %v455_v54, %v456_v42  ;;  %1656 = vrot.lane.b32.xlu1 %v4142_v50, %s3643_s7  ;;  %1708 = vrot.lane.b32.xlu0 %v4122_v32, %s3645_s12  ;;  %v311_v25 = vmul.f32 %v310_v43, %v308_v46  ;;  %v381_v33 = vmul.f32 %v380_v45, %v378_v12  ;;  %vm6144_vm8 = vmand %vm4146_vm5, %vm4273_vm12  ;;  %v407_v46 = vstv %s4220_s21  ;;  %s4326_s21 = sld [smem:[#allocation6 + $0x8]] }
 0x15f   : > { %v438_v38 = vrot.slane %v431_v10, %v4116_v30  ;;  %vm4288_vm14 = vmand %vm446_vm13, %vm447_vm4  ;;  %vm517_vm13 = vcmp.lt.s32.totalorder %v4202_v26, 16 }
 0x160   : > { %v466_v23 = vrot.slane %v459_v11, %v4116_v30  ;;  %v488_v27 = vpop.permute.xlu1 %487  ;;  %v558_v34 = vpop.permute.xlu0 %557  ;;  %v405_v11 = vsel %vm6143_vm1, %v403_v22, 0.0  ;;  %vm6150_vm4 = vmand %vm4146_vm5, %vm4288_vm14 }
 0x161   : > { %v490_v24 = vsel %vm6139_vm15, %v486_v18, %v488_v27  ;;  %v491_v20 = vsel %vm6139_vm15, %v488_v27, %v486_v18  ;;  %vm516_vm15 = vcmp.ge.s32.totalorder %v4202_v26, 0  ;;  %v347_v18 = vadd.f32 %v346_v16, %v311_v25  ;;  %vm4316_vm0 = vmand %vm481_vm11, %vm482_vm2 }
 0x162   : > { %v494_v39 = vcombine.low %v490_v24, %v491_v20  ;;  %1710 = vrot.lane.b32.xlu1 %v4142_v50, %s3645_s12  ;;  %1738 = vrot.lane.b32.xlu0 %v4122_v32, %s3646_s10  ;;  %v473_v42 = vrot.slane %v466_v23, %v4116_v30  ;;  %v442_v27 = vstv %s4251_s26  ;;  %v440_v24 = vsel %vm6144_vm8, %v438_v38, 0.0  ;;  %vm6146_vm1 = vmand %vm4146_vm5, %vm4316_vm0  ;;  %s4366_s26 = sld [smem:[#allocation6 + $0x9]] }
 0x163   : > { %v382_v37 = vadd.f32 %v381_v33, %v347_v18  ;;  %v408_v20 = vmul.f32 %v407_v46, %v405_v11  ;;  %vm4337_vm2 = vmand %vm516_vm15, %vm517_vm13  ;;  %v477_v38 = vstv %s4256_s24  ;;  %vm6219_vm11 = vcmp.lt.s32.totalorder %v3878_v35, 2  ;;  %s4452_s24 = sld [smem:[#allocation6 + $0xb]] }
 0x164   : > { %v501_v28 = vrot.slane %v494_v39, %v4116_v30  ;;  %v530_v43 = vpop.permute.xlu1 %529  ;;  %v588_v45 = vpop.permute.xlu0 %587  ;;  %v475_v18 = vsel %vm6150_vm4, %v473_v42, 0.0  ;;  %vm6220_vm8 = vmmov %vm6219_vm11  ;;  %v443_v46 = vmul.f32 %v442_v27, %v440_v24  ;;  %v512_v42 = vstv %s4277_s14  ;;  %s4456_s14 = sld [smem:[#allocation6 + $0xc]] }
 0x165   : > { %v531_v12 = vsel %vm6152_vm6, %v528_v36, %v530_v43  ;;  %v532_v16 = vsel %vm6152_vm6, %v530_v43, %v528_v36  ;;  %v409_v11 = vadd.f32 %v408_v20, %v382_v37  ;;  %vm6145_vm15 = vmand %vm4337_vm2, %vm4163_vm9  ;;  %v478_v37 = vmul.f32 %v477_v38, %v475_v18 }
 0x166   : > { %v508_v22 = vrot.slane %v501_v28, %v4116_v30  ;;  %v535_v23 = vcombine.low %v532_v16, %v531_v12  ;;  %1740 = vrot.lane.b32.xlu1 %v4142_v50, %s3646_s10  ;;  %2603 = vrot.lane.b32.xlu0 %v3869_v31, %s3638_s20  ;;  %v626_v16 = vrot.slane %v619_v44, %v4116_v30  ;;  %vm6222_vm13 = vcmp.lt.s32.totalorder %v3878_v35, 1 }
 0x168   : > { %v542_v14 = vrot.slane %v535_v23, %v4116_v30  ;;  %v560_v25 = vpop.permute.xlu1 %559  ;;  %v642_v33 = vpop.permute.xlu0 %641 }
 0x169   : > { %v561_v28 = vsel %vm6219_vm11, %v558_v34, %v560_v25  ;;  %v562_v43 = vsel %vm6220_vm8, %v560_v25, %v558_v34  ;;  %v510_v34 = vsel %vm6146_vm1, %v508_v22, 0.0  ;;  %vm6221_vm8 = vcmp.lt.s32.totalorder %v3878_v35, 48  ;;  %vm6223_vm11 = vmmov %vm6222_vm13 }
 0x16a   : > { %v549_v26 = vrot.slane %v542_v14, %v4116_v30  ;;  %v565_v12 = vcombine.low %v562_v43, %v561_v28  ;;  %2605 = vrot.lane.b32.xlu1 %v3863_v29, %s3638_s20  ;;  %1768 = vrot.lane.b32.xlu0 %v4122_v32, %s3647_s13  ;;  %v4376_v23 = vsel %vm6221_vm8, %v4059_v4, %v4077_v8  ;;  %s4385_s20 = sld [smem:[#allocation6 + $0xa]]  ;;  %vm6149_vm8 = vmand %vm4337_vm2, %vm4167_vm10  ;;  %v583_v28 = vstv %s4326_s21 }
 0x16b   : > { %v444_v14 = vadd.f32 %v443_v46, %v409_v11  ;;  %v513_v25 = vmul.f32 %v512_v42, %v510_v34  ;;  %vm6147_vm1 = vmand %vm4337_vm2, %vm4175_vm3  ;;  %s4475_s21 = sld [smem:[#allocation6 + $0xe]] }
 0x16c   : > { %v572_v27 = vrot.slane %v565_v12, %v4116_v30  ;;  %v590_v24 = vpop.permute.xlu1 %589  ;;  %v672_v20 = vpop.permute.xlu0 %671  ;;  %v551_v22 = vsel %vm6145_vm15, %v549_v26, 0.0  ;;  %vm6225_vm15 = vcmp.lt.s32.totalorder %v3878_v35, 127 }
 0x16d   : > { %v591_v41 = vsel %vm6222_vm13, %v588_v45, %v590_v24  ;;  %v592_v44 = vsel %vm6223_vm11, %v590_v24, %v588_v45  ;;  %v479_v43 = vadd.f32 %v478_v37, %v444_v14  ;;  %v554_v26 = vmul.f32 %v553_v40, %v551_v22  ;;  %vm6148_vm11 = vmand %vm4337_vm2, %vm4232_vm7 }
 0x16e   : > { %v579_v38 = vrot.slane %v572_v27, %v4116_v30  ;;  %v595_v18 = vcombine.low %v592_v44, %v591_v41  ;;  %1770 = vrot.lane.b32.xlu1 %v4142_v50, %s3647_s13  ;;  %1803 = vrot.lane.b32.xlu0 %v4376_v23, %s3640_s25  ;;  %v633_v45 = vrot.slane %v626_v16, %v4116_v30  ;;  %vm6224_vm13 = vcmp.lt.s32.totalorder %v3878_v35, 48 }
 0x16f   : > { %v4406_v11 = vsel %vm6224_vm13, %v4077_v8, %v4059_v4  ;;  %vm6226_vm13 = vmmov %vm6225_vm15  ;;  %v514_v16 = vadd.f32 %v513_v25, %v479_v43  ;;  %v613_v22 = vstv %s4366_s26  ;;  %s4498_s26 = sld [smem:[#allocation6 + $0xf]] }
 0x170   : > { %v602_v46 = vrot.slane %v595_v18, %v4116_v30  ;;  %v644_v12 = vpop.permute.xlu1 %643  ;;  %v702_v42 = vpop.permute.xlu0 %701  ;;  %v581_v34 = vsel %vm6149_vm8, %v579_v38, 0.0  ;;  %v635_v14 = vsel %vm6148_vm11, %v633_v45, 0.0  ;;  %v637_v25 = vstv %s4385_s20  ;;  %vm6158_vm11 = vmand %vm4337_vm2, %vm4288_vm14  ;;  %s4525_s20 = sld [smem:[#allocation6 + $0x11]] }
 0x171   : > { %v645_v4 = vsel %vm6225_vm15, %v642_v33, %v644_v12  ;;  %v646_v8 = vsel %vm6226_vm13, %v644_v12, %v642_v33  ;;  %v584_v37 = vmul.f32 %v583_v28, %v581_v34  ;;  %v555_v40 = vadd.f32 %v554_v26, %v514_v16  ;;  %vm6154_vm8 = vmand %vm4337_vm2, %vm4316_vm0 }
 0x172   : > { %v609_v27 = vrot.slane %v602_v46, %v4116_v30  ;;  %v649_v24 = vcombine.low %v645_v4, %v646_v8  ;;  %1832 = vrot.lane.b32.xlu0 %v4376_v23, %s3642_s6  ;;  %1805 = vrot.lane.b32.xlu1 %v4406_v11, %s3640_s25  ;;  %vm6227_vm15 = vcmp.lt.s32.totalorder %v3878_v35, 126  ;;  %v638_v12 = vmul.f32 %v637_v25, %v635_v14 }
 0x173   : > { %vm6228_vm13 = vmmov %vm6227_vm15  ;;  %v585_v28 = vadd.f32 %v584_v37, %v555_v40  ;;  %v834_v14 = vcombine.low %v3951_v47, %v3963_v48  ;;  %v667_v48 = vstv %s4452_s24  ;;  %s4538_s24 = sld [smem:[#allocation6 + $0x10]] }
 0x174   : > { %v674_v41 = vpop.permute.xlu1 %673  ;;  %v743_v33 = vpop.permute.xlu0 %742  ;;  %v611_v44 = vsel %vm6147_vm1, %v609_v27, 0.0  ;;  %v656_v26 = vrot.slane %v649_v24, %v4116_v30 }
 0x175   : > { %v675_v38 = vsel %vm6227_vm15, %v672_v20, %v674_v41  ;;  %v676_v18 = vsel %vm6228_vm13, %v674_v41, %v672_v20  ;;  %v614_v43 = vmul.f32 %v613_v22, %v611_v44  ;;  %v730_v20 = vadd.s32 4294967295, %v4090_v13 }
 0x176   : > { %v679_v46 = vcombine.low %v675_v38, %v676_v18  ;;  %1861 = vrot.lane.b32.xlu0 %v4376_v23, %s3643_s7  ;;  %1834 = vrot.lane.b32.xlu1 %v4406_v11, %s3642_s6  ;;  %vm6229_vm15 = vcmp.lt.s32.totalorder %v3878_v35, 125  ;;  %v663_v24 = vrot.slane %v656_v26, %v4116_v30 }
 0x177   : > { %v615_v45 = vadd.f32 %v614_v43, %v585_v28  ;;  %vm6230_vm13 = vmmov %vm6229_vm15  ;;  %vm732_vm1 = vcmp.lt.s32.totalorder %v730_v20, 16 }
 0x178   : > { %v686_v34 = vrot.slane %v679_v46, %v4116_v30  ;;  %v704_v4 = vpop.permute.xlu1 %703  ;;  %v773_v8 = vpop.permute.xlu0 %772  ;;  %v6231_v46 = vmov 0 }
 0x179   : > { %v705_v16 = vsel %vm6229_vm15, %v702_v42, %v704_v4  ;;  %v706_v37 = vsel %vm6230_vm13, %v704_v4, %v702_v42  ;;  %v639_v27 = vadd.f32 %v638_v12, %v615_v45  ;;  %vm6151_vm15 = vmand %vm4337_vm2, %vm4273_vm12  ;;  %vm731_vm13 = vcmp.ge.s32.totalorder %v730_v20, 0 }
 0x17a   : > { %v709_v22 = vcombine.low %v705_v16, %v706_v37  ;;  %1913 = vrot.lane.b32.xlu0 %v4376_v23, %s3645_s12  ;;  %1863 = vrot.lane.b32.xlu1 %v4406_v11, %s3643_s7  ;;  %v693_v40 = vrot.slane %v686_v34, %v4116_v30  ;;  %v665_v47 = vsel %vm6151_vm15, %v663_v24, 0.0  ;;  %vm4506_vm4 = vmand %vm731_vm13, %vm732_vm1  ;;  %v697_v12 = vstv %s4456_s14  ;;  %s4616_s14 = sld [smem:[#allocation6 + $0x15]] }
 0x17b   : > { %v6232_v46 = vsel %vm4506_vm4, 4294967295, %v6231_v46  ;;  %v841_v34 = vrot.slane %v834_v14, %v4116_v30  ;;  %vm6233_vm15 = vcmp.lt.s32.totalorder %v3878_v35, 2  ;;  %v668_v20 = vmul.f32 %v667_v48, %v665_v47  ;;  %vm6153_vm1 = vmand %vm4506_vm4, %vm4163_vm9 }
 0x17c   : > { %v716_v42 = vrot.slane %v709_v22, %v4116_v30  ;;  %v745_v41 = vpop.permute.xlu1 %744  ;;  %v803_v44 = vpop.permute.xlu0 %802  ;;  %v695_v45 = vsel %vm6158_vm11, %v693_v40, 0.0  ;;  %v727_v22 = vstv %s4467_s30  ;;  %vm6157_vm13 = vmand %vm4506_vm4, %vm4167_vm10  ;;  %s4626_s30 = sld [smem:[#allocation6 + $0x13]] }
 0x17d   : > { %v746_v25 = vsel %vm6152_vm6, %v743_v33, %v745_v41  ;;  %v747_v38 = vsel %vm6152_vm6, %v745_v41, %v743_v33  ;;  %vm6234_vm6 = vmmov %vm6233_vm15  ;;  %v698_v40 = vmul.f32 %v697_v12, %v695_v45  ;;  %v669_v47 = vadd.f32 %v668_v20, %v639_v27 }
 0x17e   : > { %v723_v18 = vrot.slane %v716_v42, %v4116_v30  ;;  %v750_v28 = vcombine.low %v747_v38, %v746_v25  ;;  %1942 = vrot.lane.b32.xlu0 %v4376_v23, %s3646_s10  ;;  %1915 = vrot.lane.b32.xlu1 %v4406_v11, %s3645_s12  ;;  %v768_v38 = vstv %s4475_s21  ;;  %v798_v12 = vstv %s4498_s26  ;;  %s4632_s21 = sld [smem:[#allocation6 + $0x16]]  ;;  %vm6160_vm11 = vmand %vm4506_vm4, %vm4288_vm14 }
 0x17f   : > { %s4650_s26 = sld [smem:[#allocation6 + $0x14]] }
 0x180   : > { %v757_v33 = vrot.slane %v750_v28, %v4116_v30  ;;  %v775_v43 = vpop.permute.xlu1 %774  ;;  %v857_v26 = vpop.permute.xlu0 %856 }
 0x181   : > { %v776_v4 = vsel %vm6233_vm15, %v773_v8, %v775_v43  ;;  %v777_v16 = vsel %vm6234_vm6, %v775_v43, %v773_v8  ;;  %v725_v8 = vsel %vm6154_vm8, %v723_v18, 0.0  ;;  %vm6235_vm6 = vcmp.lt.s32.totalorder %v3878_v35, 1 }
 0x182   : > { %v764_v37 = vrot.slane %v757_v33, %v4116_v30  ;;  %v780_v24 = vcombine.low %v777_v16, %v776_v4  ;;  %2806 = vrot.lane.b32.xlu0 %v3869_v31, %s3641_s28  ;;  %1944 = vrot.lane.b32.xlu1 %v4406_v11, %s3646_s10  ;;  %vm6236_vm15 = vmmov %vm6235_vm6  ;;  %v728_v48 = vmul.f32 %v727_v22, %v725_v8 }
 0x183   : > { %v848_v33 = vrot.slane %v841_v34, %v4116_v30  ;;  %v699_v34 = vadd.f32 %v698_v40, %v669_v47 }
 0x184   : > { %v787_v42 = vrot.slane %v780_v24, %v4116_v30  ;;  %v805_v41 = vpop.permute.xlu1 %804  ;;  %v887_v14 = vpop.permute.xlu0 %886  ;;  %v766_v25 = vsel %vm6153_vm1, %v764_v37, 0.0  ;;  %vm6239_vm1 = vcmp.lt.s32.totalorder %v3878_v35, 2 }
 0x185   : > { %v806_v28 = vsel %vm6235_vm6, %v803_v44, %v805_v41  ;;  %v807_v18 = vsel %vm6236_vm15, %v805_v41, %v803_v44  ;;  %vm6237_vm6 = vcmp.lt.s32.totalorder %v3878_v35, 3  ;;  %v769_v4 = vmul.f32 %v768_v38, %v766_v25  ;;  %vm6240_vm8 = vmmov %vm6239_vm1 }
 0x186   : > { %v794_v43 = vrot.slane %v787_v42, %v4116_v30  ;;  %v810_v45 = vcombine.low %v807_v18, %v806_v28  ;;  %1971 = vrot.lane.b32.xlu0 %v4376_v23, %s3647_s13  ;;  %2808 = vrot.lane.b32.xlu1 %v3863_v29, %s3641_s28  ;;  %v953_v27 = vsel %vm6237_vm6, %v3979_v52, %v3969_v49  ;;  %vm6238_vm15 = vmmov %vm6237_vm6  ;;  %s4588_s28 = sld [smem:[#allocation6 + $0x12]]  ;;  %v828_v41 = vstv %s4538_s24 }
 0x187   : > { %v954_v44 = vsel %vm6238_vm15, %v3969_v49, %v3979_v52  ;;  %v983_v16 = vsel %vm6239_vm1, %v4003_v57, %v3986_v53  ;;  %v984_v20 = vsel %vm6240_vm8, %v3986_v53, %v4003_v57  ;;  %vm6156_vm6 = vmand %vm4506_vm4, %vm4232_vm7  ;;  %vm6241_vm8 = vcmp.lt.s32.totalorder %v3878_v35, 127  ;;  %s4722_s24 = sld [smem:[#allocation6 + $0x18]] }
 0x188   : > { %v817_v37 = vrot.slane %v810_v45, %v4116_v30  ;;  %v859_v24 = vpop.permute.xlu1 %858  ;;  %v917_v8 = vpop.permute.xlu0 %916  ;;  %v796_v49 = vsel %vm6157_vm13, %v794_v43, 0.0  ;;  %vm6242_vm1 = vmmov %vm6241_vm8  ;;  %v729_v57 = vadd.f32 %v728_v48, %v699_v34  ;;  %v852_v25 = vstv %s4525_s20  ;;  %s4704_s20 = sld [smem:[#allocation6 + $0x17]] }
 0x189   : > { %v860_v52 = vsel %vm6241_vm8, %v857_v26, %v859_v24  ;;  %v861_v53 = vsel %vm6242_vm1, %v859_v24, %v857_v26  ;;  %v799_v22 = vmul.f32 %v798_v12, %v796_v49  ;;  %vm6155_vm15 = vmand %vm4506_vm4, %vm4175_vm3  ;;  %vm6243_vm8 = vcmp.lt.s32.totalorder %v3878_v35, 1 }
 0x18a   : > { %v824_v40 = vrot.slane %v817_v37, %v4116_v30  ;;  %v864_v42 = vcombine.low %v860_v52, %v861_v53  ;;  %1973 = vrot.lane.b32.xlu1 %v4406_v11, %s3647_s13  ;;  %v1013_v26 = vsel %vm6243_vm8, %v4016_v60, %v4001_v56  ;;  %vm6244_vm1 = vmmov %vm6243_vm8  ;;  %v770_v28 = vadd.f32 %v769_v4, %v729_v57 }
 0x18b   : > { %v1014_v38 = vsel %vm6244_vm1, %v4001_v56, %v4016_v60  ;;  %v850_v18 = vsel %vm6156_vm6, %v848_v33, 0.0  ;;  %v957_v47 = vcombine.low %v954_v44, %v953_v27  ;;  %v987_v48 = vcombine.low %v984_v20, %v983_v16 }
 0x18c   : > { %v871_v43 = vrot.slane %v864_v42, %v4116_v30  ;;  %v889_v45 = vpop.permute.xlu1 %888  ;;  %v4619_v12 = vpop.permute.xlu0 %1164  ;;  %v826_v56 = vsel %vm6155_vm15, %v824_v40, 0.0  ;;  %vm6245_vm8 = vcmp.lt.s32.totalorder %v3878_v35, 126  ;;  %v800_v27 = vadd.f32 %v799_v22, %v770_v28 }
 0x18d   : > { %v890_v60 = vsel %vm6245_vm8, %v887_v14, %v889_v45  ;;  %vm6246_vm1 = vmmov %vm6245_vm8  ;;  %v829_v44 = vmul.f32 %v828_v41, %v826_v56  ;;  %v1017_v34 = vcombine.low %v1014_v38, %v1013_v26  ;;  %v4636_v20 = vadd.s32 1, %v4090_v13 }
 0x18e   : > { %v891_v33 = vsel %vm6246_vm1, %v889_v45, %v887_v14  ;;  %v878_v4 = vrot.slane %v871_v43, %v4116_v30  ;;  %vm6159_vm8 = vmand %vm4506_vm4, %vm4273_vm12  ;;  %v853_v24 = vmul.f32 %v852_v25, %v850_v18  ;;  %vm946_vm15 = vcmp.lt.s32.totalorder %v4090_v13, 16 }
 0x18f   : > { %v894_v16 = vcombine.low %v890_v60, %v891_v33  ;;  %v830_v37 = vadd.f32 %v829_v44, %v800_v27  ;;  %v964_v14 = vrot.slane %v957_v47, %v4116_v30  ;;  %v4646_v49 = vrot.slane %v987_v48, %v4116_v30 }
 0x190   : > { %v919_v53 = vpop.permute.xlu1 %918  ;;  %v1195_v57 = vpop.permute.xlu0 %1194  ;;  %v882_v22 = vstv %s4588_s28  ;;  %vm6247_vm6 = vcmp.lt.s32.totalorder %v3878_v35, 125  ;;  %v880_v25 = vsel %vm6159_vm8, %v878_v4, 0.0  ;;  %v4666_v26 = vrot.slane %v1017_v34, %v4116_v30  ;;  %vm6251_vm8 = vmmov %vm6246_vm1  ;;  %s4776_s28 = sld [smem:[#allocation6 + $0x19]] }
 0x191   : > { %v901_v52 = vrot.slane %v894_v16, %v4116_v30  ;;  %v920_v40 = vsel %vm6247_vm6, %v917_v8, %v919_v53  ;;  %vm6248_vm13 = vmmov %vm6247_vm6  ;;  %v854_v41 = vadd.f32 %v853_v24, %v830_v37  ;;  %v1097_v48 = vsel %vm6251_vm8, %v4049_v2, %v4034_v63 }
 0x192   : > { %v921_v42 = vsel %vm6248_vm13, %v919_v53, %v917_v8  ;;  %v1041_v8 = vcombine.low %v3813_v15, %v3823_v17  ;;  %vm6249_vm13 = vcmp.lt.s32.totalorder %v3878_v35, 127  ;;  %v1098_v15 = vsel %vm6246_vm1, %v4034_v63, %v4049_v2 }
 0x193   : > { %v908_v38 = vrot.slane %v901_v52, %v4116_v30  ;;  %v924_v28 = vcombine.low %v920_v40, %v921_v42  ;;  %v1067_v18 = vsel %vm6249_vm13, %v4028_v62, %v4026_v61  ;;  %vm6250_vm6 = vmmov %vm6249_vm13  ;;  %v883_v56 = vmul.f32 %v882_v22, %v880_v25 }
 0x194   : > { %v1068_v47 = vsel %vm6250_vm6, %v4026_v61, %v4028_v62  ;;  %v1167_v43 = vpop.permute.xlu1 %1166  ;;  %v4688_v45 = vpop.permute.xlu0 %1224  ;;  %v912_v62 = vstv %s4626_s30  ;;  %vm6252_vm8 = vcmp.ge.s32.totalorder %v4090_v13, 0  ;;  %v6253_v60 = vmov 0  ;;  %s4801_s30 = sld [smem:[#allocation6 + $0x1b]] }
 0x195   : > { %v931_v17 = vrot.slane %v924_v28, %v4116_v30  ;;  %v910_v61 = vsel %vm6160_vm11, %v908_v38, 0.0  ;;  %vm4700_vm13 = vmand %vm6252_vm8, %vm946_vm15  ;;  %vm6255_vm1 = vcmp.lt.s32.totalorder %v3878_v35, 125  ;;  %v975_v13 = vstv %s4616_s14  ;;  %s4793_s14 = sld [smem:[#allocation6 + $0x1a]] }
 0x196   : > { %v6254_v60 = vsel %vm4700_vm13, 4294967295, %v6253_v60  ;;  %v1127_v63 = vsel %vm6255_vm1, %v4061_v5, %v4047_v1  ;;  %vm6256_vm6 = vmmov %vm6255_vm1  ;;  %v1005_v33 = vstv %s4632_s21  ;;  %v971_v27 = vrot.slane %v964_v14, %v4116_v30  ;;  %s4828_s21 = sld [smem:[#allocation6 + $0x1c]] }
 0x197   : > { %v1128_v2 = vsel %vm6256_vm6, %v4047_v1, %v4061_v5  ;;  %vm6161_vm15 = vmand %vm4506_vm4, %vm4316_vm0  ;;  %v1071_v44 = vcombine.low %v1067_v18, %v1068_v47  ;;  %v938_v34 = vrot.slane %v931_v17, %v4116_v30  ;;  %v1048_v4 = vrot.slane %v1041_v8, %v4116_v30 }
 0x198   : > { %v1001_v1 = vrot.slane %v4646_v49, %v4116_v30  ;;  %v1031_v5 = vrot.slane %v4666_v26, %v4116_v30  ;;  %v1101_v16 = vcombine.low %v1097_v48, %v1098_v15  ;;  %v913_v37 = vmul.f32 %v912_v62, %v910_v61  ;;  %v1197_v14 = vpop.permute.xlu1 %1196  ;;  %v2003_v52 = vpop.permute.xlu0 %2002 }
 0x199   : > { %v1131_v24 = vcombine.low %v1127_v63, %v1128_v2  ;;  %v884_v53 = vadd.f32 %v883_v56, %v854_v41  ;;  %v940_v49 = vsel %vm6161_vm15, %v938_v34, 0.0  ;;  %v942_v22 = vstv %s4650_s26  ;;  %vm6164_vm15 = vmand %vm4700_vm13, %vm4167_vm10  ;;  %s4835_s26 = sld [smem:[#allocation6 + $0x1d]] }
 0x19a   : > { %vm6257_vm1 = vcmp.lt.s32.totalorder %v3878_v35, 3  ;;  %vm6259_vm11 = vcmp.lt.s32.totalorder %v3878_v35, 32  ;;  %v1078_v26 = vrot.slane %v1071_v44, %v4116_v30  ;;  %v1055_v38 = vrot.slane %v1048_v4, %v4116_v30 }
 0x19b   : > { %v1168_v40 = vsel %vm6257_vm1, %v4619_v12, %v1167_v43  ;;  %vm6258_vm6 = vmmov %vm6257_vm1  ;;  %v4748_v25 = vsel %vm6259_vm11, %v4075_v7, %v2003_v52  ;;  %vm6262_vm1 = vcmp.lt.s32.totalorder %v3878_v35, 2  ;;  %v914_v18 = vadd.f32 %v913_v37, %v884_v53 }
 0x19c   : > { %v1169_v42 = vsel %vm6258_vm6, %v1167_v43, %v4619_v12  ;;  %vm6260_vm8 = vmmov %vm6259_vm11  ;;  %2008 = vrot.lane.b32.xlu1 %v4748_v25, %s3640_s25  ;;  %v1198_v28 = vsel %vm6262_vm1, %v1195_v57, %v1197_v14  ;;  %v943_v47 = vmul.f32 %v942_v22, %v940_v49  ;;  %v1108_v48 = vrot.slane %v1101_v16, %v4116_v30  ;;  %v1227_v17 = vpop.permute.xlu1 %1226  ;;  %v1279_v43 = vpop.permute.xlu0 %1278 }
 0x19d   : > { %v4753_v41 = vsel %vm6260_vm8, %v2003_v52, %v4075_v7  ;;  %vm6261_vm11 = vmand %vm4700_vm13, %vm4163_vm9  ;;  %v1172_v15 = vcombine.low %v1169_v42, %v1168_v40  ;;  %v1003_v56 = vsel %vm6164_vm15, %v1001_v1, 0.0  ;;  %v1138_v61 = vrot.slane %v1131_v24, %v4116_v30 }
 0x19e   : > { %v2095_v12 = vcombine.low %v4753_v41, %v4748_v25  ;;  %2006 = vrot.lane.b32.xlu0 %v4753_v41, %s3640_s25  ;;  %v973_v7 = vsel %vm6261_vm11, %v971_v27, 0.0  ;;  %vm6162_vm8 = vmand %vm4700_vm13, %vm4175_vm3  ;;  %v944_v62 = vadd.f32 %v943_v47, %v914_v18  ;;  %v1085_v27 = vrot.slane %v1078_v26, %v4116_v30 }
 0x19f   : > { %vm6263_vm6 = vmmov %vm6262_vm1  ;;  %v976_v63 = vmul.f32 %v975_v13, %v973_v7  ;;  %v1033_v2 = vsel %vm6162_vm8, %v1031_v5, 0.0  ;;  %v1059_v34 = vstv %s4722_s24  ;;  %vm6264_vm1 = vcmp.lt.s32.totalorder %v3878_v35, 1  ;;  %s4911_s24 = sld [smem:[#allocation6 + $0x1f]] }
 0x1a0   : > { %v1199_v8 = vsel %vm6263_vm6, %v1197_v14, %v1195_v57  ;;  %vm6163_vm11 = vmand %vm4700_vm13, %vm4232_vm7  ;;  %v1035_v57 = vstv %s4704_s20  ;;  %2037 = vrot.lane.b32.xlu1 %v4748_v25, %s3642_s6  ;;  %v1228_v4 = vsel %vm6264_vm1, %v4688_v45, %v1227_v17  ;;  %v1006_v16 = vmul.f32 %v1005_v33, %v1003_v56  ;;  %v1281_v14 = vpop.permute.xlu1 %1280  ;;  %v1309_v52 = vpop.permute.xlu0 %1308  ;;  %s4885_s20 = sld [smem:[#allocation6 + $0x1e]] }
 0x1a1   : > { %v1202_v44 = vcombine.low %v1199_v8, %v1198_v28  ;;  %v1057_v13 = vsel %vm6163_vm11, %v1055_v38, 0.0  ;;  %vm6265_vm6 = vmmov %vm6264_vm1  ;;  %v977_v5 = vadd.f32 %v976_v63, %v944_v62  ;;  %v1115_v37 = vrot.slane %v1108_v48, %v4116_v30 }
 0x1a2   : > { %2035 = vrot.lane.b32.xlu0 %v4753_v41, %s3642_s6  ;;  %v1229_v1 = vsel %vm6265_vm6, %v1227_v17, %v4688_v45  ;;  %vm6165_vm8 = vmand %vm4700_vm13, %vm4273_vm12  ;;  %v1179_v24 = vrot.slane %v1172_v15, %v4116_v30  ;;  %vm1153_vm1 = vcmp.ge.s32.totalorder %v4636_v20, 0  ;;  %vm1154_vm11 = vcmp.lt.s32.totalorder %v4636_v20, 16 }
 0x1a3   : > { %v1145_v45 = vrot.slane %v1138_v61, %v4116_v30  ;;  %v1007_v33 = vadd.f32 %v1006_v16, %v977_v5  ;;  %v1036_v53 = vmul.f32 %v1035_v57, %v1033_v2  ;;  %v1060_v49 = vmul.f32 %v1059_v34, %v1057_v13  ;;  %vm6166_vm15 = vmand %vm4700_vm13, %vm4316_vm0 }
 0x1a4   : > { %v1209_v22 = vrot.slane %v1202_v44, %v4116_v30  ;;  %v1232_v40 = vcombine.low %v1229_v1, %v1228_v4  ;;  %2066 = vrot.lane.b32.xlu1 %v4748_v25, %s3643_s7  ;;  %v1087_v42 = vsel %vm6165_vm8, %v1085_v27, 0.0  ;;  %v1089_v26 = vstv %s4776_s28  ;;  %v1311_v8 = vpop.permute.xlu1 %1310  ;;  %v2204_v18 = vpop.permute.xlu0 %2203  ;;  %vm4859_vm6 = vmand %vm1153_vm1, %vm1154_vm11  ;;  %s4938_s28 = sld [smem:[#allocation6 + $0x20]] }
 0x1a5   : > { %v1037_v7 = vadd.f32 %v1036_v53, %v1007_v33  ;;  %v1256_v38 = vcombine.low %v3991_v55, %v4008_v58  ;;  %v1186_v28 = vrot.slane %v1179_v24, %v4116_v30  ;;  %v6266_v47 = vmov 0  ;;  %vm6268_vm8 = vmand %vm4700_vm13, %vm4288_vm14 }
 0x1a6   : > { %2064 = vrot.lane.b32.xlu0 %v4753_v41, %s3643_s7  ;;  %v6267_v47 = vsel %vm4859_vm6, 4294967295, %v6266_v47  ;;  %v1117_v48 = vsel %vm6268_vm8, %v1115_v37, 0.0  ;;  %v1119_v15 = vstv %s4793_s14  ;;  %v1090_v58 = vmul.f32 %v1089_v26, %v1087_v42  ;;  %vm6167_vm11 = vmand %vm4859_vm6, %vm4163_vm9  ;;  %s5105_s14 = sld [smem:[#allocation6 + $0x28]] }
 0x1a7   : > { %v1061_v55 = vadd.f32 %v1060_v49, %v1037_v7  ;;  %v1147_v17 = vsel %vm6166_vm15, %v1145_v45, 0.0  ;;  %v1149_v20 = vstv %s4801_s30  ;;  %v1216_v56 = vrot.slane %v1209_v22, %v4116_v30  ;;  %vm6168_vm15 = vmand %vm4859_vm6, %vm4167_vm10  ;;  %s5120_s30 = sld [smem:[#allocation6 + $0x29]] }
 0x1a8   : > { %v1239_v57 = vrot.slane %v1232_v40, %v4116_v30  ;;  %2118 = vrot.lane.b32.xlu1 %v4748_v25, %s3645_s12  ;;  %vm6269_vm8 = vcmp.lt.s32.totalorder %v3878_v35, 127  ;;  %v1120_v2 = vmul.f32 %v1119_v15, %v1117_v48  ;;  %v1263_v27 = vrot.slane %v1256_v38, %v4116_v30  ;;  %v2206_v44 = vpop.permute.xlu1 %2205  ;;  %v1339_v34 = vpop.permute.xlu0 %1338 }
 0x1a9   : > { %v1282_v61 = vsel %vm6269_vm8, %v1279_v43, %v1281_v14  ;;  %vm6270_vm1 = vmmov %vm6269_vm8  ;;  %v1091_v63 = vadd.f32 %v1090_v58, %v1061_v55  ;;  %v1150_v13 = vmul.f32 %v1149_v20, %v1147_v17  ;;  %v1188_v4 = vsel %vm6167_vm11, %v1186_v28, 0.0 }
 0x1aa   : > { %2116 = vrot.lane.b32.xlu0 %v4753_v41, %s3645_s12  ;;  %v1283_v62 = vsel %vm6270_vm1, %v1281_v14, %v1279_v43  ;;  %v1190_v1 = vstv %s4828_s21  ;;  %vm6271_vm8 = vcmp.lt.s32.totalorder %v3878_v35, 16  ;;  %v1220_v37 = vstv %s4835_s26  ;;  %vm6169_vm11 = vmand %vm4859_vm6, %vm4175_vm3  ;;  %s4984_s21 = sld [smem:[#allocation6 + $0x22]] }
 0x1ab   : > { %v4904_v43 = vsel %vm6271_vm8, %v2204_v18, %v2206_v44  ;;  %vm6272_vm1 = vmmov %vm6271_vm8  ;;  %v1121_v16 = vadd.f32 %v1120_v2, %v1091_v63  ;;  %v1246_v24 = vrot.slane %v1239_v57, %v4116_v30  ;;  %v1286_v14 = vcombine.low %v1282_v61, %v1283_v62  ;;  %s5002_s26 = sld [smem:[#allocation6 + $0x23]] }
 0x1ac   : > { %v4908_v5 = vsel %vm6272_vm1, %v2206_v44, %v2204_v18  ;;  %2147 = vrot.lane.b32.xlu1 %v4748_v25, %s3646_s10  ;;  %v1218_v33 = vsel %vm6168_vm15, %v1216_v56, 0.0  ;;  %vm6273_vm8 = vcmp.lt.s32.totalorder %v3878_v35, 126  ;;  %v1191_v40 = vmul.f32 %v1190_v1, %v1188_v4  ;;  %v1341_v26 = vpop.permute.xlu1 %1340  ;;  %v1380_v7 = vpop.permute.xlu0 %1379 }
 0x1ad   : > { %v2298_v45 = vcombine.low %v4908_v5, %v4904_v43  ;;  %v1312_v53 = vsel %vm6273_vm8, %v1309_v52, %v1311_v8  ;;  %vm6274_vm1 = vmmov %vm6273_vm8  ;;  %v1151_v22 = vadd.f32 %v1150_v13, %v1121_v16  ;;  %v1270_v42 = vrot.slane %v1263_v27, %v4116_v30  ;;  %v4976_v13 = vld [vmem:[%s6122_s2] sm:$0x3] }
 0x1ae   : > { %2145 = vrot.lane.b32.xlu0 %v4753_v41, %s3646_s10  ;;  %v1313_v49 = vsel %vm6274_vm1, %v1311_v8, %v1309_v52  ;;  %vm6275_vm15 = vcmp.lt.s32.totalorder %v3878_v35, 125  ;;  %v1221_v52 = vmul.f32 %v1220_v37, %v1218_v33  ;;  %v1293_v8 = vrot.slane %v1286_v14, %v4116_v30 }
 0x1af   : > { %v1342_v38 = vsel %vm6275_vm15, %v1339_v34, %v1341_v26  ;;  %vm6276_vm8 = vmmov %vm6275_vm15  ;;  %v1192_v18 = vadd.f32 %v1191_v40, %v1151_v22  ;;  %v1316_v48 = vcombine.low %v1312_v53, %v1313_v49  ;;  %v1248_v15 = vsel %vm6169_vm11, %v1246_v24, 0.0 }
 0x1b0   : > { %v1343_v28 = vsel %vm6276_vm8, %v1341_v26, %v1339_v34  ;;  %3011 = vrot.lane.b32.xlu1 %v3863_v29, %s3644_s11  ;;  %v1250_v55 = vstv %s4885_s20  ;;  %vm6170_vm15 = vmand %vm4859_vm6, %vm4232_vm7  ;;  %v1382_v20 = vpop.permute.xlu1 %1381  ;;  %v1410_v56 = vpop.permute.xlu0 %1409  ;;  %vm6277_vm1 = vcmp.lt.s32.totalorder %v3878_v35, 3  ;;  %v1274_v63 = vstv %s4911_s24  ;;  %s5010_s20 = sld [smem:[#allocation6 + $0x24]] }
 0x1b1   : > { %v1222_v58 = vadd.f32 %v1221_v52, %v1192_v18  ;;  %v1346_v17 = vcombine.low %v1342_v38, %v1343_v28  ;;  %v1383_v57 = vsel %vm6277_vm1, %v1380_v7, %v1382_v20  ;;  %vm6278_vm8 = vmmov %vm6277_vm1  ;;  %v1251_v62 = vmul.f32 %v1250_v55, %v1248_v15  ;;  %s5037_s24 = sld [smem:[#allocation6 + $0x25]] }
 0x1b2   : > { %3009 = vrot.lane.b32.xlu0 %v3869_v31, %s3644_s11  ;;  %v1384_v61 = vsel %vm6278_vm8, %v1382_v20, %v1380_v7  ;;  %v1300_v2 = vrot.slane %v1293_v8, %v4116_v30  ;;  %v1323_v27 = vrot.slane %v1316_v48, %v4116_v30  ;;  %v1272_v34 = vsel %vm6170_vm15, %v1270_v42, 0.0  ;;  %s4971_s11 = sld [smem:[#allocation6 + $0x21]]  ;;  %vm6171_vm1 = vmand %vm4859_vm6, %vm4273_vm12 }
 0x1b3   : > { %v1387_v44 = vcombine.low %v1384_v61, %v1383_v57  ;;  %v1367_v4 = vadd.s32 2, %v4976_v13  ;;  %v1252_v1 = vadd.f32 %v1251_v62, %v1222_v58  ;;  %v1353_v16 = vrot.slane %v1346_v17, %v4116_v30  ;;  %vm6174_vm15 = vmand %vm4859_vm6, %vm4316_vm0 }
 0x1b4   : > { %2176 = vrot.lane.b32.xlu1 %v4748_v25, %s3647_s13  ;;  %v1412_v37 = vpop.permute.xlu1 %1411  ;;  %v1440_v24 = vpop.permute.xlu0 %1439  ;;  %vm6279_vm8 = vcmp.lt.s32.totalorder %v3878_v35, 2  ;;  %v1275_v53 = vmul.f32 %v1274_v63, %v1272_v34  ;;  %v1304_v49 = vstv %s4938_s28  ;;  %v1330_v22 = vrot.slane %v1323_v27, %v4116_v30  ;;  %s5076_s28 = sld [smem:[#allocation6 + $0x26]] }
 0x1b5   : > { %v1413_v14 = vsel %vm6279_vm8, %v1410_v56, %v1412_v37  ;;  %vm6280_vm11 = vmmov %vm6279_vm8  ;;  %v1394_v40 = vrot.slane %v1387_v44, %v4116_v30  ;;  %v1302_v26 = vsel %vm6171_vm1, %v1300_v2, 0.0  ;;  %vm1369_vm8 = vcmp.lt.s32.totalorder %v1367_v4, 16 }
 0x1b6   : > { %2174 = vrot.lane.b32.xlu0 %v4753_v41, %s3647_s13  ;;  %v1414_v33 = vsel %vm6280_vm11, %v1412_v37, %v1410_v56  ;;  %v1276_v7 = vadd.f32 %v1275_v53, %v1252_v1  ;;  %v1360_v38 = vrot.slane %v1353_v16, %v4116_v30  ;;  %vm6281_vm1 = vcmp.lt.s32.totalorder %v3878_v35, 1 }
 0x1b7   : > { %v1417_v42 = vcombine.low %v1414_v33, %v1413_v14  ;;  %vm6282_vm11 = vmmov %vm6281_vm1  ;;  %v1305_v15 = vmul.f32 %v1304_v49, %v1302_v26  ;;  %v1401_v55 = vrot.slane %v1394_v40, %v4116_v30  ;;  %v1471_v57 = vcombine.low %v4053_v3, %v4065_v6 }
 0x1b8   : > { %2211 = vrot.lane.b32.xlu1 %v4904_v43, %s3640_s25  ;;  %v1442_v18 = vpop.permute.xlu1 %1441  ;;  %v1494_v52 = vpop.permute.xlu0 %1493  ;;  %v1334_v56 = vstv %s4971_s11  ;;  %v1362_v44 = vsel %vm6174_vm15, %v1360_v38, 0.0  ;;  %v1364_v3 = vstv %s4984_s21  ;;  %s5100_s11 = sld [smem:[#allocation6 + $0x27]]  ;;  %v2305_v39 = vrot.slane %v2298_v45, %v4116_v30 }
 0x1b9   : > { %v1424_v28 = vrot.slane %v1417_v42, %v4116_v30  ;;  %v1443_v8 = vsel %vm6281_vm1, %v1440_v24, %v1442_v18  ;;  %v1444_v48 = vsel %vm6282_vm11, %v1442_v18, %v1440_v24  ;;  %vm6283_vm1 = vcmp.ge.s32.totalorder %v1367_v4, 0  ;;  %vm6286_vm11 = vmand %vm4859_vm6, %vm4288_vm14  ;;  %s5134_s21 = sld [smem:[#allocation6 + $0x2a]] }
 0x1ba   : > { %2209 = vrot.lane.b32.xlu0 %v4908_v5, %s3640_s25  ;;  %v1447_v58 = vcombine.low %v1444_v48, %v1443_v8  ;;  %vm5027_vm13 = vmand %vm6283_vm1, %vm1369_vm8  ;;  %v1332_v20 = vsel %vm6286_vm11, %v1330_v22, 0.0  ;;  %v1306_v61 = vadd.f32 %v1305_v15, %v1276_v7  ;;  %vm6287_vm1 = vcmp.lt.s32.totalorder %v3878_v35, 127 }
 0x1bb   : > { %v1431_v62 = vrot.slane %v1424_v28, %v4116_v30  ;;  %vm6288_vm11 = vmmov %vm6287_vm1  ;;  %v1335_v4 = vmul.f32 %v1334_v56, %v1332_v20  ;;  %v1405_v24 = vstv %s5002_s26  ;;  %v1365_v33 = vmul.f32 %v1364_v3, %v1362_v44  ;;  %s5155_s26 = sld [smem:[#allocation6 + $0x2b]] }
 0x1bc   : > { %2240 = vrot.lane.b32.xlu1 %v4904_v43, %s3642_s6  ;;  %v1454_v63 = vrot.slane %v1447_v58, %v4116_v30  ;;  %v1496_v2 = vpop.permute.xlu1 %1495  ;;  %v1524_v27 = vpop.permute.xlu0 %1523  ;;  %vm6176_vm8 = vmand %vm5027_vm13, %vm4167_vm10  ;;  %v1478_v53 = vrot.slane %v1471_v57, %v4116_v30  ;;  %v1435_v42 = vstv %s5010_s20  ;;  %v1465_v8 = vstv %s5037_s24  ;;  %s5189_s20 = sld [smem:[#allocation6 + $0x2c]] }
 0x1bd   : > { %v1497_v6 = vsel %vm6287_vm1, %v1494_v52, %v1496_v2  ;;  %v1498_v34 = vsel %vm6288_vm11, %v1496_v2, %v1494_v52  ;;  %vm6289_vm1 = vmand %vm5027_vm13, %vm4163_vm9  ;;  %v1336_v14 = vadd.f32 %v1335_v4, %v1306_v61  ;;  %v1433_v40 = vsel %vm6176_vm8, %v1431_v62, 0.0  ;;  %s5205_s24 = sld [smem:[#allocation6 + $0x2d]] }
 0x1be   : > { %2238 = vrot.lane.b32.xlu0 %v4908_v5, %s3642_s6  ;;  %v1461_v1 = vrot.slane %v1454_v63, %v4116_v30  ;;  %v1501_v16 = vcombine.low %v1497_v6, %v1498_v34  ;;  %v1403_v37 = vsel %vm6289_vm1, %v1401_v55, 0.0  ;;  %vm6175_vm11 = vmand %vm5027_vm13, %vm4175_vm3  ;;  %vm6290_vm1 = vcmp.lt.s32.totalorder %v3878_v35, 126 }
 0x1bf   : > { %vm6291_vm15 = vmmov %vm6290_vm1  ;;  %v1406_v38 = vmul.f32 %v1405_v24, %v1403_v37  ;;  %v1366_v48 = vadd.f32 %v1365_v33, %v1336_v14  ;;  %v1436_v15 = vmul.f32 %v1435_v42, %v1433_v40  ;;  %v1485_v55 = vrot.slane %v1478_v53, %v4116_v30 }
 0x1c0   : > { %2269 = vrot.lane.b32.xlu1 %v4904_v43, %s3643_s7  ;;  %v1526_v49 = vpop.permute.xlu1 %1525  ;;  %v1554_v22 = vpop.permute.xlu0 %1553  ;;  %v1508_v28 = vrot.slane %v1501_v16, %v4116_v30  ;;  %v1463_v52 = vsel %vm6175_vm11, %v1461_v1, 0.0  ;;  %v1582_v57 = vadd.s32 3, %v4976_v13  ;;  %vm6179_vm11 = vmand %vm5027_vm13, %vm4232_vm7  ;;  %v1489_v3 = vstv %s5076_s28  ;;  %s5220_s28 = sld [smem:[#allocation6 + $0x2e]] }
 0x1c1   : > { %v1527_v26 = vsel %vm6290_vm1, %v1524_v27, %v1526_v49  ;;  %v1528_v7 = vsel %vm6291_vm15, %v1526_v49, %v1524_v27  ;;  %vm6292_vm15 = vcmp.lt.s32.totalorder %v3878_v35, 125  ;;  %v1407_v63 = vadd.f32 %v1406_v38, %v1366_v48 }
 0x1c2   : > { %2267 = vrot.lane.b32.xlu0 %v4908_v5, %s3643_s7  ;;  %v1531_v18 = vcombine.low %v1527_v26, %v1528_v7  ;;  %vm6293_vm1 = vmmov %vm6292_vm15  ;;  %v1466_v2 = vmul.f32 %v1465_v8, %v1463_v52  ;;  %v1515_v27 = vrot.slane %v1508_v28, %v4116_v30  ;;  %v1487_v16 = vsel %vm6179_vm11, %v1485_v55, 0.0 }
 0x1c3   : > { %v1437_v13 = vadd.f32 %v1436_v15, %v1407_v63  ;;  %vm6294_vm8 = vcmp.lt.s32.totalorder %v3878_v35, 3  ;;  %vm1584_vm6 = vcmp.lt.s32.totalorder %v1582_v57, 16  ;;  %v1490_v40 = vmul.f32 %v1489_v3, %v1487_v16 }
 0x1c4   : > { %2321 = vrot.lane.b32.xlu1 %v4904_v43, %s3645_s12  ;;  %v1538_v58 = vrot.slane %v1531_v18, %v4116_v30  ;;  %v1556_v20 = vpop.permute.xlu1 %1555  ;;  %v1595_v56 = vpop.permute.xlu0 %1594  ;;  %v1686_v42 = vcombine.low %v4122_v32, %v4142_v50  ;;  %vm6297_vm11 = vcmp.ge.s32.totalorder %v1582_v57, 0  ;;  %v1549_v52 = vstv %s5105_s14  ;;  %s3386_s14 = sld [smem:[#allocation6 + $0x30]] }
 0x1c5   : > { %v1557_v61 = vsel %vm6292_vm15, %v1554_v22, %v1556_v20  ;;  %v1558_v62 = vsel %vm6293_vm1, %v1556_v20, %v1554_v22  ;;  %vm6295_vm15 = vmmov %vm6294_vm8  ;;  %v1467_v14 = vadd.f32 %v1466_v2, %v1437_v13  ;;  %v1519_v22 = vstv %s5100_s11  ;;  %s5248_s11 = sld [smem:[#allocation6 + $0x2f]] }
 0x1c6   : > { %2319 = vrot.lane.b32.xlu0 %v4908_v5, %s3645_s12  ;;  %v1561_v44 = vcombine.low %v1557_v61, %v1558_v62  ;;  %v1545_v6 = vrot.slane %v1538_v58, %v4116_v30  ;;  %vm6183_vm1 = vmand %vm5027_vm13, %vm4288_vm14  ;;  %v1579_v20 = vstv %s5120_s30  ;;  %v1693_v57 = vrot.slane %v1686_v42, %v4116_v30  ;;  %s5315_s30 = sld [smem:[#allocation6 + $0x31]] }
 0x1c7   : > { %v1491_v8 = vadd.f32 %v1490_v40, %v1467_v14 }
 0x1c8   : > { %2350 = vrot.lane.b32.xlu1 %v4904_v43, %s3646_s10  ;;  %v1568_v34 = vrot.slane %v1561_v44, %v4116_v30  ;;  %v1597_v4 = vpop.permute.xlu1 %1596  ;;  %v1625_v1 = vpop.permute.xlu0 %1624  ;;  %v1547_v18 = vsel %vm6183_vm1, %v1545_v6, 0.0 }
 0x1c9   : > { %v1598_v37 = vsel %vm6294_vm8, %v1595_v56, %v1597_v4  ;;  %v1599_v24 = vsel %vm6295_vm15, %v1597_v4, %v1595_v56  ;;  %vm6296_vm8 = vmand %vm5027_vm13, %vm4273_vm12  ;;  %vm6300_vm15 = vcmp.lt.s32.totalorder %v3878_v35, 2  ;;  %v1550_v56 = vmul.f32 %v1549_v52, %v1547_v18 }
 0x1ca   : > { %2348 = vrot.lane.b32.xlu0 %v4908_v5, %s3646_s10  ;;  %v1575_v33 = vrot.slane %v1568_v34, %v4116_v30  ;;  %v1602_v53 = vcombine.low %v1599_v24, %v1598_v37  ;;  %v1517_v49 = vsel %vm6296_vm8, %v1515_v27, 0.0  ;;  %vm5166_vm8 = vmand %vm6297_vm11, %vm1584_vm6  ;;  %v1620_v27 = vstv %s5134_s21  ;;  %s5331_s21 = sld [smem:[#allocation6 + $0x32]] }
 0x1cb   : > { %vm6301_vm4 = vmmov %vm6300_vm15  ;;  %v1520_v48 = vmul.f32 %v1519_v22, %v1517_v49  ;;  %vm6303_vm11 = vcmp.lt.s32.totalorder %v3878_v35, 1  ;;  %v1700_v24 = vrot.slane %v1693_v57, %v4116_v30 }
 0x1cc   : > { %2379 = vrot.lane.b32.xlu1 %v4904_v43, %s3647_s13  ;;  %v1609_v26 = vrot.slane %v1602_v53, %v4116_v30  ;;  %v1627_v7 = vpop.permute.xlu1 %1626  ;;  %v1655_v38 = vpop.permute.xlu0 %1654  ;;  %vm6182_vm6 = vmand %vm5166_vm8, %vm4163_vm9 }
 0x1cd   : > { %v1628_v32 = vsel %vm6300_vm15, %v1625_v1, %v1627_v7  ;;  %v1629_v50 = vsel %vm6301_vm4, %v1627_v7, %v1625_v1  ;;  %vm6302_vm4 = vmand %vm5027_vm13, %vm4316_vm0  ;;  %v1521_v3 = vadd.f32 %v1520_v48, %v1491_v8  ;;  %v1650_v1 = vstv %s5155_s26  ;;  %s5351_s26 = sld [smem:[#allocation6 + $0x33]] }
 0x1ce   : > { %2377 = vrot.lane.b32.xlu0 %v4908_v5, %s3647_s13  ;;  %v1616_v15 = vrot.slane %v1609_v26, %v4116_v30  ;;  %v1632_v55 = vcombine.low %v1629_v50, %v1628_v32  ;;  %v1577_v58 = vsel %vm6302_vm4, %v1575_v33, 0.0  ;;  %vm6304_vm15 = vmmov %vm6303_vm11  ;;  %v1680_v7 = vstv %s5189_s20  ;;  %s5353_s20 = sld [smem:[#allocation6 + $0x34]] }
 0x1cf   : > { %v1580_v6 = vmul.f32 %v1579_v20, %v1577_v58  ;;  %vm1623_vm4 = vmand %vm5166_vm8, %vm4167_vm10  ;;  %v1551_v16 = vadd.f32 %v1550_v56, %v1521_v3 }
 0x1d0   : > { %2408 = vrot.lane.b32.xlu1 %v3863_v29, %s3640_s25  ;;  %v1639_v61 = vrot.slane %v1632_v55, %v4116_v30  ;;  %v1657_v62 = vpop.permute.xlu1 %1656  ;;  %v1709_v63 = vpop.permute.xlu0 %1708  ;;  %v1618_v2 = vsel %vm6182_vm6, %v1616_v15, 0.0  ;;  %vm6305_vm6 = vcmp.lt.s32.totalorder %v3878_v35, 127  ;;  %v1704_v55 = vstv %s5205_s24  ;;  %s5372_s24 = sld [smem:[#allocation6 + $0x35]] }
 0x1d1   : > { %v1658_v44 = vsel %vm6303_vm11, %v1655_v38, %v1657_v62  ;;  %v1659_v13 = vsel %vm6304_vm15, %v1657_v62, %v1655_v38  ;;  %v1621_v37 = vmul.f32 %v1620_v27, %v1618_v2  ;;  %vm6185_vm11 = vmand %vm5166_vm8, %vm4232_vm7  ;;  %v1581_v42 = vadd.f32 %v1580_v6, %v1551_v16 }
 0x1d2   : > { %2406 = vrot.lane.b32.xlu0 %v3869_v31, %s3640_s25  ;;  %v1646_v34 = vrot.slane %v1639_v61, %v4116_v30  ;;  %v1662_v4 = vcombine.low %v1659_v13, %v1658_v44  ;;  %vm6184_vm15 = vmand %vm5166_vm8, %vm4175_vm3  ;;  %v1702_v15 = vsel %vm6185_vm11, %v1700_v24, 0.0  ;;  %v1734_v61 = vstv %s5220_s28  ;;  %s5391_s28 = sld [smem:[#allocation6 + $0x36]] }
 0x1d3   : > { %vm6306_vm1 = vmmov %vm6305_vm6  ;;  %v1622_v52 = vadd.f32 %v1621_v37, %v1581_v42  ;;  %v1705_v2 = vmul.f32 %v1704_v55, %v1702_v15  ;;  %v1764_v37 = vstv %s5248_s11  ;;  %s3393_s11 = sld [smem:[#allocation6 + $0x37]] }
 0x1d4   : > { %2437 = vrot.lane.b32.xlu1 %v3863_v29, %s3642_s6  ;;  %v1669_v14 = vrot.slane %v1662_v4, %v4116_v30  ;;  %v1711_v33 = vpop.permute.xlu1 %1710  ;;  %v1739_v53 = vpop.permute.xlu0 %1738  ;;  %v1648_v49 = vsel %vm1623_vm4, %v1646_v34, 0.0 }
 0x1d5   : > { %v1712_v22 = vsel %vm6305_vm6, %v1709_v63, %v1711_v33  ;;  %v1713_v40 = vsel %vm6306_vm1, %v1711_v33, %v1709_v63  ;;  %v1651_v26 = vmul.f32 %v1650_v1, %v1648_v49  ;;  %vm6188_vm1 = vmand %vm5166_vm8, %vm4273_vm12  ;;  %vm6307_vm6 = vcmp.lt.s32.totalorder %v3878_v35, 126 }
 0x1d6   : > { %2435 = vrot.lane.b32.xlu0 %v3869_v31, %s3642_s6  ;;  %v1676_v38 = vrot.slane %v1669_v14, %v4116_v30  ;;  %v1716_v18 = vcombine.low %v1712_v22, %v1713_v40 }
 0x1d7   : > { %v1652_v57 = vadd.f32 %v1651_v26, %v1622_v52 }
 0x1d8   : > { %2466 = vrot.lane.b32.xlu1 %v3863_v29, %s3643_s7  ;;  %v1678_v32 = vsel %vm6184_vm15, %v1676_v38, 0.0  ;;  %v1723_v50 = vrot.slane %v1716_v18, %v4116_v30  ;;  %v1741_v8 = vpop.permute.xlu1 %1740  ;;  %v2604_v48 = vpop.permute.xlu0 %2603  ;;  %vm6308_vm15 = vmmov %vm6307_vm6 }
 0x1d9   : > { %v1681_v58 = vmul.f32 %v1680_v7, %v1678_v32  ;;  %v1742_v20 = vsel %vm6307_vm6, %v1739_v53, %v1741_v8  ;;  %v1743_v56 = vsel %vm6308_vm15, %v1741_v8, %v1739_v53  ;;  %vm6186_vm15 = vmand %vm5166_vm8, %vm4288_vm14  ;;  %vm6309_vm6 = vcmp.lt.s32.totalorder %v3878_v35, 112 }
 0x1da   : > { %2464 = vrot.lane.b32.xlu0 %v3869_v31, %s3643_s7  ;;  %v1730_v62 = vrot.slane %v1723_v50, %v4116_v30  ;;  %v1746_v63 = vcombine.low %v1742_v20, %v1743_v56  ;;  %vm6310_vm11 = vmmov %vm6309_vm6 }
 0x1db   : > { %v1682_v27 = vadd.f32 %v1681_v58, %v1652_v57  ;;  %v1892_v58 = vcombine.low %v4376_v23, %v4406_v11 }
 0x1dc   : > { %2518 = vrot.lane.b32.xlu1 %v3863_v29, %s3645_s12  ;;  %v1732_v44 = vsel %vm6188_vm1, %v1730_v62, 0.0  ;;  %v1753_v13 = vrot.slane %v1746_v63, %v4116_v30  ;;  %v2606_v3 = vpop.permute.xlu1 %2605  ;;  %v1769_v6 = vpop.permute.xlu0 %1768 }
 0x1dd   : > { %v1735_v34 = vmul.f32 %v1734_v61, %v1732_v44  ;;  %v5288_v4 = vsel %vm6309_vm6, %v2604_v48, %v2606_v3  ;;  %v5292_v1 = vsel %vm6310_vm11, %v2606_v3, %v2604_v48  ;;  %v1706_v16 = vadd.f32 %v1705_v2, %v1682_v27 }
 0x1de   : > { %2516 = vrot.lane.b32.xlu0 %v3869_v31, %s3645_s12  ;;  %v1760_v24 = vrot.slane %v1753_v13, %v4116_v30  ;;  %v2698_v14 = vcombine.low %v5288_v4, %v5292_v1  ;;  %vm6311_vm11 = vcmp.lt.s32.totalorder %v3878_v35, 125  ;;  %v1794_v48 = vstv %s3386_s14  ;;  %s3394_s14 = sld [smem:[#allocation6 + $0x38]] }
 0x1df   : > { %v1736_v33 = vadd.f32 %v1735_v34, %v1706_v16  ;;  %vm6312_vm6 = vmmov %vm6311_vm11  ;;  %v1829_v27 = vstv %s5315_s30  ;;  %v1899_v13 = vrot.slane %v1892_v58, %v4116_v30  ;;  %v1910_v58 = vstv %s5353_s20  ;;  %s5477_s30 = sld [smem:[#allocation6 + $0x39]] }
 0x1e0   : > { %2547 = vrot.lane.b32.xlu1 %v3863_v29, %s3646_s10  ;;  %v1762_v53 = vsel %vm6186_vm15, %v1760_v24, 0.0  ;;  %v1771_v49 = vpop.permute.xlu1 %1770  ;;  %v1804_v22 = vpop.permute.xlu0 %1803  ;;  %s5509_s20 = sld [smem:[#allocation6 + $0x3c]] }
 0x1e1   : > { %v1765_v40 = vmul.f32 %v1764_v37, %v1762_v53  ;;  %v1772_v42 = vsel %vm6311_vm11, %v1769_v6, %v1771_v49  ;;  %v1773_v26 = vsel %vm6312_vm6, %v1771_v49, %v1769_v6  ;;  %vm6187_vm11 = vmand %vm5166_vm8, %vm4316_vm0  ;;  %vm6313_vm6 = vcmp.lt.s32.totalorder %v3878_v35, 3 }
 0x1e2   : > { %2545 = vrot.lane.b32.xlu0 %v3869_v31, %s3646_s10  ;;  %v1776_v7 = vcombine.low %v1772_v42, %v1773_v26  ;;  %vm6314_vm15 = vmmov %vm6313_vm6  ;;  %v1858_v53 = vstv %s5331_s21  ;;  %v1906_v42 = vrot.slane %v1899_v13, %v4116_v30  ;;  %s5489_s21 = sld [smem:[#allocation6 + $0x3a]] }
 0x1e3   : > { %v1766_v38 = vadd.f32 %v1765_v40, %v1736_v33 }
 0x1e4   : > { %2576 = vrot.lane.b32.xlu1 %v3863_v29, %s3647_s13  ;;  %v1783_v18 = vrot.slane %v1776_v7, %v4116_v30  ;;  %v1806_v52 = vpop.permute.xlu1 %1805  ;;  %v1833_v32 = vpop.permute.xlu0 %1832 }
 0x1e5   : > { %v1807_v50 = vsel %vm6313_vm6, %v1804_v22, %v1806_v52  ;;  %v1808_v8 = vsel %vm6314_vm15, %v1806_v52, %v1804_v22  ;;  %vm6315_vm15 = vcmp.lt.s32.totalorder %v3878_v35, 2  ;;  %v2061_v25 = vstv %s5477_s30  ;;  %s5694_s30 = sld [smem:[#allocation6 + $0x47]] }
 0x1e6   : > { %2574 = vrot.lane.b32.xlu0 %v3869_v31, %s3647_s13  ;;  %v1790_v15 = vrot.slane %v1783_v18, %v4116_v30  ;;  %v1811_v55 = vcombine.low %v1808_v8, %v1807_v50  ;;  %vm6316_vm6 = vmmov %vm6315_vm15  ;;  %v1887_v8 = vstv %s5351_s26  ;;  %s5491_s26 = sld [smem:[#allocation6 + $0x3b]] }
 0x1e8   : > { %2611 = vrot.lane.b32.xlu1 %v5292_v1, %s3640_s25  ;;  %v1792_v20 = vsel %vm6187_vm11, %v1790_v15, 0.0  ;;  %v1818_v56 = vrot.slane %v1811_v55, %v4116_v30  ;;  %v1835_v57 = vpop.permute.xlu1 %1834  ;;  %v1862_v61 = vpop.permute.xlu0 %1861 }
 0x1e9   : > { %v1795_v62 = vmul.f32 %v1794_v48, %v1792_v20  ;;  %v1836_v63 = vsel %vm6315_vm15, %v1833_v32, %v1835_v57  ;;  %v1837_v2 = vsel %vm6316_vm6, %v1835_v57, %v1833_v32  ;;  %vm6317_vm15 = vmand %vm4146_vm5, %vm4163_vm9  ;;  %vm6318_vm6 = vcmp.lt.s32.totalorder %v3878_v35, 1 }
 0x1ea   : > { %2609 = vrot.lane.b32.xlu0 %v5288_v4, %s3640_s25  ;;  %v1825_v23 = vrot.slane %v1818_v56, %v4116_v30  ;;  %v1840_v11 = vcombine.low %v1837_v2, %v1836_v63  ;;  %vm6319_vm11 = vmmov %vm6318_vm6 }
 0x1eb   : > { %v1796_v44 = vadd.f32 %v1795_v62, %v1766_v38 }
 0x1ec   : > { %2640 = vrot.lane.b32.xlu1 %v5292_v1, %s3642_s6  ;;  %v1827_v3 = vsel %vm6317_vm15, %v1825_v23, 0.0  ;;  %v1847_v6 = vrot.slane %v1840_v11, %v4116_v30  ;;  %v1864_v34 = vpop.permute.xlu1 %1863  ;;  %v1914_v16 = vpop.permute.xlu0 %1913  ;;  %vm6321_vm15 = vcmp.lt.s32.totalorder %v3878_v35, 127 }
 0x1ed   : > { %v1830_v37 = vmul.f32 %v1829_v27, %v1827_v3  ;;  %v1865_v24 = vsel %vm6318_vm6, %v1862_v61, %v1864_v34  ;;  %v1866_v33 = vsel %vm6319_vm11, %v1864_v34, %v1862_v61  ;;  %vm6320_vm11 = vmand %vm4146_vm5, %vm4167_vm10  ;;  %v1939_v27 = vstv %s5372_s24  ;;  %s5524_s24 = sld [smem:[#allocation6 + $0x3d]] }
 0x1ee   : > { %2638 = vrot.lane.b32.xlu0 %v5288_v4, %s3642_s6  ;;  %v1854_v49 = vrot.slane %v1847_v6, %v4116_v30  ;;  %v1869_v22 = vcombine.low %v1866_v33, %v1865_v24  ;;  %vm6322_vm6 = vmmov %vm6321_vm15 }
 0x1ef   : > { %v1831_v40 = vadd.f32 %v1830_v37, %v1796_v44 }
 0x1f0   : > { %2669 = vrot.lane.b32.xlu1 %v5292_v1, %s3643_s7  ;;  %v1856_v26 = vsel %vm6320_vm11, %v1854_v49, 0.0  ;;  %v1876_v7 = vrot.slane %v1869_v22, %v4116_v30  ;;  %v1916_v38 = vpop.permute.xlu1 %1915  ;;  %v1943_v18 = vpop.permute.xlu0 %1942  ;;  %vm6323_vm11 = vmand %vm4146_vm5, %vm4232_vm7  ;;  %v1968_v49 = vstv %s5391_s28  ;;  %s5575_s28 = sld [smem:[#allocation6 + $0x3e]] }
 0x1f1   : > { %v1859_v52 = vmul.f32 %v1858_v53, %v1856_v26  ;;  %v1917_v32 = vsel %vm6321_vm15, %v1914_v16, %v1916_v38  ;;  %v1918_v50 = vsel %vm6322_vm6, %v1916_v38, %v1914_v16  ;;  %v1908_v20 = vsel %vm6323_vm11, %v1906_v42, 0.0  ;;  %vm6324_vm15 = vmand %vm4146_vm5, %vm4175_vm3 }
 0x1f2   : > { %2667 = vrot.lane.b32.xlu0 %v5288_v4, %s3643_s7  ;;  %v1883_v48 = vrot.slane %v1876_v7, %v4116_v30  ;;  %v1921_v15 = vcombine.low %v1917_v32, %v1918_v50  ;;  %vm6325_vm6 = vcmp.lt.s32.totalorder %v3878_v35, 126  ;;  %v1911_v13 = vmul.f32 %v1910_v58, %v1908_v20  ;;  %vm6327_vm11 = vmand %vm4146_vm5, %vm4273_vm12 }
 0x1f3   : > { %v1860_v55 = vadd.f32 %v1859_v52, %v1831_v40  ;;  %vm6326_vm1 = vmmov %vm6325_vm6 }
 0x1f4   : > { %2721 = vrot.lane.b32.xlu1 %v5292_v1, %s3645_s12  ;;  %v1885_v56 = vsel %vm6324_vm15, %v1883_v48, 0.0  ;;  %v1928_v57 = vrot.slane %v1921_v15, %v4116_v30  ;;  %v1945_v61 = vpop.permute.xlu1 %1944  ;;  %v2807_v44 = vpop.permute.xlu0 %2806  ;;  %v1997_v15 = vstv %s3393_s11  ;;  %s5613_s11 = sld [smem:[#allocation6 + $0x42]] }
 0x1f5   : > { %v1888_v62 = vmul.f32 %v1887_v8, %v1885_v56  ;;  %v1946_v63 = vsel %vm6325_vm6, %v1943_v18, %v1945_v61  ;;  %v1947_v2 = vsel %vm6326_vm1, %v1945_v61, %v1943_v18  ;;  %vm6328_vm1 = vcmp.lt.s32.totalorder %v3878_v35, 96  ;;  %vm6330_vm6 = vmand %vm4146_vm5, %vm4288_vm14 }
 0x1f6   : > { %2719 = vrot.lane.b32.xlu0 %v5288_v4, %s3645_s12  ;;  %v1935_v23 = vrot.slane %v1928_v57, %v4116_v30  ;;  %v1950_v11 = vcombine.low %v1946_v63, %v1947_v2  ;;  %vm6329_vm15 = vmmov %vm6328_vm1 }
 0x1f7   : > { %v1889_v3 = vadd.f32 %v1888_v62, %v1860_v55 }
 0x1f8   : > { %2750 = vrot.lane.b32.xlu1 %v5292_v1, %s3646_s10  ;;  %v1937_v6 = vsel %vm6327_vm11, %v1935_v23, 0.0  ;;  %v1957_v34 = vrot.slane %v1950_v11, %v4116_v30  ;;  %v2809_v16 = vpop.permute.xlu1 %2808  ;;  %v1972_v7 = vpop.permute.xlu0 %1971  ;;  %vm6331_vm11 = vcmp.lt.s32.totalorder %v3878_v35, 125 }
 0x1f9   : > { %v1940_v37 = vmul.f32 %v1939_v27, %v1937_v6  ;;  %v5423_v24 = vsel %vm6328_vm1, %v2807_v44, %v2809_v16  ;;  %v5427_v33 = vsel %vm6329_vm15, %v2809_v16, %v2807_v44  ;;  %v1912_v53 = vadd.f32 %v1911_v13, %v1889_v3  ;;  %vm6332_vm1 = vmmov %vm6331_vm11 }
 0x1fa   : > { %2748 = vrot.lane.b32.xlu0 %v5288_v4, %s3646_s10  ;;  %v1964_v22 = vrot.slane %v1957_v34, %v4116_v30  ;;  %v2901_v40 = vcombine.low %v5423_v24, %v5427_v33  ;;  %vm6333_vm15 = vmand %vm4146_vm5, %vm4316_vm0  ;;  %vm6334_vm5 = vcmp.lt.s32.totalorder %v3878_v35, 3  ;;  %v2032_v13 = vstv %s3394_s14  ;;  %s5686_s14 = sld [smem:[#allocation6 + $0x46]] }
 0x1fb   : > { %v1941_v42 = vadd.f32 %v1940_v37, %v1912_v53  ;;  %v2102_v34 = vrot.slane %v2095_v12, %v4116_v30 }
 0x1fc   : > { %2779 = vrot.lane.b32.xlu1 %v5292_v1, %s3647_s13  ;;  %v1966_v26 = vsel %vm6330_vm6, %v1964_v22, 0.0  ;;  %v1974_v38 = vpop.permute.xlu1 %1973  ;;  %vm6335_vm6 = vmmov %vm6334_vm5 }
 0x1fd   : > { %v1969_v18 = vmul.f32 %v1968_v49, %v1966_v26  ;;  %v1975_v52 = vsel %vm6331_vm11, %v1972_v7, %v1974_v38  ;;  %v1976_v32 = vsel %vm6332_vm1, %v1974_v38, %v1972_v7  ;;  %vm6336_vm11 = vcmp.lt.s32.totalorder %v3878_v35, 2 }
 0x1fe   : > { %2777 = vrot.lane.b32.xlu0 %v5288_v4, %s3647_s13  ;;  %v1979_v50 = vcombine.low %v1975_v52, %v1976_v32  ;;  %vm6337_vm1 = vmmov %vm6336_vm11  ;;  %v2109_v38 = vrot.slane %v2102_v34, %v4116_v30 }
 0x1ff   : > { %v1970_v8 = vadd.f32 %v1969_v18, %v1941_v42 }
 0x200   : > { %2814 = vrot.lane.b32.xlu1 %v5427_v33, %s3640_s25  ;;  %v1986_v48 = vrot.slane %v1979_v50, %v4116_v30 }
 0x202   : > { %2812 = vrot.lane.b32.xlu0 %v5423_v24, %s3640_s25  ;;  %v1993_v55 = vrot.slane %v1986_v48, %v4116_v30 }
 0x204   : > { %2843 = vrot.lane.b32.xlu1 %v5427_v33, %s3642_s6  ;;  %v1995_v58 = vsel %vm6333_vm15, %v1993_v55, 0.0  ;;  %vm6338_vm15 = vmand %vm4337_vm2, %vm4163_vm9  ;;  %v2090_v55 = vstv %s5489_s21  ;;  %s5704_s21 = sld [smem:[#allocation6 + $0x48]] }
 0x205   : > { %v1998_v20 = vmul.f32 %v1997_v15, %v1995_v58 }
 0x206   : > { %2841 = vrot.lane.b32.xlu0 %v5423_v24, %s3642_s6 }
 0x207   : > { %v1999_v56 = vadd.f32 %v1998_v20, %v1970_v8 }
 0x208   : > { %2872 = vrot.lane.b32.xlu1 %v5427_v33, %s3643_s7 }
 0x20a   : > { %2870 = vrot.lane.b32.xlu0 %v5423_v24, %s3643_s7 }
 0x20c   : > { %2924 = vrot.lane.b32.xlu1 %v5427_v33, %s3645_s12 }
 0x20e   : > { %2922 = vrot.lane.b32.xlu0 %v5423_v24, %s3645_s12  ;;  %v2009_v51 = vpop.permute.xlu1 %2008 }
 0x210   : > { %v2007_v57 = vpop.permute.xlu0 %2006  ;;  %2953 = vrot.lane.b32.xlu1 %v5427_v33, %s3646_s10 }
 0x211   : > { %v2010_v61 = vsel %vm6334_vm5, %v2007_v57, %v2009_v51  ;;  %v2011_v62 = vsel %vm6335_vm6, %v2009_v51, %v2007_v57  ;;  %vm6339_vm5 = vcmp.lt.s32.totalorder %v3878_v35, 1  ;;  %v2113_v51 = vstv %s5491_s26  ;;  %s5739_s26 = sld [smem:[#allocation6 + $0x49]] }
 0x212   : > { %v2014_v63 = vcombine.low %v2011_v62, %v2010_v61  ;;  %2951 = vrot.lane.b32.xlu0 %v5423_v24, %s3646_s10  ;;  %v2038_v27 = vpop.permute.xlu1 %2037  ;;  %vm6340_vm6 = vmmov %vm6339_vm5 }
 0x214   : > { %v2021_v2 = vrot.slane %v2014_v63, %v4116_v30  ;;  %v2036_v23 = vpop.permute.xlu0 %2035  ;;  %2982 = vrot.lane.b32.xlu1 %v5427_v33, %s3647_s13 }
 0x215   : > { %v2039_v11 = vsel %vm6336_vm11, %v2036_v23, %v2038_v27  ;;  %v2040_v44 = vsel %vm6337_vm1, %v2038_v27, %v2036_v23  ;;  %vm6341_vm11 = vmand %vm4337_vm2, %vm4167_vm10  ;;  %vm6342_vm1 = vcmp.lt.s32.totalorder %v3878_v35, 127 }
 0x216   : > { %v2028_v3 = vrot.slane %v2021_v2, %v4116_v30  ;;  %v2043_v6 = vcombine.low %v2040_v44, %v2039_v11  ;;  %2980 = vrot.lane.b32.xlu0 %v5423_v24, %s3647_s13  ;;  %v2067_v53 = vpop.permute.xlu1 %2066  ;;  %v2142_v44 = vstv %s5509_s20  ;;  %s5757_s20 = sld [smem:[#allocation6 + $0x4a]] }
 0x218   : > { %v2030_v16 = vsel %vm6338_vm15, %v2028_v3, 0.0  ;;  %v2050_v37 = vrot.slane %v2043_v6, %v4116_v30  ;;  %v2065_v49 = vpop.permute.xlu0 %2064  ;;  %vm6343_vm15 = vmmov %vm6342_vm1 }
 0x219   : > { %v2033_v22 = vmul.f32 %v2032_v13, %v2030_v16  ;;  %v2068_v42 = vsel %vm6339_vm5, %v2065_v49, %v2067_v53  ;;  %v2069_v26 = vsel %vm6340_vm6, %v2067_v53, %v2065_v49  ;;  %vm6344_vm5 = vmand %vm4337_vm2, %vm4232_vm7 }
 0x21a   : > { %v2057_v41 = vrot.slane %v2050_v37, %v4116_v30  ;;  %v2072_v12 = vcombine.low %v2069_v26, %v2068_v42  ;;  %v2119_v32 = vpop.permute.xlu1 %2118  ;;  %v2111_v57 = vsel %vm6344_vm5, %v2109_v38, 0.0  ;;  %vm6345_vm6 = vmand %vm4337_vm2, %vm4175_vm3  ;;  %vm6349_vm5 = vcmp.lt.s32.totalorder %v3878_v35, 80 }
 0x21b   : > { %v2034_v7 = vadd.f32 %v2033_v22, %v1999_v56  ;;  %v2114_v6 = vmul.f32 %v2113_v51, %v2111_v57 }
 0x21c   : > { %v2059_v18 = vsel %vm6341_vm11, %v2057_v41, 0.0  ;;  %v2079_v52 = vrot.slane %v2072_v12, %v4116_v30  ;;  %v2117_v50 = vpop.permute.xlu0 %2116  ;;  %vm6346_vm11 = vcmp.lt.s32.totalorder %v3878_v35, 126  ;;  %v2171_v41 = vstv %s5524_s24  ;;  %s5761_s24 = sld [smem:[#allocation6 + $0x4b]] }
 0x21d   : > { %v2062_v8 = vmul.f32 %v2061_v25, %v2059_v18  ;;  %v2120_v48 = vsel %vm6342_vm1, %v2117_v50, %v2119_v32  ;;  %v2121_v15 = vsel %vm6343_vm15, %v2119_v32, %v2117_v50  ;;  %vm6347_vm1 = vmmov %vm6346_vm11 }
 0x21e   : > { %v2086_v58 = vrot.slane %v2079_v52, %v4116_v30  ;;  %v2124_v20 = vcombine.low %v2120_v48, %v2121_v15  ;;  %v2148_v63 = vpop.permute.xlu1 %2147  ;;  %vm6348_vm15 = vmand %vm4337_vm2, %vm4273_vm12 }
 0x21f   : > { %v2063_v56 = vadd.f32 %v2062_v8, %v2034_v7 }
 0x220   : > { %v2088_v61 = vsel %vm6345_vm6, %v2086_v58, 0.0  ;;  %v2131_v62 = vrot.slane %v2124_v20, %v4116_v30  ;;  %v2146_v2 = vpop.permute.xlu0 %2145  ;;  %vm6350_vm6 = vmmov %vm6349_vm5 }
 0x221   : > { %v2091_v27 = vmul.f32 %v2090_v55, %v2088_v61  ;;  %v2149_v23 = vsel %vm6346_vm11, %v2146_v2, %v2148_v63  ;;  %v2150_v11 = vsel %vm6347_vm1, %v2148_v63, %v2146_v2  ;;  %vm6351_vm11 = vmand %vm4337_vm2, %vm4288_vm14  ;;  %vm6352_vm1 = vcmp.lt.s32.totalorder %v3878_v35, 125 }
 0x222   : > { %v2138_v13 = vrot.slane %v2131_v62, %v4116_v30  ;;  %v2153_v3 = vcombine.low %v2149_v23, %v2150_v11  ;;  %v3012_v53 = vpop.permute.xlu1 %3011 }
 0x223   : > { %v2092_v34 = vadd.f32 %v2091_v27, %v2063_v56 }
 0x224   : > { %v2140_v16 = vsel %vm6348_vm15, %v2138_v13, 0.0  ;;  %v2160_v37 = vrot.slane %v2153_v3, %v4116_v30  ;;  %v3010_v49 = vpop.permute.xlu0 %3009  ;;  %vm6353_vm15 = vmmov %vm6352_vm1 }
 0x225   : > { %v2143_v22 = vmul.f32 %v2142_v44, %v2140_v16  ;;  %v5552_v42 = vsel %vm6349_vm5, %v3010_v49, %v3012_v53  ;;  %v5556_v26 = vsel %vm6350_vm6, %v3012_v53, %v3010_v49  ;;  %v2115_v25 = vadd.f32 %v2114_v6, %v2092_v34 }
 0x226   : > { %v2167_v12 = vrot.slane %v2160_v37, %v4116_v30  ;;  %v3104_v7 = vcombine.low %v5552_v42, %v5556_v26  ;;  %3017 = vrot.lane.b32.xlu1 %v5556_v26, %s3640_s25  ;;  %3015 = vrot.lane.b32.xlu0 %v5552_v42, %s3640_s25  ;;  %v2177_v52 = vpop.permute.xlu1 %2176  ;;  %s5582_s25 = sld [smem:[#allocation6 + $0x3f]]  ;;  %vm6354_vm5 = vcmp.lt.s32.totalorder %v3878_v35, 3  ;;  %v2200_v44 = vstv %s5575_s28 }
 0x227   : > { %v2144_v38 = vadd.f32 %v2143_v22, %v2115_v25  ;;  %vm6355_vm6 = vmmov %vm6354_vm5  ;;  %s5769_s28 = sld [smem:[#allocation6 + $0x4c]] }
 0x228   : > { %v2169_v18 = vsel %vm6351_vm11, %v2167_v12, 0.0  ;;  %v2175_v32 = vpop.permute.xlu0 %2174  ;;  %vm6356_vm11 = vcmp.lt.s32.totalorder %v3878_v35, 2 }
 0x229   : > { %v2172_v50 = vmul.f32 %v2171_v41, %v2169_v18  ;;  %v2178_v8 = vsel %vm6352_vm1, %v2175_v32, %v2177_v52  ;;  %v2179_v48 = vsel %vm6353_vm15, %v2177_v52, %v2175_v32  ;;  %vm6357_vm1 = vmmov %vm6356_vm11 }
 0x22a   : > { %v2182_v15 = vcombine.low %v2178_v8, %v2179_v48  ;;  %3046 = vrot.lane.b32.xlu1 %v5556_v26, %s3642_s6  ;;  %3044 = vrot.lane.b32.xlu0 %v5552_v42, %s3642_s6  ;;  %v2212_v20 = vpop.permute.xlu1 %2211  ;;  %s5593_s6 = sld [smem:[#allocation6 + $0x40]]  ;;  %vm6358_vm15 = vmand %vm4337_vm2, %vm4316_vm0  ;;  %vm6359_vm2 = vnez %v6232_v46 }
 0x22b   : > { %v2173_v55 = vadd.f32 %v2172_v50, %v2144_v38  ;;  %v2312_v38 = vrot.slane %v2305_v39, %v4116_v30 }
 0x22c   : > { %v2189_v58 = vrot.slane %v2182_v15, %v4116_v30  ;;  %v2210_v56 = vpop.permute.xlu0 %2209  ;;  %v2235_v34 = vstv %s5582_s25  ;;  %s5779_s25 = sld [smem:[#allocation6 + $0x4d]] }
 0x22d   : > { %v2213_v51 = vsel %vm6354_vm5, %v2210_v56, %v2212_v20  ;;  %v2214_v57 = vsel %vm6355_vm6, %v2212_v20, %v2210_v56  ;;  %vm6360_vm5 = vmand %vm6359_vm2, %vm4163_vm9  ;;  %vm6361_vm6 = vcmp.lt.s32.totalorder %v3878_v35, 1  ;;  %v2316_v56 = vstv %s5613_s11  ;;  %s5814_s11 = sld [smem:[#allocation6 + $0x50]] }
 0x22e   : > { %v2196_v61 = vrot.slane %v2189_v58, %v4116_v30  ;;  %v2217_v62 = vcombine.low %v2214_v57, %v2213_v51  ;;  %3075 = vrot.lane.b32.xlu1 %v5556_v26, %s3643_s7  ;;  %3073 = vrot.lane.b32.xlu0 %v5552_v42, %s3643_s7  ;;  %v2241_v2 = vpop.permute.xlu1 %2240  ;;  %s5611_s7 = sld [smem:[#allocation6 + $0x41]] }
 0x230   : > { %v2224_v63 = vrot.slane %v2217_v62, %v4116_v30  ;;  %v2239_v27 = vpop.permute.xlu0 %2238  ;;  %v2198_v13 = vsel %vm6358_vm15, %v2196_v61, 0.0  ;;  %v2264_v5 = vstv %s5593_s6  ;;  %vm6364_vm15 = vmand %vm6359_vm2, %vm4232_vm7  ;;  %s5792_s6 = sld [smem:[#allocation6 + $0x4e]] }
 0x231   : > { %v2242_v23 = vsel %vm6356_vm11, %v2239_v27, %v2241_v2  ;;  %v2243_v11 = vsel %vm6357_vm1, %v2241_v2, %v2239_v27  ;;  %v2201_v22 = vmul.f32 %v2200_v44, %v2198_v13  ;;  %vm6362_vm11 = vmmov %vm6361_vm6  ;;  %v2314_v51 = vsel %vm6364_vm15, %v2312_v38, 0.0 }
 0x232   : > { %v2231_v3 = vrot.slane %v2224_v63, %v4116_v30  ;;  %v2246_v6 = vcombine.low %v2243_v11, %v2242_v23  ;;  %3127 = vrot.lane.b32.xlu1 %v5556_v26, %s3645_s12  ;;  %3125 = vrot.lane.b32.xlu0 %v5552_v42, %s3645_s12  ;;  %v2270_v53 = vpop.permute.xlu1 %2269  ;;  %vm6363_vm1 = vmand %vm6359_vm2, %vm4167_vm10  ;;  %v2317_v23 = vmul.f32 %v2316_v56, %v2314_v51  ;;  %s5672_s12 = sld [smem:[#allocation6 + $0x43]] }
 0x233   : > { %v2202_v48 = vadd.f32 %v2201_v22, %v2173_v55 }
 0x234   : > { %v2233_v16 = vsel %vm6360_vm5, %v2231_v3, 0.0  ;;  %v2253_v37 = vrot.slane %v2246_v6, %v4116_v30  ;;  %v2268_v49 = vpop.permute.xlu0 %2267  ;;  %v2293_v15 = vstv %s5611_s7  ;;  %vm6365_vm5 = vmand %vm6359_vm2, %vm4175_vm3  ;;  %s5812_s7 = sld [smem:[#allocation6 + $0x4f]] }
 0x235   : > { %v2271_v25 = vsel %vm6361_vm6, %v2268_v49, %v2270_v53  ;;  %v2272_v43 = vsel %vm6362_vm11, %v2270_v53, %v2268_v49  ;;  %v2236_v12 = vmul.f32 %v2235_v34, %v2233_v16  ;;  %vm6366_vm6 = vcmp.lt.s32.totalorder %v3878_v35, 127 }
 0x236   : > { %v2260_v45 = vrot.slane %v2253_v37, %v4116_v30  ;;  %v2275_v41 = vcombine.low %v2272_v43, %v2271_v25  ;;  %3156 = vrot.lane.b32.xlu1 %v5556_v26, %s3646_s10  ;;  %3154 = vrot.lane.b32.xlu0 %v5552_v42, %s3646_s10  ;;  %v2322_v32 = vpop.permute.xlu1 %2321  ;;  %vm6367_vm11 = vmmov %vm6366_vm6  ;;  %s5675_s10 = sld [smem:[#allocation6 + $0x44]]  ;;  %v2664_v1 = vstv %s5792_s6 }
 0x237   : > { %v2237_v20 = vadd.f32 %v2236_v12, %v2202_v48  ;;  %s5981_s6 = sld [smem:[#allocation6 + $0x5c]] }
 0x238   : > { %v2262_v18 = vsel %vm6363_vm1, %v2260_v45, 0.0  ;;  %v2282_v52 = vrot.slane %v2275_v41, %v4116_v30  ;;  %v2320_v50 = vpop.permute.xlu0 %2319  ;;  %vm6368_vm1 = vcmp.lt.s32.totalorder %v3878_v35, 126 }
 0x239   : > { %v2265_v8 = vmul.f32 %v2264_v5, %v2262_v18  ;;  %v2323_v63 = vsel %vm6366_vm6, %v2320_v50, %v2322_v32  ;;  %v2324_v2 = vsel %vm6367_vm11, %v2322_v32, %v2320_v50  ;;  %vm6369_vm15 = vmmov %vm6368_vm1  ;;  %vm6372_vm11 = vcmp.lt.s32.totalorder %v3878_v35, 3 }
 0x23a   : > { %v2289_v58 = vrot.slane %v2282_v52, %v4116_v30  ;;  %3185 = vrot.lane.b32.xlu1 %v5556_v26, %s3647_s13  ;;  %3183 = vrot.lane.b32.xlu0 %v5552_v42, %s3647_s13  ;;  %v2351_v57 = vpop.permute.xlu1 %2350  ;;  %v2327_v3 = vcombine.low %v2323_v63, %v2324_v2  ;;  %s5683_s13 = sld [smem:[#allocation6 + $0x45]] }
 0x23b   : > { %v2266_v27 = vadd.f32 %v2265_v8, %v2237_v20  ;;  %v2345_v20 = vstv %s5672_s12  ;;  %s5861_s12 = sld [smem:[#allocation6 + $0x51]] }
 0x23c   : > { %v2291_v55 = vsel %vm6365_vm5, %v2289_v58, 0.0  ;;  %v2349_v61 = vpop.permute.xlu0 %2348  ;;  %vm6370_vm5 = vcmp.lt.s32.totalorder %v3878_v35, 125  ;;  %v2334_v49 = vrot.slane %v2327_v3, %v4116_v30 }
 0x23d   : > { %v2294_v62 = vmul.f32 %v2293_v15, %v2291_v55  ;;  %v2352_v11 = vsel %vm6368_vm1, %v2349_v61, %v2351_v57  ;;  %v2353_v44 = vsel %vm6369_vm15, %v2351_v57, %v2349_v61  ;;  %vm6371_vm6 = vmmov %vm6370_vm5  ;;  %vm6374_vm15 = vcmp.lt.s32.totalorder %v3878_v35, 2 }
 0x23e   : > { %v2380_v6 = vpop.permute.xlu1 %2379  ;;  %v2356_v53 = vcombine.low %v2352_v11, %v2353_v44  ;;  %vm6373_vm1 = vmmov %vm6372_vm11  ;;  %v2341_v38 = vrot.slane %v2334_v49, %v4116_v30  ;;  %v2495_v44 = vcombine.low %v3869_v31, %v3863_v29  ;;  %v3070_v26 = vstv %s5981_s6  ;;  %s3649_s6 = smov [#allocation7]  }
 0x23f   : > { %v2295_v13 = vadd.f32 %v2294_v62, %v2266_v27  ;;  %v2374_v62 = vstv %s5675_s10  ;;  %s5864_s10 = sld [smem:[#allocation6 + $0x52]] }
 0x240   : > { %v2378_v39 = vpop.permute.xlu0 %2377  ;;  %v2363_v41 = vrot.slane %v2356_v53, %v4116_v30  ;;  %v2403_v3 = vstv %s5683_s13  ;;  %s5872_s13 = sld [smem:[#allocation6 + $0x53]] }
 0x241   : > { %v2381_v34 = vsel %vm6370_vm5, %v2378_v39, %v2380_v6  ;;  %v2382_v16 = vsel %vm6371_vm6, %v2380_v6, %v2378_v39  ;;  %v2318_v37 = vadd.f32 %v2317_v23, %v2295_v13  ;;  %vm6375_vm5 = vmmov %vm6374_vm15 }
 0x242   : > { %v2385_v22 = vcombine.low %v2381_v34, %v2382_v16  ;;  %v2409_v25 = vpop.permute.xlu1 %2408  ;;  %v2370_v48 = vrot.slane %v2363_v41, %v4116_v30  ;;  %vm6376_vm6 = vmand %vm6359_vm2, %vm4273_vm12 }
 0x243   : > { %v2343_v56 = vsel %vm6376_vm6, %v2341_v38, 0.0  ;;  %vm6381_vm6 = vcmp.lt.s32.totalorder %v3878_v35, 127 }
 0x244   : > { %v2407_v43 = vpop.permute.xlu0 %2406  ;;  %v2392_v18 = vrot.slane %v2385_v22, %v4116_v30  ;;  %v2346_v13 = vmul.f32 %v2345_v20, %v2343_v56  ;;  %v2432_v22 = vstv %s5686_s14  ;;  %s5876_s14 = sld [smem:[#allocation6 + $0x54]] }
 0x245   : > { %v2410_v5 = vsel %vm6372_vm11, %v2407_v43, %v2409_v25  ;;  %v2411_v45 = vsel %vm6373_vm1, %v2409_v25, %v2407_v43  ;;  %vm6377_vm11 = vcmp.lt.s32.totalorder %v3878_v35, 1 }
 0x246   : > { %v2414_v12 = vcombine.low %v2411_v45, %v2410_v5  ;;  %v2438_v52 = vpop.permute.xlu1 %2437  ;;  %v2399_v51 = vrot.slane %v2392_v18, %v4116_v30  ;;  %vm6378_vm1 = vmmov %vm6377_vm11  ;;  %v2502_v5 = vrot.slane %v2495_v44, %v4116_v30  ;;  %v2347_v41 = vadd.f32 %v2346_v13, %v2318_v37 }
 0x247   : > { %v2490_v18 = vstv %s5704_s21  ;;  %s5909_s21 = sld [smem:[#allocation6 + $0x56]] }
 0x248   : > { %v2436_v32 = vpop.permute.xlu0 %2435  ;;  %v2421_v15 = vrot.slane %v2414_v12, %v4116_v30  ;;  %v2461_v12 = vstv %s5694_s30  ;;  %v2509_v56 = vrot.slane %v2502_v5, %v4116_v30  ;;  %s5889_s30 = sld [smem:[#allocation6 + $0x55]] }
 0x249   : > { %v2439_v50 = vsel %vm6374_vm15, %v2436_v32, %v2438_v52  ;;  %v2440_v8 = vsel %vm6375_vm5, %v2438_v52, %v2436_v32  ;;  %vm6379_vm15 = vmand %vm6359_vm2, %vm4288_vm14 }
 0x24a   : > { %v2443_v58 = vcombine.low %v2440_v8, %v2439_v50  ;;  %v2467_v57 = vpop.permute.xlu1 %2466  ;;  %v2372_v27 = vsel %vm6379_vm15, %v2370_v48, 0.0  ;;  %v2428_v23 = vrot.slane %v2421_v15, %v4116_v30  ;;  %vm6380_vm5 = vmand %vm6359_vm2, %vm4316_vm0 }
 0x24b   : > { %v2401_v6 = vsel %vm6380_vm5, %v2399_v51, 0.0  ;;  %v2375_v49 = vmul.f32 %v2374_v62, %v2372_v27  ;;  %vm6386_vm5 = vcmp.lt.s32.totalorder %v3878_v35, 126 }
 0x24c   : > { %v2450_v55 = vrot.slane %v2443_v58, %v4116_v30  ;;  %v2465_v61 = vpop.permute.xlu0 %2464  ;;  %v2404_v45 = vmul.f32 %v2403_v3, %v2401_v6  ;;  %v2513_v3 = vstv %s5739_s26  ;;  %s5911_s26 = sld [smem:[#allocation6 + $0x57]] }
 0x24d   : > { %v2468_v63 = vsel %vm6377_vm11, %v2465_v61, %v2467_v57  ;;  %v2469_v2 = vsel %vm6378_vm1, %v2467_v57, %v2465_v61  ;;  %vm6382_vm11 = vmmov %vm6381_vm6  ;;  %vm6383_vm1 = vnez %v6254_v60  ;;  %v2376_v15 = vadd.f32 %v2375_v49, %v2347_v41 }
 0x24e   : > { %v2472_v11 = vcombine.low %v2469_v2, %v2468_v63  ;;  %v2457_v39 = vrot.slane %v2450_v55, %v4116_v30  ;;  %v2519_v16 = vpop.permute.xlu1 %2518  ;;  %vm6384_vm2 = vmand %vm6383_vm1, %vm4163_vm9 }
 0x24f   : > { %v2430_v46 = vsel %vm6384_vm2, %v2428_v23, 0.0  ;;  %vm6385_vm15 = vmand %vm6383_vm1, %vm4167_vm10  ;;  %v2405_v55 = vadd.f32 %v2404_v45, %v2376_v15  ;;  %vm6389_vm2 = vcmp.lt.s32.totalorder %v3878_v35, 125  ;;  %v2571_v45 = vstv %s5761_s24  ;;  %s3427_s24 = sld [smem:[#allocation6 + $0x59]] }
 0x250   : > { %v2479_v34 = vrot.slane %v2472_v11, %v4116_v30  ;;  %v2517_v53 = vpop.permute.xlu0 %2516  ;;  %v2459_v38 = vsel %vm6385_vm15, %v2457_v39, 0.0  ;;  %v2433_v50 = vmul.f32 %v2432_v22, %v2430_v46  ;;  %vm6390_vm15 = vmmov %vm6389_vm2  ;;  %v2542_v46 = vstv %s5757_s20  ;;  %s3426_s20 = sld [smem:[#allocation6 + $0x58]] }
 0x251   : > { %v2520_v29 = vsel %vm6381_vm6, %v2517_v53, %v2519_v16  ;;  %v2521_v31 = vsel %vm6382_vm11, %v2519_v16, %v2517_v53  ;;  %vm6387_vm6 = vmmov %vm6386_vm5  ;;  %v2462_v51 = vmul.f32 %v2461_v12, %v2459_v38 }
 0x252   : > { %v2486_v25 = vrot.slane %v2479_v34, %v4116_v30  ;;  %v2524_v43 = vcombine.low %v2520_v29, %v2521_v31  ;;  %v2548_v52 = vpop.permute.xlu1 %2547  ;;  %vm6388_vm11 = vmand %vm6383_vm1, %vm4175_vm3  ;;  %v2434_v23 = vadd.f32 %v2433_v50, %v2405_v55 }
 0x254   : > { %v2546_v32 = vpop.permute.xlu0 %2545  ;;  %v2488_v37 = vsel %vm6388_vm11, %v2486_v25, 0.0  ;;  %v2531_v58 = vrot.slane %v2524_v43, %v4116_v30  ;;  %v2463_v6 = vadd.f32 %v2462_v51, %v2434_v23  ;;  %v2635_v51 = vstv %s5779_s25  ;;  %s5969_s25 = sld [smem:[#allocation6 + $0x5b]] }
 0x255   : > { %v2549_v8 = vsel %vm6386_vm5, %v2546_v32, %v2548_v52  ;;  %v2550_v48 = vsel %vm6387_vm6, %v2548_v52, %v2546_v32  ;;  %v2491_v63 = vmul.f32 %v2490_v18, %v2488_v37  ;;  %vm6391_vm5 = vmand %vm6383_vm1, %vm4232_vm7  ;;  %vm6392_vm6 = vcmp.lt.s32.totalorder %v3878_v35, 3 }
 0x256   : > { %v2553_v20 = vcombine.low %v2549_v8, %v2550_v48  ;;  %v2577_v61 = vpop.permute.xlu1 %2576  ;;  %v2538_v11 = vrot.slane %v2531_v58, %v4116_v30  ;;  %v2511_v13 = vsel %vm6391_vm5, %v2509_v56, 0.0  ;;  %vm6393_vm11 = vmmov %vm6392_vm6  ;;  %vm6396_vm5 = vcmp.lt.s32.totalorder %v3878_v35, 2 }
 0x257   : > { %v2514_v29 = vmul.f32 %v2513_v3, %v2511_v13  ;;  %v2492_v31 = vadd.f32 %v2491_v63, %v2463_v6  ;;  %v2600_v48 = vstv %s5769_s28  ;;  %v2705_v56 = vrot.slane %v2698_v14, %v4116_v30  ;;  %s5965_s28 = sld [smem:[#allocation6 + $0x5a]] }
 0x258   : > { %v2560_v57 = vrot.slane %v2553_v20, %v4116_v30  ;;  %v2575_v62 = vpop.permute.xlu0 %2574 }
 0x259   : > { %v2578_v2 = vsel %vm6389_vm2, %v2575_v62, %v2577_v61  ;;  %v2579_v27 = vsel %vm6390_vm15, %v2577_v61, %v2575_v62  ;;  %vm6394_vm2 = vmand %vm6383_vm1, %vm4273_vm12  ;;  %v2515_v8 = vadd.f32 %v2514_v29, %v2492_v31 }
 0x25a   : > { %v2582_v44 = vcombine.low %v2578_v2, %v2579_v27  ;;  %v2567_v39 = vrot.slane %v2560_v57, %v4116_v30  ;;  %v2612_v16 = vpop.permute.xlu1 %2611  ;;  %v2540_v25 = vsel %vm6394_vm2, %v2538_v11, 0.0  ;;  %vm6395_vm15 = vmand %vm6383_vm1, %vm4288_vm14  ;;  %vm6399_vm2 = vnez %v6267_v47 }
 0x25b   : > { %v2543_v52 = vmul.f32 %v2542_v46, %v2540_v25  ;;  %v2716_v25 = vstv %s5814_s11  ;;  %s6013_s11 = sld [smem:[#allocation6 + $0x5e]] }
 0x25c   : > { %v2589_v34 = vrot.slane %v2582_v44, %v4116_v30  ;;  %v2610_v53 = vpop.permute.xlu0 %2609  ;;  %v2569_v41 = vsel %vm6395_vm15, %v2567_v39, 0.0  ;;  %vm6401_vm15 = vcmp.lt.s32.totalorder %v3878_v35, 1  ;;  %v2712_v44 = vrot.slane %v2705_v56, %v4116_v30 }
 0x25d   : > { %v2613_v49 = vsel %vm6392_vm6, %v2610_v53, %v2612_v16  ;;  %v2614_v22 = vsel %vm6393_vm11, %v2612_v16, %v2610_v53  ;;  %vm6397_vm6 = vmmov %vm6396_vm5  ;;  %v2572_v20 = vmul.f32 %v2571_v45, %v2569_v41  ;;  %v2544_v4 = vadd.f32 %v2543_v52, %v2515_v8 }
 0x25e   : > { %v2596_v43 = vrot.slane %v2589_v34, %v4116_v30  ;;  %v2617_v5 = vcombine.low %v2614_v22, %v2613_v49  ;;  %v2641_v38 = vpop.permute.xlu1 %2640  ;;  %vm6398_vm11 = vmand %vm6383_vm1, %vm4316_vm0  ;;  %v2693_v22 = vstv %s5812_s7  ;;  %s6000_s7 = sld [smem:[#allocation6 + $0x5d]] }
 0x25f   : > { %vm6400_vm1 = vmand %vm6399_vm2, %vm4163_vm9  ;;  %v2573_v11 = vadd.f32 %v2572_v20, %v2544_v4 }
 0x260   : > { %v2624_v12 = vrot.slane %v2617_v5, %v4116_v30  ;;  %v2639_v18 = vpop.permute.xlu0 %2638  ;;  %v2598_v15 = vsel %vm6398_vm11, %v2596_v43, 0.0  ;;  %vm6404_vm11 = vcmp.lt.s32.totalorder %v3878_v35, 127 }
 0x261   : > { %v2642_v32 = vsel %vm6396_vm5, %v2639_v18, %v2641_v38  ;;  %v2643_v50 = vsel %vm6397_vm6, %v2641_v38, %v2639_v18  ;;  %v2601_v62 = vmul.f32 %v2600_v48, %v2598_v15  ;;  %vm6402_vm5 = vmmov %vm6401_vm15 }
 0x262   : > { %v2631_v37 = vrot.slane %v2624_v12, %v4116_v30  ;;  %v2646_v58 = vcombine.low %v2643_v50, %v2642_v32  ;;  %v2670_v57 = vpop.permute.xlu1 %2669  ;;  %vm6403_vm6 = vmand %vm6399_vm2, %vm4167_vm10 }
 0x263   : > { %v2602_v49 = vadd.f32 %v2601_v62, %v2573_v11  ;;  %v2774_v11 = vstv %s5864_s10  ;;  %s6036_s10 = sld [smem:[#allocation6 + $0x60]] }
 0x264   : > { %v2633_v60 = vsel %vm6400_vm1, %v2631_v37, 0.0  ;;  %v2653_v55 = vrot.slane %v2646_v58, %v4116_v30  ;;  %v2668_v61 = vpop.permute.xlu0 %2667  ;;  %vm6405_vm1 = vmmov %vm6404_vm11 }
 0x265   : > { %v2671_v63 = vsel %vm6401_vm15, %v2668_v61, %v2670_v57  ;;  %v2672_v2 = vsel %vm6402_vm5, %v2670_v57, %v2668_v61  ;;  %v2636_v23 = vmul.f32 %v2635_v51, %v2633_v60  ;;  %vm6406_vm15 = vmand %vm6399_vm2, %vm4232_vm7 }
 0x266   : > { %v2660_v14 = vrot.slane %v2653_v55, %v4116_v30  ;;  %v2675_v27 = vcombine.low %v2672_v2, %v2671_v63  ;;  %v2722_v6 = vpop.permute.xlu1 %2721  ;;  %v2714_v43 = vsel %vm6406_vm15, %v2712_v44, 0.0  ;;  %vm6407_vm5 = vmand %vm6399_vm2, %vm4175_vm3 }
 0x267   : > { %v2637_v46 = vadd.f32 %v2636_v23, %v2602_v49  ;;  %v2717_v8 = vmul.f32 %v2716_v25, %v2714_v43  ;;  %v2838_v25 = vstv %s5876_s14  ;;  %s3443_s14 = sshll.u32 %s3696_s19, 7  ;;  %s3568_s19 = sshll.u32 %s3649_s6, 4  ;;  %s3569_s19 = int_to_ptr.vmem [resolvable:$false] %s3568_s19 }
 0x268   : > { %v2662_v13 = vsel %vm6403_vm6, %v2660_v14, 0.0  ;;  %v2682_v3 = vrot.slane %v2675_v27, %v4116_v30  ;;  %v2720_v39 = vpop.permute.xlu0 %2719  ;;  %vm6408_vm6 = vcmp.lt.s32.totalorder %v3878_v35, 126 }
 0x269   : > { %v2665_v34 = vmul.f32 %v2664_v1, %v2662_v13  ;;  %v2723_v16 = vsel %vm6404_vm11, %v2720_v39, %v2722_v6  ;;  %v2724_v53 = vsel %vm6405_vm1, %v2722_v6, %v2720_v39  ;;  %vm6409_vm11 = vmmov %vm6408_vm6  ;;  %vm6410_vm1 = vcmp.lt.s32.totalorder %v3878_v35, 125 }
 0x26a   : > { %v2689_v29 = vrot.slane %v2682_v3, %v4116_v30  ;;  %v2727_v31 = vcombine.low %v2723_v16, %v2724_v53  ;;  %v2751_v45 = vpop.permute.xlu1 %2750  ;;  %vm6411_vm15 = vmmov %vm6410_vm1  ;;  %v2745_v1 = vstv %s5861_s12  ;;  %v2803_v53 = vstv %s5872_s13  ;;  %s6028_s12 = sld [smem:[#allocation6 + $0x5f]] }
 0x26b   : > { %v2666_v52 = vadd.f32 %v2665_v34, %v2637_v46  ;;  %v2908_v46 = vrot.slane %v2901_v40, %v4116_v30  ;;  %v2867_v40 = vstv %s5889_s30  ;;  %s3435_s13 = sld [smem:[#allocation6 + $0x61]]  ;;  %s227_s30 = scalar_lea.vmem [#allocation7], %s3336_s29 }
 0x26c   : > { %v2691_v5 = vsel %vm6407_vm5, %v2689_v29, 0.0  ;;  %v2749_v41 = vpop.permute.xlu0 %2748  ;;  %v2734_v32 = vrot.slane %v2727_v31, %v4116_v30  ;;  %vm6412_vm5 = vcmp.lt.s32.totalorder %v3878_v35, 3  ;;  %s3570_s29 = scalar_lea.vmem %s3569_s19, 256 }
 0x26d   : > { %v2694_v12 = vmul.f32 %v2693_v22, %v2691_v5  ;;  %v2752_v38 = vsel %vm6408_vm6, %v2749_v41, %v2751_v45  ;;  %v2753_v18 = vsel %vm6409_vm11, %v2751_v45, %v2749_v41  ;;  %vm6413_vm6 = vmmov %vm6412_vm5 }
 0x26e   : > { %v2756_v50 = vcombine.low %v2752_v38, %v2753_v18  ;;  %v2780_v37 = vpop.permute.xlu1 %2779  ;;  %v2741_v60 = vrot.slane %v2734_v32, %v4116_v30  ;;  %vm6414_vm11 = vmand %vm6399_vm2, %vm4273_vm12 }
 0x26f   : > { %v2695_v48 = vadd.f32 %v2694_v12, %v2666_v52 }
 0x270   : > { %v2763_v15 = vrot.slane %v2756_v50, %v4116_v30  ;;  %v2778_v58 = vpop.permute.xlu0 %2777  ;;  %v2743_v14 = vsel %vm6414_vm11, %v2741_v60, 0.0  ;;  %vm6420_vm11 = vcmp.lt.s32.totalorder %v3878_v35, 1  ;;  %v2915_v50 = vrot.slane %v2908_v46, %v4116_v30 }
 0x271   : > { %v2781_v20 = vsel %vm6410_vm1, %v2778_v58, %v2780_v37  ;;  %v2782_v56 = vsel %vm6411_vm15, %v2780_v37, %v2778_v58  ;;  %v2718_v51 = vadd.f32 %v2717_v8, %v2695_v48  ;;  %vm6415_vm1 = vmand %vm6399_vm2, %vm4288_vm14  ;;  %v2746_v39 = vmul.f32 %v2745_v1, %v2743_v14 }
 0x272   : > { %v2785_v55 = vcombine.low %v2781_v20, %v2782_v56  ;;  %v2770_v57 = vrot.slane %v2763_v15, %v4116_v30  ;;  %v2815_v62 = vpop.permute.xlu1 %2814  ;;  %vm6416_vm15 = vcmp.lt.s32.totalorder %v3878_v35, 2  ;;  %v2896_v56 = vstv %s5909_s21  ;;  %s3246_s21 = sshll.u32 %s227_s30, 4  ;;  %s3247_s21 = int_to_ptr.vmem [resolvable:$true] %s3246_s21 }
 0x273   : > { %v2747_v33 = vadd.f32 %v2746_v39, %v2718_v51  ;;  %p3571_p2 = scmp.lt.s32.totalorder %s3247_s21, %s3569_s19 }
 0x274   : > { %v2792_v61 = vrot.slane %v2785_v55, %v4116_v30  ;;  %v2813_v63 = vpop.permute.xlu0 %2812  ;;  %v2772_v44 = vsel %vm6415_vm1, %v2770_v57, 0.0  ;;  %vm6421_vm1 = vmmov %vm6420_vm11  ;;  %v2919_v55 = vstv %s5911_s26 }
 0x275   : > { %v2816_v2 = vsel %vm6412_vm5, %v2813_v63, %v2815_v62  ;;  %v2817_v4 = vsel %vm6413_vm6, %v2815_v62, %v2813_v63  ;;  %vm6417_vm5 = vmmov %vm6416_vm15  ;;  %v2775_v31 = vmul.f32 %v2774_v11, %v2772_v44 }
 0x276   : > { %v2799_v27 = vrot.slane %v2792_v61, %v4116_v30  ;;  %v2820_v23 = vcombine.low %v2817_v4, %v2816_v2  ;;  %v2844_v3 = vpop.permute.xlu1 %2843  ;;  %vm6418_vm6 = vmand %vm6399_vm2, %vm4316_vm0 }
 0x277   : > { %vm6419_vm2 = vmand %vm5027_vm13, %vm4163_vm9  ;;  %v2776_v32 = vadd.f32 %v2775_v31, %v2747_v33 }
 0x278   : > { %v2827_v13 = vrot.slane %v2820_v23, %v4116_v30  ;;  %v2842_v6 = vpop.permute.xlu0 %2841  ;;  %v2801_v49 = vsel %vm6418_vm6, %v2799_v27, 0.0  ;;  %vm6424_vm6 = vmand %vm5027_vm13, %vm4175_vm3 }
 0x279   : > { %v2845_v34 = vsel %vm6416_vm15, %v2842_v6, %v2844_v3  ;;  %v2846_v16 = vsel %vm6417_vm5, %v2844_v3, %v2842_v6  ;;  %v2804_v41 = vmul.f32 %v2803_v53, %v2801_v49  ;;  %vm6422_vm15 = vmand %vm5027_vm13, %vm4167_vm10 }
 0x27a   : > { %v2834_v22 = vrot.slane %v2827_v13, %v4116_v30  ;;  %v2849_v29 = vcombine.low %v2846_v16, %v2845_v34  ;;  %v2873_v5 = vpop.permute.xlu1 %2872  ;;  %vm6423_vm5 = vmand %vm5027_vm13, %vm4232_vm7 }
 0x27b   : > { %v2805_v20 = vadd.f32 %v2804_v41, %v2776_v32  ;;  %v2917_v57 = vsel %vm6423_vm5, %v2915_v50, 0.0  ;;  %vm6429_vm5 = vcmp.lt.s32.totalorder %v3878_v35, 125  ;;  %v2948_v41 = vstv %s3426_s20  ;;  %vm6443_vm10 = vmand %vm5166_vm8, %vm4175_vm3 }
 0x27c   : > { %v2836_v47 = vsel %vm6419_vm2, %v2834_v22, 0.0  ;;  %v2856_v43 = vrot.slane %v2849_v29, %v4116_v30  ;;  %v2871_v45 = vpop.permute.xlu0 %2870  ;;  %v2920_v1 = vmul.f32 %v2919_v55, %v2917_v57  ;;  %vm6425_vm2 = vcmp.lt.s32.totalorder %v3878_v35, 127 }
 0x27d   : > { %v2874_v12 = vsel %vm6420_vm11, %v2871_v45, %v2873_v5  ;;  %v2875_v24 = vsel %vm6421_vm1, %v2873_v5, %v2871_v45  ;;  %v2839_v52 = vmul.f32 %v2838_v25, %v2836_v47  ;;  %vm6426_vm11 = vmmov %vm6425_vm2  ;;  %vm6427_vm1 = vcmp.lt.s32.totalorder %v3878_v35, 126 }
 0x27e   : > { %v2863_v38 = vrot.slane %v2856_v43, %v4116_v30  ;;  %v2878_v18 = vcombine.low %v2875_v24, %v2874_v12  ;;  %v2925_v15 = vpop.permute.xlu1 %2924 }
 0x27f   : > { %v2840_v60 = vadd.f32 %v2839_v52, %v2805_v20 }
 0x280   : > { %v2865_v8 = vsel %vm6422_vm15, %v2863_v38, 0.0  ;;  %v2885_v48 = vrot.slane %v2878_v18, %v4116_v30  ;;  %v2923_v37 = vpop.permute.xlu0 %2922  ;;  %vm6428_vm15 = vmmov %vm6427_vm1 }
 0x281   : > { %v2868_v58 = vmul.f32 %v2867_v40, %v2865_v8  ;;  %v2926_v23 = vsel %vm6425_vm2, %v2923_v37, %v2925_v15  ;;  %v2927_v11 = vsel %vm6426_vm11, %v2925_v15, %v2923_v37  ;;  %vm6431_vm2 = vcmp.lt.s32.totalorder %v3878_v35, 3 }
 0x282   : > { %v2892_v51 = vrot.slane %v2885_v48, %v4116_v30  ;;  %v2954_v2 = vpop.permute.xlu1 %2953  ;;  %v2930_v39 = vcombine.low %v2926_v23, %v2927_v11  ;;  %vm6432_vm11 = vmmov %vm6431_vm2  ;;  %v2977_v40 = vstv %s3427_s24  ;;  %v3006_v15 = vstv %s5965_s28  ;;  %s3244_s24 = scalar_lea.hbm %s6124_s4, %s3443_s14  ;;  %s3232_s28 = scalar_lea.sflag [#allocation4], %s3794_s23 }
 0x283   : > { %v2869_v63 = vadd.f32 %v2868_v58, %v2840_v60  ;;  %v3041_v60 = vstv %s5969_s25  ;;  %s3564_s25 = scalar_lea.vmem %s3247_s21, 128 }
 0x284   : > { %v2894_v61 = vsel %vm6424_vm6, %v2892_v51, 0.0  ;;  %v2952_v4 = vpop.permute.xlu0 %2951  ;;  %vm6430_vm6 = vmmov %vm6429_vm5  ;;  %v2937_v49 = vrot.slane %v2930_v39, %v4116_v30  ;;  %v3111_v51 = vrot.slane %v3104_v7, %v4116_v30  ;;  %p3565_p9 = scmp.ne.s32.totalorder %s3247_s21, %s3564_s25  ;;  %p3572_p1 = scmp.lt.s32.totalorder %s3570_s29, %s3564_s25 }
 0x285   : > { %v2897_v62 = vmul.f32 %v2896_v56, %v2894_v61  ;;  %v2955_v3 = vsel %vm6427_vm1, %v2952_v4, %v2954_v2  ;;  %v2956_v6 = vsel %vm6428_vm15, %v2954_v2, %v2952_v4  ;;  %vm6433_vm1 = vmand %vm5027_vm13, %vm4273_vm12 }
 0x286   : > { %v2983_v44 = vpop.permute.xlu1 %2982  ;;  %v2959_v53 = vcombine.low %v2955_v3, %v2956_v6  ;;  %v2944_v31 = vrot.slane %v2937_v49, %v4116_v30  ;;  %vm6434_vm15 = vmand %vm5027_vm13, %vm4288_vm14  ;;  %p3566_p13 = pnand %p3565_p9, %p6452_p11  ;;  %p3573_p0 = por %p3572_p1, %p3571_p2 }
 0x287   : > { %v2898_v14 = vadd.f32 %v2897_v62, %v2869_v63 }
 0x288   : > { %v2981_v13 = vpop.permute.xlu0 %2980  ;;  %v2966_v29 = vrot.slane %v2959_v53, %v4116_v30  ;;  %v2946_v12 = vsel %vm6433_vm1, %v2944_v31, 0.0  ;;  %p3567_p10 = pneg %p3566_p13 }
 0x289   : > { %v2921_v27 = vadd.f32 %v2920_v1, %v2898_v14  ;;  %v2984_v34 = vsel %vm6429_vm5, %v2981_v13, %v2983_v44  ;;  %v2985_v16 = vsel %vm6430_vm6, %v2983_v44, %v2981_v13  ;;  %v2949_v50 = vmul.f32 %v2948_v41, %v2946_v12 }
 0x28a   : > { %v2988_v22 = vcombine.low %v2984_v34, %v2985_v16  ;;  %v2973_v25 = vrot.slane %v2966_v29, %v4116_v30  ;;  %vm6435_vm5 = vcmp.lt.s32.totalorder %v3878_v35, 2  ;;  %v3118_v14 = vrot.slane %v3111_v51, %v4116_v30  ;;  %p3574_p3 = pnand %p3573_p0, %p3567_p10 }
 0x28b   : > { %vm6436_vm6 = vmmov %vm6435_vm5  ;;  %v2950_v63 = vadd.f32 %v2949_v50, %v2921_v27  ;;  %v3099_v34 = vstv %s6000_s7  ;;  %v3122_v29 = vstv %s6013_s11 }
 0x28c   : > { %v2995_v46 = vrot.slane %v2988_v22, %v4116_v30  ;;  %v2975_v38 = vsel %vm6434_vm15, %v2973_v25, 0.0 }
 0x28d   : > { %v2978_v56 = vmul.f32 %v2977_v40, %v2975_v38 }
 0x28e   : > { %v3002_v24 = vrot.slane %v2995_v46, %v4116_v30 }
 0x28f   : > { %v2979_v1 = vadd.f32 %v2978_v56, %v2950_v63  ;;  %v3209_v56 = vstv %s3435_s13  ;;  %v3225_v63 = vsub.s32 1, %v4093_v19 }
 0x298   : > { %v3018_v47 = vpop.permute.xlu1 %3017  ;;  %v3016_v43 = vpop.permute.xlu0 %3015 }
 0x299   : > { %v3019_v5 = vsel %vm6431_vm2, %v3016_v43, %v3018_v47  ;;  %v3020_v45 = vsel %vm6432_vm11, %v3018_v47, %v3016_v43  ;;  %vm6437_vm2 = vmand %vm5027_vm13, %vm4316_vm0  ;;  %vm6439_vm13 = vcmp.lt.s32.totalorder %v3878_v35, 1 }
 0x29a   : > { %v3023_v33 = vcombine.low %v3020_v45, %v3019_v5  ;;  %v3004_v37 = vsel %vm6437_vm2, %v3002_v24, 0.0  ;;  %vm6438_vm11 = vmand %vm5166_vm8, %vm4163_vm9  ;;  %vm6441_vm9 = vcmp.lt.s32.totalorder %v3878_v35, 127  ;;  %v3151_v24 = vstv %s6028_s12 }
 0x29b   : > { %v3007_v62 = vmul.f32 %v3006_v15, %v3004_v37  ;;  %vm6440_vm1 = vmmov %vm6439_vm13 }
 0x29c   : > { %v3030_v18 = vrot.slane %v3023_v33, %v4116_v30  ;;  %v3047_v52 = vpop.permute.xlu1 %3046  ;;  %v3045_v32 = vpop.permute.xlu0 %3044  ;;  %vm6442_vm15 = vmmov %vm6441_vm9 }
 0x29d   : > { %v3048_v8 = vsel %vm6435_vm5, %v3045_v32, %v3047_v52  ;;  %v3049_v48 = vsel %vm6436_vm6, %v3047_v52, %v3045_v32  ;;  %v3008_v13 = vadd.f32 %v3007_v62, %v2979_v1  ;;  %vm6445_vm5 = vcmp.lt.s32.totalorder %v3878_v35, 126 }
 0x29e   : > { %v3037_v58 = vrot.slane %v3030_v18, %v4116_v30  ;;  %v3052_v20 = vcombine.low %v3049_v48, %v3048_v8  ;;  %vm6446_vm3 = vmmov %vm6445_vm5  ;;  %vm6448_vm6 = vcmp.lt.s32.totalorder %v3878_v35, 125  ;;  %v3180_v8 = vstv %s6036_s10 }
 0x29f   : > { %vm6449_vm2 = vmmov %vm6448_vm6 }
 0x2a0   : > { %v3039_v17 = vsel %vm6438_vm11, %v3037_v58, 0.0  ;;  %v3059_v55 = vrot.slane %v3052_v20, %v4116_v30  ;;  %v3076_v57 = vpop.permute.xlu1 %3075  ;;  %v3074_v61 = vpop.permute.xlu0 %3073  ;;  %vm6451_vm11 = vmand %vm5166_vm8, %vm4316_vm0 }
 0x2a1   : > { %v3077_v2 = vsel %vm6439_vm13, %v3074_v61, %v3076_v57  ;;  %v3078_v42 = vsel %vm6440_vm1, %v3076_v57, %v3074_v61  ;;  %v3042_v4 = vmul.f32 %v3041_v60, %v3039_v17 }
 0x2a2   : > { %v3066_v59 = vrot.slane %v3059_v55, %v4116_v30  ;;  %v3081_v7 = vcombine.low %v3078_v42, %v3077_v2 }
 0x2a3   : > { %v3043_v53 = vadd.f32 %v3042_v4, %v3008_v13 }
 0x2a4   : > { %v3068_v27 = vsel %vm1623_vm4, %v3066_v59, 0.0  ;;  %v3088_v23 = vrot.slane %v3081_v7, %v4116_v30  ;;  %v3128_v11 = vpop.permute.xlu1 %3127  ;;  %v3126_v44 = vpop.permute.xlu0 %3125  ;;  %vm6444_vm4 = vmand %vm5166_vm8, %vm4232_vm7 }
 0x2a5   : > { %v3071_v3 = vmul.f32 %v3070_v26, %v3068_v27  ;;  %v3129_v6 = vsel %vm6441_vm9, %v3126_v44, %v3128_v11  ;;  %v3130_v39 = vsel %vm6442_vm15, %v3128_v11, %v3126_v44  ;;  %v3120_v22 = vsel %vm6444_vm4, %v3118_v14, 0.0  ;;  %vm6447_vm7 = vmand %vm5166_vm8, %vm4273_vm12  ;;  %v3520_v26 = vld [vmem:[%s3800_s5] sm:$0xff] }
 0x2a6   : > { %v3095_v0 = vrot.slane %v3088_v23, %v4116_v30  ;;  %v3133_v16 = vcombine.low %v3129_v6, %v3130_v39  ;;  %v3123_v12 = vmul.f32 %v3122_v29, %v3120_v22  ;;  %vm6450_vm12 = vmand %vm5166_vm8, %vm4288_vm14 }
 0x2a7   : > { %v3072_v47 = vadd.f32 %v3071_v3, %v3043_v53 }
 0x2a8   : > { %v3097_v49 = vsel %vm6443_vm10, %v3095_v0, 0.0  ;;  %v3140_v31 = vrot.slane %v3133_v16, %v4116_v30  ;;  %v3157_v46 = vpop.permute.xlu1 %3156  ;;  %v3155_v25 = vpop.permute.xlu0 %3154 }
 0x2a9   : > { %v3100_v43 = vmul.f32 %v3099_v34, %v3097_v49  ;;  %v3158_v21 = vsel %vm6445_vm5, %v3155_v25, %v3157_v46  ;;  %v3159_v5 = vsel %vm6446_vm3, %v3157_v46, %v3155_v25 }
 0x2aa   : > { %v3147_v45 = vrot.slane %v3140_v31, %v4116_v30  ;;  %v3162_v41 = vcombine.low %v3158_v21, %v3159_v5 }
 0x2ab   : > { %v3101_v9 = vadd.f32 %v3100_v43, %v3072_v47 }
 0x2ac   : > { %v3149_v33 = vsel %vm6447_vm7, %v3147_v45, 0.0  ;;  %v3169_v40 = vrot.slane %v3162_v41, %v4116_v30  ;;  %v3186_v38 = vpop.permute.xlu1 %3185  ;;  %v3184_v18 = vpop.permute.xlu0 %3183 }
 0x2ad   : > { %v3124_v52 = vadd.f32 %v3123_v12, %v3101_v9  ;;  %v3187_v32 = vsel %vm6448_vm6, %v3184_v18, %v3186_v38  ;;  %v3188_v50 = vsel %vm6449_vm2, %v3186_v38, %v3184_v18  ;;  %v3152_v37 = vmul.f32 %v3151_v24, %v3149_v33 }
 0x2ae   : > { %v3176_v48 = vrot.slane %v3169_v40, %v4116_v30  ;;  %v3191_v15 = vcombine.low %v3187_v32, %v3188_v50 }
 0x2af   : > { %v3153_v35 = vadd.f32 %v3152_v37, %v3124_v52 }
 0x2b0   : > { %v3178_v54 = vsel %vm6450_vm12, %v3176_v48, 0.0  ;;  %v3198_v58 = vrot.slane %v3191_v15, %v4116_v30 }
 0x2b1   : > { %v3181_v20 = vmul.f32 %v3180_v8, %v3178_v54 }
 0x2b2   : > { %v3205_v51 = vrot.slane %v3198_v58, %v4116_v30  ;;  %v3221_v30 = vsub.s32 0, %v4093_v19 }
 0x2b3   : > { %v3182_v17 = vadd.f32 %v3181_v20, %v3153_v35 }
 0x2b4   : > { %v3207_v60 = vsel %vm6451_vm11, %v3205_v51, 0.0 }
 0x2b5   : > { %v3210_v55 = vmul.f32 %v3209_v56, %v3207_v60 }
 0x2b7   : > { %v3211_v10 = vadd.f32 %v3210_v55, %v3182_v17 }
 0x2b9   : > { %v3436_v57 = vmul.f32 -1.442695, %v3211_v10 }
 0x2bb   : > { %3515 = vpow2.f32 %v3436_v57 }
 0x2c8   : > { %v3516_v61 = vpop.eup %3515 }
 0x2c9   : > { %v3215_v62 = vadd.f32 1.0, %v3516_v61 }
 0x2cb   : > { %3517 = vrcp.f32 %v3215_v62 }
 0x2d8   : > { %v3518_v28 = vpop.eup %3517 }
 0x2d9   : > { %v3222_v36 = vrot.slane %v3518_v28, %v3221_v30  ;;  %v3226_v2 = vrot.slane %v3518_v28, %v3225_v63 }
 0x2db   : > { %v3227_v42 = vcombine.low %v3222_v36, %v3226_v2 }
 0x2dd   : > { %v3229_v59 = vmul.f32 %v3520_v26, %v3227_v42 }
 0x2df   : > { %3230 = vst [vmem:[%s227_s30] sm:$0xff] %v3229_v59 }
 0x2e0   : > { %3577 = shalt.err (!%p3574_p3)
}
 0x2e1   : > { %s3578_s5 = scalar_lea.hbm %s3244_s24, 128  ;;  %s3582_s11 = scalar_lea.hbm %s6124_s4, 256 }
 0x2e2   : > { %p3579_p12 = scmp.ne.s32.totalorder %s3244_s24, %s3578_s5  ;;  %p3583_p4 = scmp.lt.s32.totalorder %s3244_s24, %s6124_s4 }
 0x2e3   : > { %p3584_p6 = scmp.lt.s32.totalorder %s3582_s11, %s3578_s5 }
 0x2e4   : > { %p3580_p5 = pnand %p3579_p12, %p6452_p11 }
 0x2e5   : > { %p3585_p8 = por %p3584_p6, %p3583_p4 }
 0x2e6   : > { %p3581_p7 = pneg %p3580_p5 }
 0x2e8   : > { %p3586_p9 = pnand %p3585_p8, %p3581_p7 }
 0x2ea   : > { %3589 = shalt.err (!%p3586_p9)
}
 0x2eb   : > { %3450 = dma.vmem_to_hbm [thread:$0]  (%p6452_p11), %s3247_s21, 128, %s3244_s24, %s3232_s28  }
 0x2ec PF: > { %s3258_s13 = sand.u32 1, %s3620_s15   ;;  %p6453_p13 = scmp.ne.s32.totalorder %s6190_s22, 0 }
 0x2ed   : > { %p6454_p10 = scmp.ge.s32.totalorder %s3632_s18, 2  ;;  %s3259_s14 = scalar_lea.sflag [#allocation4], %s3258_s13 }
 0x2ef   : > { %p3461_p2 = pnand %p6454_p10, %p6453_p13 }
 0x2f1   : > { %p3462_p1 = pneg %p3461_p2 }
 0x2f3   : > { %3615 = dma.done.wait (%p3462_p1), %s3259_s14, 128  }
 0x2f4   : > { %3617 = vsyncadd (%p3462_p1), %s3259_s14, 4294967168  ;;  %p18_p0 = scmp.ge.s32.totalorder %s3726_s27, 4   ;;  %s6455_s15 = smov %s3624_s16 }
 0x2f5   : > { %s6456_s16 = smov %s3628_s17  ;;  %s6457_s17 = smov %s3750_s8 }
 0x2f6   : > { %s6458_s18 = smov %s3726_s27  ;;  %20 = sbr.rel (!%p18_p0) target bundleno = 6 (0x6), region = 86 }
 0x2fb   :  { %3264 = vsyncpa [#allocation3], 1 }
 0x2fc   :  { %3266 = vsyncpa [#allocation3 + $0x1], 1 }
 0x2fd   :  { %3267 = vsyncpa [#allocation4], 1 }
 0x2fe   :  { %3269 = vsyncpa [#allocation4 + $0x1], 1 }
 0x2ff   :  { %3270 = vsyncpa [#allocation5], 1 }
 0x300   :  { %3272 = vsyncpa [#allocation5 + $0x1], 1 }

</bundles_post_ra>
